<compile_context>
chip_gen: v6e
topology: v6e:2x2x1
jax: 0.10.0
libtpu: 0.0.40
codegen_flags: <defaults>
</compile_context>

<pallas_src>
import functools
import math

import jax
import jax.numpy as jnp
from jax.experimental import pallas as pl
from jax.experimental.pallas import tpu as pltpu


def _round_up(n, m):
    return ((n + m - 1) // m) * m


_VMEM = pl.BlockSpec(memory_space=pltpu.MemorySpace.VMEM)


# ---------------------------------------------------------------------------
# Pallas kernels
# ---------------------------------------------------------------------------
def _conv_relu_pool_kernel(x_ref, w_ref, b_ref, o_ref):
    """Fused im2col-GEMM conv + bias + 2x2/stride-2 maxpool + ReLU.

    x_ref: [4, Mp, K]  axis 0 = the four positions of each 2x2 pooling window,
                       Mp = B * (OH//2) * (OW//2), K = KH*KW*IC (padded).
    w_ref: [K, OC], b_ref: [1, OC], o_ref: [Mp, OC]  (channels on lanes).
    """
    w = w_ref[...]
    acc = jnp.dot(x_ref[0], w, preferred_element_type=jnp.float32)
    for s in range(1, 4):
        acc = jnp.maximum(acc, jnp.dot(x_ref[s], w, preferred_element_type=jnp.float32))
    # bias is identical across the 4 window positions -> add once; relu(max) == max(relu)
    o_ref[...] = jnp.maximum(acc + b_ref[...], 0.0).astype(o_ref.dtype)


def _mlp_kernel(x_ref, w1_ref, b1_ref, w2_ref, b2_ref, o_ref):
    """Fused fc1(+ReLU) -> fc2.  x:[B,1024] w1:[1024,512] w2:[512,Npad]."""
    h = jnp.dot(x_ref[...], w1_ref[...], preferred_element_type=jnp.float32) + b1_ref[...]
    h = jnp.maximum(h, 0.0)
    o_ref[...] = (jnp.dot(h, w2_ref[...], preferred_element_type=jnp.float32)
                  + b2_ref[...]).astype(o_ref.dtype)


# ---------------------------------------------------------------------------
# Layer wrappers
# ---------------------------------------------------------------------------
def conv_relu_pool(x_nhwc, w_mat, bias_row, kh, kw):
    """VALID conv (stride 1) + bias + ReLU + 2x2 maxpool, NHWC in / NHWC out."""
    B, H, W, C = x_nhwc.shape
    OH, OW = H - kh + 1, W - kw + 1
    PH, PW = OH // 2, OW // 2
    K = kh * kw * C
    Kp, OC = w_mat.shape

    # im2col in (kh, kw, c) order, kept channels-last.
    cols = [x_nhwc[:, i:i + OH, j:j + OW, :] for i in range(kh) for j in range(kw)]
    p = jnp.stack(cols, axis=3).reshape(B, OH, OW, K)
    p = p[:, :2 * PH, :2 * PW, :]                       # floor-pool crop (no-op here)
    # Group the 4 elements of each pooling window on a leading axis.
    views = jnp.stack([p[:, 0::2, 0::2, :], p[:, 0::2, 1::2, :],
                       p[:, 1::2, 0::2, :], p[:, 1::2, 1::2, :]], axis=0)
    views = views.reshape(4, B * PH * PW, K)
    if Kp > K:
        views = jnp.pad(views, ((0, 0), (0, 0), (0, Kp - K)))

    out = pl.pallas_call(
        _conv_relu_pool_kernel,
        out_shape=jax.ShapeDtypeStruct((B * PH * PW, OC), jnp.float32),
        in_specs=[_VMEM, _VMEM, _VMEM],
        out_specs=_VMEM,
    )(views, w_mat, bias_row)
    return out.reshape(B, PH, PW, OC)


# ---------------------------------------------------------------------------
# One-time parameter re-layout (GEMM-ready, TPU-friendly)
# ---------------------------------------------------------------------------
def prepare_params(params):
    def conv_w(w):
        OC, IC, KH, KW = w.shape
        K = KH * KW * IC
        m = jnp.transpose(w, (2, 3, 1, 0)).reshape(K, OC)   # rows in (kh, kw, ic) order
        Kp = _round_up(K, 8)
        if Kp > K:
            m = jnp.pad(m, ((0, Kp - K), (0, 0)))
        return m

    c1_w = conv_w(params["conv1_w"])
    c2_w = conv_w(params["conv2_w"])
    c1_b = params["conv1_b"].reshape(1, -1)
    c2_b = params["conv2_b"].reshape(1, -1)

    # fc1: PyTorch flattens NCHW (C,H,W); our activations flatten NHWC (H,W,C).
    # Permute fc1's input dimension once so the fused FC kernel sees matching order.
    f1 = params["fc1_w"]                                   # [hidden, C*H*W]
    hidden, in_feat = f1.shape
    C = params["conv2_w"].shape[0]
    S = int(round(math.sqrt(in_feat // C)))
    f1_w = (f1.reshape(hidden, C, S, S)
              .transpose(0, 2, 3, 1)                       # (hidden, H, W, C)
              .reshape(hidden, in_feat).T)                 # [in_feat(HWC), hidden]
    f1_b = params["fc1_b"].reshape(1, -1)

    # fc2: pad output features to a 128-lane multiple (lane-dense store); slice later.
    f2 = params["fc2_w"]                                   # [num_classes, hidden]
    nc = f2.shape[0]
    nc_pad = _round_up(nc, 128)
    f2_w = jnp.pad(f2.T, ((0, 0), (0, nc_pad - nc)))       # [hidden, nc_pad]
    f2_b = jnp.pad(params["fc2_b"], (0, nc_pad - nc)).reshape(1, -1)

    return dict(c1_w=c1_w, c1_b=c1_b, c2_w=c2_w, c2_b=c2_b,
                f1_w=f1_w, f1_b=f1_b, f2_w=f2_w, f2_b=f2_b)


# ---------------------------------------------------------------------------
# Forward pass (mirrors CNN_simple.forward)
# ---------------------------------------------------------------------------
@functools.partial(jax.jit, static_argnames=("num_classes",))
def cnn_simple_forward(prep, x_nchw, *, num_classes=10):
    x = jnp.transpose(x_nchw, (0, 2, 3, 1))                # NCHW -> NHWC, once
    x = conv_relu_pool(x, prep["c1_w"], prep["c1_b"], 5, 5)   # conv1+relu+pool
    x = conv_relu_pool(x, prep["c2_w"], prep["c2_b"], 5, 5)   # conv2+relu+pool
    B = x.shape[0]
    x = x.reshape(B, -1)                                   # NHWC flatten (fc1_w permuted)
    n_pad = prep["f2_w"].shape[1]
    out = pl.pallas_call(
        _mlp_kernel,
        out_shape=jax.ShapeDtypeStruct((B, n_pad), jnp.float32),
        in_specs=[_VMEM] * 5,
        out_specs=_VMEM,
    )(x, prep["f1_w"], prep["f1_b"], prep["f2_w"], prep["f2_b"])
    return out[:, :num_classes]


# ---------------------------------------------------------------------------
# Parameters (deterministic, PyTorch-default-style uniform init)
# ---------------------------------------------------------------------------
def init_params(key, in_features=1, num_classes=10):
    ks = jax.random.split(key, 8)

    def u(k, shape, fan_in):
        bound = 1.0 / (fan_in ** 0.5)
        return jax.random.uniform(k, shape, jnp.float32, -bound, bound)

    return {
        "conv1_w": u(ks[0], (32, in_features, 5, 5), in_features * 25),
        "conv1_b": u(ks[1], (32,), in_features * 25),
        "conv2_w": u(ks[2], (64, 32, 5, 5), 32 * 25),
        "conv2_b": u(ks[3], (64,), 32 * 25),
        "fc1_w": u(ks[4], (512, 1024), 1024),
        "fc1_b": u(ks[5], (512,), 1024),
        "fc2_w": u(ks[6], (num_classes, 512), 512),
        "fc2_b": u(ks[7], (num_classes,), 512),
    }


# Pure-JAX reference for correctness check (NCHW, exactly the PyTorch semantics).
def reference_forward(params, x):
    dn = ("NCHW", "OIHW", "NCHW")
    y = jax.lax.conv_general_dilated(x, params["conv1_w"], (1, 1), "VALID",
                                     dimension_numbers=dn)
    y = jax.nn.relu(y + params["conv1_b"][None, :, None, None])
    y = jax.lax.reduce_window(y, -jnp.inf, jax.lax.max, (1, 1, 2, 2), (1, 1, 2, 2), "VALID")
    y = jax.lax.conv_general_dilated(y, params["conv2_w"], (1, 1), "VALID",
                                     dimension_numbers=dn)
    y = jax.nn.relu(y + params["conv2_b"][None, :, None, None])
    y = jax.lax.reduce_window(y, -jnp.inf, jax.lax.max, (1, 1, 2, 2), (1, 1, 2, 2), "VALID")
    y = y.reshape(y.shape[0], -1)
    y = jax.nn.relu(y @ params["fc1_w"].T + params["fc1_b"])
    return y @ params["fc2_w"].T + params["fc2_b"]


if __name__ == "__main__":
    key = jax.random.PRNGKey(0)
    kx, kp = jax.random.split(key)
    # fc1 expects 1024 = 64*4*4 features -> input spatial size must be 28x28 (MNIST-like).
    x = jax.random.normal(kx, (2, 1, 28, 28), jnp.float32)
    params = init_params(kp, in_features=1, num_classes=10)
    prep = prepare_params(params)   # one-time weight re-layout

    out = jax.block_until_ready(cnn_simple_forward(prep, x, num_classes=10))
    ref = jax.block_until_ready(reference_forward(params, x))

    assert out.shape == (2, 10), out.shape
    err = float(jnp.max(jnp.abs(out - ref)))
    assert jnp.allclose(out, ref, atol=1e-3, rtol=1e-3), err
    print("KERNEL_OK")
</pallas_src>

<mosaic_0001>
module attributes {stable_mosaic.version = 11 : i64} {
  func.func @_conv_relu_pool_kernel(%arg0: memref<4x288x32xf32, #tpu.memory_space<vmem>>, %arg1: memref<32x32xf32, #tpu.memory_space<vmem>>, %arg2: memref<1x32xf32, #tpu.memory_space<vmem>>, %arg3: memref<288x32xf32, #tpu.memory_space<vmem>>) attributes {dimension_semantics = [], scalar_prefetch = 0 : i64, scratch_operands = 0 : i64, tpu.core_type = #tpu.core_type<tc>} {
    %c0 = arith.constant 0 : index
    %c0_0 = arith.constant 0 : index
    %0 = vector.load %arg1[%c0, %c0_0] : memref<32x32xf32, #tpu.memory_space<vmem>>, vector<32x32xf32>
    %c0_1 = arith.constant 0 : index
    %c0_2 = arith.constant 0 : index
    %c0_3 = arith.constant 0 : index
    %1 = vector.load %arg0[%c0_1, %c0_2, %c0_3] : memref<4x288x32xf32, #tpu.memory_space<vmem>>, vector<1x288x32xf32>
    %2 = vector.shape_cast %1 : vector<1x288x32xf32> to vector<288x32xf32>
    %cst = arith.constant dense<0.000000e+00> : vector<288x32xf32>
    %3 = tpu.matmul %2, %0, %cst {dimension_numbers = #tpu.dot_dimension_numbers<[1], [0], [0], [1], [0, 0, 1, 1], [], []>} : vector<288x32xf32>, vector<32x32xf32>, vector<288x32xf32> -> vector<288x32xf32>
    %c1 = arith.constant 1 : index
    %c0_4 = arith.constant 0 : index
    %c0_5 = arith.constant 0 : index
    %4 = vector.load %arg0[%c1, %c0_4, %c0_5] : memref<4x288x32xf32, #tpu.memory_space<vmem>>, vector<1x288x32xf32>
    %5 = vector.shape_cast %4 : vector<1x288x32xf32> to vector<288x32xf32>
    %cst_6 = arith.constant dense<0.000000e+00> : vector<288x32xf32>
    %6 = tpu.matmul %5, %0, %cst_6 {dimension_numbers = #tpu.dot_dimension_numbers<[1], [0], [0], [1], [0, 0, 1, 1], [], []>} : vector<288x32xf32>, vector<32x32xf32>, vector<288x32xf32> -> vector<288x32xf32>
    %7 = arith.maximumf %3, %6 : vector<288x32xf32>
    %c2 = arith.constant 2 : index
    %c0_7 = arith.constant 0 : index
    %c0_8 = arith.constant 0 : index
    %8 = vector.load %arg0[%c2, %c0_7, %c0_8] : memref<4x288x32xf32, #tpu.memory_space<vmem>>, vector<1x288x32xf32>
    %9 = vector.shape_cast %8 : vector<1x288x32xf32> to vector<288x32xf32>
    %cst_9 = arith.constant dense<0.000000e+00> : vector<288x32xf32>
    %10 = tpu.matmul %9, %0, %cst_9 {dimension_numbers = #tpu.dot_dimension_numbers<[1], [0], [0], [1], [0, 0, 1, 1], [], []>} : vector<288x32xf32>, vector<32x32xf32>, vector<288x32xf32> -> vector<288x32xf32>
    %11 = arith.maximumf %7, %10 : vector<288x32xf32>
    %c3 = arith.constant 3 : index
    %c0_10 = arith.constant 0 : index
    %c0_11 = arith.constant 0 : index
    %12 = vector.load %arg0[%c3, %c0_10, %c0_11] : memref<4x288x32xf32, #tpu.memory_space<vmem>>, vector<1x288x32xf32>
    %13 = vector.shape_cast %12 : vector<1x288x32xf32> to vector<288x32xf32>
    %cst_12 = arith.constant dense<0.000000e+00> : vector<288x32xf32>
    %14 = tpu.matmul %13, %0, %cst_12 {dimension_numbers = #tpu.dot_dimension_numbers<[1], [0], [0], [1], [0, 0, 1, 1], [], []>} : vector<288x32xf32>, vector<32x32xf32>, vector<288x32xf32> -> vector<288x32xf32>
    %15 = arith.maximumf %11, %14 : vector<288x32xf32>
    %c0_13 = arith.constant 0 : index
    %c0_14 = arith.constant 0 : index
    %16 = vector.load %arg2[%c0_13, %c0_14] : memref<1x32xf32, #tpu.memory_space<vmem>>, vector<1x32xf32>
    %17 = vector.broadcast %16 : vector<1x32xf32> to vector<288x32xf32>
    %18 = arith.addf %15, %17 : vector<288x32xf32>
    %cst_15 = arith.constant 0.000000e+00 : f32
    %19 = vector.broadcast %cst_15 : f32 to vector<288x32xf32>
    %20 = arith.maximumf %18, %19 : vector<288x32xf32>
    %c0_16 = arith.constant 0 : index
    %c0_17 = arith.constant 0 : index
    %21 = vector.load %arg3[%c0_16, %c0_17] : memref<288x32xf32, #tpu.memory_space<vmem>>, vector<288x32xf32>
    tpu.vector_store %arg3[%c0_16, %c0_17], %20 {strides = array<i32>} : memref<288x32xf32, #tpu.memory_space<vmem>>, vector<288x32xf32>,
    return
  }
}

module attributes {stable_mosaic.version = 11 : i64} {
  func.func @_conv_relu_pool_kernel(%arg0: memref<4x32x800xf32, #tpu.memory_space<vmem>>, %arg1: memref<800x64xf32, #tpu.memory_space<vmem>>, %arg2: memref<1x64xf32, #tpu.memory_space<vmem>>, %arg3: memref<32x64xf32, #tpu.memory_space<vmem>>) attributes {dimension_semantics = [], scalar_prefetch = 0 : i64, scratch_operands = 0 : i64, tpu.core_type = #tpu.core_type<tc>} {
    %c0 = arith.constant 0 : index
    %c0_0 = arith.constant 0 : index
    %0 = vector.load %arg1[%c0, %c0_0] : memref<800x64xf32, #tpu.memory_space<vmem>>, vector<800x64xf32>
    %c0_1 = arith.constant 0 : index
    %c0_2 = arith.constant 0 : index
    %c0_3 = arith.constant 0 : index
    %1 = vector.load %arg0[%c0_1, %c0_2, %c0_3] : memref<4x32x800xf32, #tpu.memory_space<vmem>>, vector<1x32x800xf32>
    %2 = vector.shape_cast %1 : vector<1x32x800xf32> to vector<32x800xf32>
    %cst = arith.constant dense<0.000000e+00> : vector<32x64xf32>
    %3 = tpu.matmul %2, %0, %cst {dimension_numbers = #tpu.dot_dimension_numbers<[1], [0], [0], [1], [0, 0, 1, 1], [], []>} : vector<32x800xf32>, vector<800x64xf32>, vector<32x64xf32> -> vector<32x64xf32>
    %c1 = arith.constant 1 : index
    %c0_4 = arith.constant 0 : index
    %c0_5 = arith.constant 0 : index
    %4 = vector.load %arg0[%c1, %c0_4, %c0_5] : memref<4x32x800xf32, #tpu.memory_space<vmem>>, vector<1x32x800xf32>
    %5 = vector.shape_cast %4 : vector<1x32x800xf32> to vector<32x800xf32>
    %cst_6 = arith.constant dense<0.000000e+00> : vector<32x64xf32>
    %6 = tpu.matmul %5, %0, %cst_6 {dimension_numbers = #tpu.dot_dimension_numbers<[1], [0], [0], [1], [0, 0, 1, 1], [], []>} : vector<32x800xf32>, vector<800x64xf32>, vector<32x64xf32> -> vector<32x64xf32>
    %7 = arith.maximumf %3, %6 : vector<32x64xf32>
    %c2 = arith.constant 2 : index
    %c0_7 = arith.constant 0 : index
    %c0_8 = arith.constant 0 : index
    %8 = vector.load %arg0[%c2, %c0_7, %c0_8] : memref<4x32x800xf32, #tpu.memory_space<vmem>>, vector<1x32x800xf32>
    %9 = vector.shape_cast %8 : vector<1x32x800xf32> to vector<32x800xf32>
    %cst_9 = arith.constant dense<0.000000e+00> : vector<32x64xf32>
    %10 = tpu.matmul %9, %0, %cst_9 {dimension_numbers = #tpu.dot_dimension_numbers<[1], [0], [0], [1], [0, 0, 1, 1], [], []>} : vector<32x800xf32>, vector<800x64xf32>, vector<32x64xf32> -> vector<32x64xf32>
    %11 = arith.maximumf %7, %10 : vector<32x64xf32>
    %c3 = arith.constant 3 : index
    %c0_10 = arith.constant 0 : index
    %c0_11 = arith.constant 0 : index
    %12 = vector.load %arg0[%c3, %c0_10, %c0_11] : memref<4x32x800xf32, #tpu.memory_space<vmem>>, vector<1x32x800xf32>
    %13 = vector.shape_cast %12 : vector<1x32x800xf32> to vector<32x800xf32>
    %cst_12 = arith.constant dense<0.000000e+00> : vector<32x64xf32>
    %14 = tpu.matmul %13, %0, %cst_12 {dimension_numbers = #tpu.dot_dimension_numbers<[1], [0], [0], [1], [0, 0, 1, 1], [], []>} : vector<32x800xf32>, vector<800x64xf32>, vector<32x64xf32> -> vector<32x64xf32>
    %15 = arith.maximumf %11, %14 : vector<32x64xf32>
    %c0_13 = arith.constant 0 : index
    %c0_14 = arith.constant 0 : index
    %16 = vector.load %arg2[%c0_13, %c0_14] : memref<1x64xf32, #tpu.memory_space<vmem>>, vector<1x64xf32>
    %17 = vector.broadcast %16 : vector<1x64xf32> to vector<32x64xf32>
    %18 = arith.addf %15, %17 : vector<32x64xf32>
    %cst_15 = arith.constant 0.000000e+00 : f32
    %19 = vector.broadcast %cst_15 : f32 to vector<32x64xf32>
    %20 = arith.maximumf %18, %19 : vector<32x64xf32>
    %c0_16 = arith.constant 0 : index
    %c0_17 = arith.constant 0 : index
    %21 = vector.load %arg3[%c0_16, %c0_17] : memref<32x64xf32, #tpu.memory_space<vmem>>, vector<32x64xf32>
    tpu.vector_store %arg3[%c0_16, %c0_17], %20 {strides = array<i32>} : memref<32x64xf32, #tpu.memory_space<vmem>>, vector<32x64xf32>,
    return
  }
}

module attributes {stable_mosaic.version = 11 : i64} {
  func.func @_mlp_kernel(%arg0: memref<2x1024xf32, #tpu.memory_space<vmem>>, %arg1: memref<1024x512xf32, #tpu.memory_space<vmem>>, %arg2: memref<1x512xf32, #tpu.memory_space<vmem>>, %arg3: memref<512x128xf32, #tpu.memory_space<vmem>>, %arg4: memref<1x128xf32, #tpu.memory_space<vmem>>, %arg5: memref<2x128xf32, #tpu.memory_space<vmem>>) attributes {dimension_semantics = [], scalar_prefetch = 0 : i64, scratch_operands = 0 : i64, tpu.core_type = #tpu.core_type<tc>} {
    %c0 = arith.constant 0 : index
    %c0_0 = arith.constant 0 : index
    %0 = vector.load %arg0[%c0, %c0_0] : memref<2x1024xf32, #tpu.memory_space<vmem>>, vector<2x1024xf32>
    %c0_1 = arith.constant 0 : index
    %c0_2 = arith.constant 0 : index
    %1 = vector.load %arg1[%c0_1, %c0_2] : memref<1024x512xf32, #tpu.memory_space<vmem>>, vector<1024x512xf32>
    %cst = arith.constant dense<0.000000e+00> : vector<2x512xf32>
    %2 = tpu.matmul %0, %1, %cst {dimension_numbers = #tpu.dot_dimension_numbers<[1], [0], [0], [1], [0, 0, 1, 1], [], []>} : vector<2x1024xf32>, vector<1024x512xf32>, vector<2x512xf32> -> vector<2x512xf32>
    %c0_3 = arith.constant 0 : index
    %c0_4 = arith.constant 0 : index
    %3 = vector.load %arg2[%c0_3, %c0_4] : memref<1x512xf32, #tpu.memory_space<vmem>>, vector<1x512xf32>
    %4 = vector.broadcast %3 : vector<1x512xf32> to vector<2x512xf32>
    %5 = arith.addf %2, %4 : vector<2x512xf32>
    %cst_5 = arith.constant 0.000000e+00 : f32
    %6 = vector.broadcast %cst_5 : f32 to vector<2x512xf32>
    %7 = arith.maximumf %5, %6 : vector<2x512xf32>
    %c0_6 = arith.constant 0 : index
    %c0_7 = arith.constant 0 : index
    %8 = vector.load %arg3[%c0_6, %c0_7] : memref<512x128xf32, #tpu.memory_space<vmem>>, vector<512x128xf32>
    %cst_8 = arith.constant dense<0.000000e+00> : vector<2x128xf32>
    %9 = tpu.matmul %7, %8, %cst_8 {dimension_numbers = #tpu.dot_dimension_numbers<[1], [0], [0], [1], [0, 0, 1, 1], [], []>} : vector<2x512xf32>, vector<512x128xf32>, vector<2x128xf32> -> vector<2x128xf32>
    %c0_9 = arith.constant 0 : index
    %c0_10 = arith.constant 0 : index
    %10 = vector.load %arg4[%c0_9, %c0_10] : memref<1x128xf32, #tpu.memory_space<vmem>>, vector<1x128xf32>
    %11 = vector.broadcast %10 : vector<1x128xf32> to vector<2x128xf32>
    %12 = arith.addf %9, %11 : vector<2x128xf32>
    %c0_11 = arith.constant 0 : index
    %c0_12 = arith.constant 0 : index
    %13 = vector.load %arg5[%c0_11, %c0_12] : memref<2x128xf32, #tpu.memory_space<vmem>>, vector<2x128xf32>
    tpu.vector_store %arg5[%c0_11, %c0_12], %12 {strides = array<i32>} : memref<2x128xf32, #tpu.memory_space<vmem>>, vector<2x128xf32>,
    return
  }
}

</mosaic_0001>

<bundles_post_ra>
// kernel: cnn_simple_forward.3
= control target key start
LH: loop header
LB: loop body
LE: loop exit
PB: predicated region body
PF: predicated region fallthrough
CT: control target
= control target key end

     0   :  { %vm54_vm0 = vcmask 261120   ;;  %s3593_s1 = inlined_call_operand.vmem [shape: f32[32,32], index: 1, kind: input, shape index: {}]   ;;  %s3594_s0 = inlined_call_operand.vmem [shape: f32[4,288,32], index: 0, kind: input, shape index: {}]   ;;  %s3595_s2 = inlined_call_operand.vmem [shape: f32[1,32], index: 2, kind: input, shape index: {}]   ;;  %s3596_s3 = inlined_call_operand.vmem [shape: f32[288,32], index: 3, kind: output, shape index: {}]  }
   0x1   :  { %v17_v0 = vld [vmem:[%s3593_s1 + $0x18] sm:$0xff]  ;;  %v16_v1 = vld [vmem:[%s3593_s1 + $0x10] sm:$0xff]  ;;  %v15_v2 = vld [vmem:[%s3593_s1 + $0x8] sm:$0xff] }
   0x2   :  { %2218 = vmatprep.subr.mxu0 %v17_v0  ;;  %2280 = vmatprep.subr.mxu1 %v17_v0  ;;  %v2498_v3 = vld [vmem:[%s3593_s1] sm:$0xff]  ;;  %v19_v6 = vld [vmem:[%s3594_s0 + $0x8] sm:$0xff]  ;;  %v20_v8 = vld [vmem:[%s3594_s0 + $0x10] sm:$0xff] }
   0x3   :  { %2219 = vmatpush3.msra.mxu0 %v17_v0  ;;  %2281 = vmatpush3.msra.mxu1 %v17_v0  ;;  %v18_v4 = vld [vmem:[%s3594_s0] sm:$0xff]  ;;  %v1842_v7 = vld [vmem:[%s3594_s0 + $0x128] sm:$0xff]  ;;  %v1843_v9 = vld [vmem:[%s3594_s0 + $0x130] sm:$0xff] }
   0x4   :  { %2220 = vmatprep.subr.mxu0 %v16_v1  ;;  %2282 = vmatprep.subr.mxu1 %v16_v1  ;;  %v1841_v5 = vld [vmem:[%s3594_s0 + $0x120] sm:$0xff]  ;;  %v21_v10 = vld [vmem:[%s3594_s0 + $0x18] sm:$0xff]  ;;  %v23_v14 = vld [vmem:[%s3594_s0 + $0x28] sm:$0xff] }
   0x5   :  { %2221 = vmatpush3.msra.mxu0 %v16_v1  ;;  %2283 = vmatpush3.msra.mxu1 %v16_v1  ;;  %v1844_v11 = vld [vmem:[%s3594_s0 + $0x138] sm:$0xff]  ;;  %v22_v12 = vld [vmem:[%s3594_s0 + $0x20] sm:$0xff]  ;;  %v1846_v15 = vld [vmem:[%s3594_s0 + $0x148] sm:$0xff] }
   0x6   :  { %2222 = vmatprep.subr.mxu0 %v15_v2  ;;  %2284 = vmatprep.subr.mxu1 %v15_v2  ;;  %v1845_v13 = vld [vmem:[%s3594_s0 + $0x140] sm:$0xff]  ;;  %v24_v16 = vld [vmem:[%s3594_s0 + $0x30] sm:$0xff]  ;;  %v25_v18 = vld [vmem:[%s3594_s0 + $0x38] sm:$0xff] }
   0x7   :  { %2223 = vmatpush3.msra.mxu0 %v15_v2  ;;  %2285 = vmatpush3.msra.mxu1 %v15_v2  ;;  %v1847_v17 = vld [vmem:[%s3594_s0 + $0x150] sm:$0xff]  ;;  %v1848_v19 = vld [vmem:[%s3594_s0 + $0x158] sm:$0xff]  ;;  %v26_v20 = vld [vmem:[%s3594_s0 + $0x40] sm:$0xff] }
   0x8   :  { %2224 = vmatprep.subr.mxu0 %v2498_v3  ;;  %2286 = vmatprep.subr.mxu1 %v2498_v3  ;;  %v1849_v21 = vld [vmem:[%s3594_s0 + $0x160] sm:$0xff]  ;;  %v27_v22 = vld [vmem:[%s3594_s0 + $0x48] sm:$0xff]  ;;  %v28_v24 = vld [vmem:[%s3594_s0 + $0x50] sm:$0xff] }
   0x9   :  { %2225 = vmatpush3.msra.mxu0 %v2498_v3  ;;  %2226 = vmatprep.mubr.msk.f32.mxu0 %vm54_vm0, %v18_v4  ;;  %v1850_v23 = vld [vmem:[%s3594_s0 + $0x168] sm:$0xff]  ;;  %v1851_v25 = vld [vmem:[%s3594_s0 + $0x170] sm:$0xff]  ;;  %v29_v26 = vld [vmem:[%s3594_s0 + $0x58] sm:$0xff] }
   0xa   :  { %2287 = vmatpush3.msra.mxu1 %v2498_v3  ;;  %2288 = vmatprep.mubr.msk.f32.mxu1 %vm54_vm0, %v1841_v5  ;;  %v1852_v27 = vld [vmem:[%s3594_s0 + $0x178] sm:$0xff]  ;;  %v30_v28 = vld [vmem:[%s3594_s0 + $0x60] sm:$0xff]  ;;  %v31_v30 = vld [vmem:[%s3594_s0 + $0x68] sm:$0xff] }
   0xb   :  { %2227 = vmatmul.mubr.msk.f32.vlgmr.msra.gmra.mxu0 %vm54_vm0, %v19_v6  ;;  %2289 = vmatmul.mubr.msk.f32.vlgmr.msra.gmra.mxu1 %vm54_vm0, %v1842_v7  ;;  %v1853_v29 = vld [vmem:[%s3594_s0 + $0x180] sm:$0xff]  ;;  %v1854_v31 = vld [vmem:[%s3594_s0 + $0x188] sm:$0xff]  ;;  %v32_v32 = vld [vmem:[%s3594_s0 + $0x70] sm:$0xff] }
   0xc   :  { %2342 = vmatprep.subr.mxu0 %v17_v0  ;;  %2404 = vmatprep.subr.mxu1 %v17_v0  ;;  %v1855_v33 = vld [vmem:[%s3594_s0 + $0x190] sm:$0xff]  ;;  %v33_v34 = vld [vmem:[%s3594_s0 + $0x78] sm:$0xff]  ;;  %v34_v36 = vld [vmem:[%s3594_s0 + $0x80] sm:$0xff] }
   0xd   :  { %2343 = vmatpush3.msra.mxu0 %v17_v0  ;;  %2229 = vmatprep.mubr.msk.f32.mxu0 %vm54_vm0, %v20_v8  ;;  %v1856_v35 = vld [vmem:[%s3594_s0 + $0x198] sm:$0xff]  ;;  %v1857_v37 = vld [vmem:[%s3594_s0 + $0x1a0] sm:$0xff]  ;;  %v35_v38 = vld [vmem:[%s3594_s0 + $0x88] sm:$0xff] }
   0xe   :  { %2291 = vmatprep.mubr.msk.f32.mxu1 %vm54_vm0, %v1843_v9  ;;  %2405 = vmatpush3.msra.mxu1 %v17_v0  ;;  %v1858_v39 = vld [vmem:[%s3594_s0 + $0x1a8] sm:$0xff]  ;;  %v36_v40 = vld [vmem:[%s3594_s0 + $0x90] sm:$0xff]  ;;  %v37_v42 = vld [vmem:[%s3594_s0 + $0x98] sm:$0xff] }
   0xf   :  { %2230 = vmatmul.mubr.msk.f32.gmra.mxu0 %vm54_vm0, %v21_v10  ;;  %2292 = vmatmul.mubr.msk.f32.gmra.mxu1 %vm54_vm0, %v1844_v11  ;;  %v1859_v41 = vld [vmem:[%s3594_s0 + $0x1b0] sm:$0xff]  ;;  %v1860_v43 = vld [vmem:[%s3594_s0 + $0x1b8] sm:$0xff]  ;;  %v38_v44 = vld [vmem:[%s3594_s0 + $0xa0] sm:$0xff] }
  0x10   :  { %2232 = vmatprep.mubr.msk.f32.mxu0 %vm54_vm0, %v22_v12  ;;  %2294 = vmatprep.mubr.msk.f32.mxu1 %vm54_vm0, %v1845_v13  ;;  %v1861_v45 = vld [vmem:[%s3594_s0 + $0x1c0] sm:$0xff]  ;;  %v39_v46 = vld [vmem:[%s3594_s0 + $0xa8] sm:$0xff]  ;;  %v40_v48 = vld [vmem:[%s3594_s0 + $0xb0] sm:$0xff] }
  0x11   :  { %2344 = vmatprep.subr.mxu0 %v16_v1  ;;  %2406 = vmatprep.subr.mxu1 %v16_v1  ;;  %v1862_v47 = vld [vmem:[%s3594_s0 + $0x1c8] sm:$0xff]  ;;  %v1863_v49 = vld [vmem:[%s3594_s0 + $0x1d0] sm:$0xff]  ;;  %v41_v50 = vld [vmem:[%s3594_s0 + $0xb8] sm:$0xff] }
  0x12   :  { %2345 = vmatpush3.msra.mxu0 %v16_v1  ;;  %2407 = vmatpush3.msra.mxu1 %v16_v1  ;;  %v1864_v51 = vld [vmem:[%s3594_s0 + $0x1d8] sm:$0xff]  ;;  %v42_v52 = vld [vmem:[%s3594_s0 + $0xc0] sm:$0xff]  ;;  %v43_v54 = vld [vmem:[%s3594_s0 + $0xc8] sm:$0xff] }
  0x13   :  { %2233 = vmatmul.mubr.msk.f32.gmra.mxu0 %vm54_vm0, %v23_v14  ;;  %2295 = vmatmul.mubr.msk.f32.gmra.mxu1 %vm54_vm0, %v1846_v15  ;;  %v1865_v53 = vld [vmem:[%s3594_s0 + $0x1e0] sm:$0xff]  ;;  %v1866_v55 = vld [vmem:[%s3594_s0 + $0x1e8] sm:$0xff]  ;;  %v44_v56 = vld [vmem:[%s3594_s0 + $0xd0] sm:$0xff] }
  0x14   :  { %2235 = vmatprep.mubr.msk.f32.mxu0 %vm54_vm0, %v24_v16  ;;  %2297 = vmatprep.mubr.msk.f32.mxu1 %vm54_vm0, %v1847_v17  ;;  %v1867_v57 = vld [vmem:[%s3594_s0 + $0x1f0] sm:$0xff]  ;;  %v45_v58 = vld [vmem:[%s3594_s0 + $0xd8] sm:$0xff]  ;;  %v46_v60 = vld [vmem:[%s3594_s0 + $0xe0] sm:$0xff] }
  0x15   :  { %2346 = vmatprep.subr.mxu0 %v15_v2  ;;  %2408 = vmatprep.subr.mxu1 %v15_v2  ;;  %v1868_v59 = vld [vmem:[%s3594_s0 + $0x1f8] sm:$0xff]  ;;  %v1869_v61 = vld [vmem:[%s3594_s0 + $0x200] sm:$0xff]  ;;  %v47_v62 = vld [vmem:[%s3594_s0 + $0xe8] sm:$0xff] }
  0x16   :  { %2347 = vmatpush3.msra.mxu0 %v15_v2  ;;  %2409 = vmatpush3.msra.mxu1 %v15_v2  ;;  %v1870_v63 = vld [vmem:[%s3594_s0 + $0x208] sm:$0xff]  ;;  %v48_v0 = vld [vmem:[%s3594_s0 + $0xf0] sm:$0xff]  ;;  %v49_v2 = vld [vmem:[%s3594_s0 + $0xf8] sm:$0xff] }
  0x17   :  { %2236 = vmatmul.mubr.msk.f32.gmra.mxu0 %vm54_vm0, %v25_v18  ;;  %2298 = vmatmul.mubr.msk.f32.gmra.mxu1 %vm54_vm0, %v1848_v19  ;;  %v1871_v1 = vld [vmem:[%s3594_s0 + $0x210] sm:$0xff]  ;;  %v50_v4 = vld [vmem:[%s3594_s0 + $0x100] sm:$0xff]  ;;  %v51_v6 = vld [vmem:[%s3594_s0 + $0x108] sm:$0xff] }
  0x18   :  { %2238 = vmatprep.mubr.msk.f32.mxu0 %vm54_vm0, %v26_v20  ;;  %2300 = vmatprep.mubr.msk.f32.mxu1 %vm54_vm0, %v1849_v21  ;;  %v1873_v5 = vld [vmem:[%s3594_s0 + $0x220] sm:$0xff]  ;;  %v1874_v7 = vld [vmem:[%s3594_s0 + $0x228] sm:$0xff]  ;;  %v52_v8 = vld [vmem:[%s3594_s0 + $0x110] sm:$0xff] }
  0x19   :  { %2348 = vmatprep.subr.mxu0 %v2498_v3  ;;  %2410 = vmatprep.subr.mxu1 %v2498_v3  ;;  %v1875_v9 = vld [vmem:[%s3594_s0 + $0x230] sm:$0xff]  ;;  %v53_v10 = vld [vmem:[%s3594_s0 + $0x118] sm:$0xff]  ;;  %v1913_v12 = vld [vmem:[%s3594_s0 + $0x240] sm:$0xff] }
  0x1a   :  { %2349 = vmatpush3.msra.mxu0 %v2498_v3  ;;  %2411 = vmatpush3.msra.mxu1 %v2498_v3  ;;  %v1872_v3 = vld [vmem:[%s3594_s0 + $0x218] sm:$0xff]  ;;  %v1985_v13 = vld [vmem:[%s3594_s0 + $0x360] sm:$0xff]  ;;  %v1914_v14 = vld [vmem:[%s3594_s0 + $0x248] sm:$0xff] }
  0x1b   :  { %2239 = vmatmul.mubr.msk.f32.gmra.mxu0 %vm54_vm0, %v27_v22  ;;  %2301 = vmatmul.mubr.msk.f32.gmra.mxu1 %vm54_vm0, %v1850_v23  ;;  %v1876_v11 = vld [vmem:[%s3594_s0 + $0x238] sm:$0xff]  ;;  %v1986_v15 = vld [vmem:[%s3594_s0 + $0x368] sm:$0xff]  ;;  %v1915_v16 = vld [vmem:[%s3594_s0 + $0x250] sm:$0xff] }
  0x1c   :  { %2241 = vmatprep.mubr.msk.f32.mxu0 %vm54_vm0, %v28_v24  ;;  %2303 = vmatprep.mubr.msk.f32.mxu1 %vm54_vm0, %v1851_v25  ;;  %v1987_v17 = vld [vmem:[%s3594_s0 + $0x370] sm:$0xff]  ;;  %v1916_v18 = vld [vmem:[%s3594_s0 + $0x258] sm:$0xff]  ;;  %v1917_v20 = vld [vmem:[%s3594_s0 + $0x260] sm:$0xff] }
  0x1d   :  { %v1988_v19 = vld [vmem:[%s3594_s0 + $0x378] sm:$0xff]  ;;  %v1989_v21 = vld [vmem:[%s3594_s0 + $0x380] sm:$0xff]  ;;  %v1918_v22 = vld [vmem:[%s3594_s0 + $0x268] sm:$0xff] }
  0x1e   :  { %v1990_v23 = vld [vmem:[%s3594_s0 + $0x388] sm:$0xff]  ;;  %v1919_v24 = vld [vmem:[%s3594_s0 + $0x270] sm:$0xff] }
  0x1f   :  { %2242 = vmatmul.mubr.msk.f32.gmra.mxu0 %vm54_vm0, %v29_v26  ;;  %2304 = vmatmul.mubr.msk.f32.gmra.mxu1 %vm54_vm0, %v1852_v27  ;;  %v1991_v25 = vld [vmem:[%s3594_s0 + $0x390] sm:$0xff]  ;;  %v1920_v26 = vld [vmem:[%s3594_s0 + $0x278] sm:$0xff] }
  0x20   :  { %2244 = vmatprep.mubr.msk.f32.mxu0 %vm54_vm0, %v30_v28  ;;  %2306 = vmatprep.mubr.msk.f32.mxu1 %vm54_vm0, %v1853_v29  ;;  %v1992_v27 = vld [vmem:[%s3594_s0 + $0x398] sm:$0xff]  ;;  %v1921_v28 = vld [vmem:[%s3594_s0 + $0x280] sm:$0xff] }
  0x21   :  { %v1993_v29 = vld [vmem:[%s3594_s0 + $0x3a0] sm:$0xff] }
  0x23   :  { %2245 = vmatmul.mubr.msk.f32.gmra.mxu0 %vm54_vm0, %v31_v30  ;;  %2307 = vmatmul.mubr.msk.f32.gmra.mxu1 %vm54_vm0, %v1854_v31  ;;  %v1922_v30 = vld [vmem:[%s3594_s0 + $0x288] sm:$0xff] }
  0x24   :  { %2247 = vmatprep.mubr.msk.f32.mxu0 %vm54_vm0, %v32_v32  ;;  %2309 = vmatprep.mubr.msk.f32.mxu1 %vm54_vm0, %v1855_v33  ;;  %v1994_v31 = vld [vmem:[%s3594_s0 + $0x3a8] sm:$0xff]  ;;  %v1923_v32 = vld [vmem:[%s3594_s0 + $0x290] sm:$0xff] }
  0x25   :  { %v1995_v33 = vld [vmem:[%s3594_s0 + $0x3b0] sm:$0xff] }
  0x27   :  { %2248 = vmatmul.mubr.msk.f32.gmra.mxu0 %vm54_vm0, %v33_v34  ;;  %2310 = vmatmul.mubr.msk.f32.gmra.mxu1 %vm54_vm0, %v1856_v35  ;;  %v1924_v34 = vld [vmem:[%s3594_s0 + $0x298] sm:$0xff] }
  0x28   :  { %2250 = vmatprep.mubr.msk.f32.mxu0 %vm54_vm0, %v34_v36  ;;  %2312 = vmatprep.mubr.msk.f32.mxu1 %vm54_vm0, %v1857_v37  ;;  %v1996_v35 = vld [vmem:[%s3594_s0 + $0x3b8] sm:$0xff]  ;;  %v1925_v36 = vld [vmem:[%s3594_s0 + $0x2a0] sm:$0xff] }
  0x29   :  { %v1997_v37 = vld [vmem:[%s3594_s0 + $0x3c0] sm:$0xff] }
  0x2b   :  { %2251 = vmatmul.mubr.msk.f32.gmra.mxu0 %vm54_vm0, %v35_v38  ;;  %2313 = vmatmul.mubr.msk.f32.gmra.mxu1 %vm54_vm0, %v1858_v39  ;;  %v1926_v38 = vld [vmem:[%s3594_s0 + $0x2a8] sm:$0xff] }
  0x2c   :  { %2253 = vmatprep.mubr.msk.f32.mxu0 %vm54_vm0, %v36_v40  ;;  %2315 = vmatprep.mubr.msk.f32.mxu1 %vm54_vm0, %v1859_v41  ;;  %v1998_v39 = vld [vmem:[%s3594_s0 + $0x3c8] sm:$0xff]  ;;  %v1927_v40 = vld [vmem:[%s3594_s0 + $0x2b0] sm:$0xff] }
  0x2d   :  { %v1999_v41 = vld [vmem:[%s3594_s0 + $0x3d0] sm:$0xff] }
  0x2f   :  { %2254 = vmatmul.mubr.msk.f32.gmra.mxu0 %vm54_vm0, %v37_v42  ;;  %2316 = vmatmul.mubr.msk.f32.gmra.mxu1 %vm54_vm0, %v1860_v43  ;;  %v1928_v42 = vld [vmem:[%s3594_s0 + $0x2b8] sm:$0xff] }
  0x30   :  { %2256 = vmatprep.mubr.msk.f32.mxu0 %vm54_vm0, %v38_v44  ;;  %2318 = vmatprep.mubr.msk.f32.mxu1 %vm54_vm0, %v1861_v45  ;;  %v2000_v43 = vld [vmem:[%s3594_s0 + $0x3d8] sm:$0xff]  ;;  %v1929_v44 = vld [vmem:[%s3594_s0 + $0x2c0] sm:$0xff] }
  0x31   :  { %v2001_v45 = vld [vmem:[%s3594_s0 + $0x3e0] sm:$0xff] }
  0x33   :  { %2257 = vmatmul.mubr.msk.f32.gmra.mxu0 %vm54_vm0, %v39_v46  ;;  %2319 = vmatmul.mubr.msk.f32.gmra.mxu1 %vm54_vm0, %v1862_v47  ;;  %v1930_v46 = vld [vmem:[%s3594_s0 + $0x2c8] sm:$0xff] }
  0x34   :  { %2259 = vmatprep.mubr.msk.f32.mxu0 %vm54_vm0, %v40_v48  ;;  %2321 = vmatprep.mubr.msk.f32.mxu1 %vm54_vm0, %v1863_v49  ;;  %v2002_v47 = vld [vmem:[%s3594_s0 + $0x3e8] sm:$0xff]  ;;  %v1931_v48 = vld [vmem:[%s3594_s0 + $0x2d0] sm:$0xff] }
  0x35   :  { %v2003_v49 = vld [vmem:[%s3594_s0 + $0x3f0] sm:$0xff] }
  0x37   :  { %2260 = vmatmul.mubr.msk.f32.gmra.mxu0 %vm54_vm0, %v41_v50  ;;  %2322 = vmatmul.mubr.msk.f32.gmra.mxu1 %vm54_vm0, %v1864_v51  ;;  %v1932_v50 = vld [vmem:[%s3594_s0 + $0x2d8] sm:$0xff] }
  0x38   :  { %2262 = vmatprep.mubr.msk.f32.mxu0 %vm54_vm0, %v42_v52  ;;  %2324 = vmatprep.mubr.msk.f32.mxu1 %vm54_vm0, %v1865_v53  ;;  %v2004_v51 = vld [vmem:[%s3594_s0 + $0x3f8] sm:$0xff]  ;;  %v1933_v52 = vld [vmem:[%s3594_s0 + $0x2e0] sm:$0xff] }
  0x39   :  { %v2005_v53 = vld [vmem:[%s3594_s0 + $0x400] sm:$0xff] }
  0x3b   :  { %2263 = vmatmul.mubr.msk.f32.gmra.mxu0 %vm54_vm0, %v43_v54  ;;  %2325 = vmatmul.mubr.msk.f32.gmra.mxu1 %vm54_vm0, %v1866_v55  ;;  %v1934_v54 = vld [vmem:[%s3594_s0 + $0x2e8] sm:$0xff] }
  0x3c   :  { %2265 = vmatprep.mubr.msk.f32.mxu0 %vm54_vm0, %v44_v56  ;;  %2327 = vmatprep.mubr.msk.f32.mxu1 %vm54_vm0, %v1867_v57  ;;  %v2006_v55 = vld [vmem:[%s3594_s0 + $0x408] sm:$0xff]  ;;  %v1935_v56 = vld [vmem:[%s3594_s0 + $0x2f0] sm:$0xff] }
  0x3d   :  { %v2007_v57 = vld [vmem:[%s3594_s0 + $0x410] sm:$0xff] }
  0x3f   :  { %2266 = vmatmul.mubr.msk.f32.gmra.mxu0 %vm54_vm0, %v45_v58  ;;  %2328 = vmatmul.mubr.msk.f32.gmra.mxu1 %vm54_vm0, %v1868_v59  ;;  %v1936_v58 = vld [vmem:[%s3594_s0 + $0x2f8] sm:$0xff] }
  0x40   :  { %2268 = vmatprep.mubr.msk.f32.mxu0 %vm54_vm0, %v46_v60  ;;  %2330 = vmatprep.mubr.msk.f32.mxu1 %vm54_vm0, %v1869_v61  ;;  %v2008_v59 = vld [vmem:[%s3594_s0 + $0x418] sm:$0xff]  ;;  %v1937_v60 = vld [vmem:[%s3594_s0 + $0x300] sm:$0xff] }
  0x41   :  { %v2009_v61 = vld [vmem:[%s3594_s0 + $0x420] sm:$0xff] }
  0x43   :  { %2269 = vmatmul.mubr.msk.f32.gmra.mxu0 %vm54_vm0, %v47_v62  ;;  %2331 = vmatmul.mubr.msk.f32.gmra.mxu1 %vm54_vm0, %v1870_v63  ;;  %v1938_v62 = vld [vmem:[%s3594_s0 + $0x308] sm:$0xff] }
  0x44   :  { %2271 = vmatprep.mubr.msk.f32.mxu0 %vm54_vm0, %v48_v0  ;;  %2333 = vmatprep.mubr.msk.f32.mxu1 %vm54_vm0, %v1871_v1  ;;  %v2010_v63 = vld [vmem:[%s3594_s0 + $0x428] sm:$0xff]  ;;  %v1939_v0 = vld [vmem:[%s3594_s0 + $0x310] sm:$0xff] }
  0x45   :  { %v2011_v1 = vld [vmem:[%s3594_s0 + $0x430] sm:$0xff] }
  0x47   :  { %2272 = vmatmul.mubr.msk.f32.gmra.mxu0 %vm54_vm0, %v49_v2  ;;  %2334 = vmatmul.mubr.msk.f32.gmra.mxu1 %vm54_vm0, %v1872_v3  ;;  %v1940_v2 = vld [vmem:[%s3594_s0 + $0x318] sm:$0xff] }
  0x48   :  { %2274 = vmatprep.mubr.msk.f32.mxu0 %vm54_vm0, %v50_v4  ;;  %2336 = vmatprep.mubr.msk.f32.mxu1 %vm54_vm0, %v1873_v5  ;;  %v2012_v3 = vld [vmem:[%s3594_s0 + $0x438] sm:$0xff]  ;;  %v1941_v4 = vld [vmem:[%s3594_s0 + $0x320] sm:$0xff] }
  0x49   :  { %v2013_v5 = vld [vmem:[%s3594_s0 + $0x440] sm:$0xff] }
  0x4b   :  { %2275 = vmatmul.mubr.msk.f32.gmra.mxu0 %vm54_vm0, %v51_v6  ;;  %2337 = vmatmul.mubr.msk.f32.gmra.mxu1 %vm54_vm0, %v1874_v7  ;;  %v1942_v6 = vld [vmem:[%s3594_s0 + $0x328] sm:$0xff] }
  0x4c   :  { %2277 = vmatprep.mubr.msk.f32.mxu0 %vm54_vm0, %v52_v8  ;;  %2339 = vmatprep.mubr.msk.f32.mxu1 %vm54_vm0, %v1875_v9  ;;  %v2014_v7 = vld [vmem:[%s3594_s0 + $0x448] sm:$0xff]  ;;  %v1943_v8 = vld [vmem:[%s3594_s0 + $0x330] sm:$0xff] }
  0x4d   :  { %v2015_v9 = vld [vmem:[%s3594_s0 + $0x450] sm:$0xff] }
  0x4f   :  { %2278 = vmatmul.mubr.msk.f32.gmra.mxu0 %vm54_vm0, %v53_v10  ;;  %2340 = vmatmul.mubr.msk.f32.gmra.mxu1 %vm54_vm0, %v1876_v11  ;;  %v1944_v10 = vld [vmem:[%s3594_s0 + $0x338] sm:$0xff] }
  0x50   :  { %2350 = vmatprep.mubr.msk.f32.mxu0 %vm54_vm0, %v1913_v12  ;;  %2412 = vmatprep.mubr.msk.f32.mxu1 %vm54_vm0, %v1985_v13  ;;  %v2016_v11 = vld [vmem:[%s3594_s0 + $0x458] sm:$0xff]  ;;  %v1945_v12 = vld [vmem:[%s3594_s0 + $0x340] sm:$0xff] }
  0x51   :  { %v2017_v13 = vld [vmem:[%s3594_s0 + $0x460] sm:$0xff] }
  0x53   :  { %2351 = vmatmul.mubr.msk.f32.vlgmr.msra.gmra.mxu0 %vm54_vm0, %v1914_v14  ;;  %2413 = vmatmul.mubr.msk.f32.vlgmr.msra.gmra.mxu1 %vm54_vm0, %v1986_v15  ;;  %v1946_v14 = vld [vmem:[%s3594_s0 + $0x348] sm:$0xff] }
  0x54   :  { %2353 = vmatprep.mubr.msk.f32.mxu0 %vm54_vm0, %v1915_v16  ;;  %2415 = vmatprep.mubr.msk.f32.mxu1 %vm54_vm0, %v1987_v17  ;;  %v2018_v15 = vld [vmem:[%s3594_s0 + $0x468] sm:$0xff]  ;;  %v1947_v16 = vld [vmem:[%s3594_s0 + $0x350] sm:$0xff] }
  0x55   :  { %v2019_v17 = vld [vmem:[%s3594_s0 + $0x470] sm:$0xff] }
  0x57   :  { %2354 = vmatmul.mubr.msk.f32.gmra.mxu0 %vm54_vm0, %v1916_v18  ;;  %2416 = vmatmul.mubr.msk.f32.gmra.mxu1 %vm54_vm0, %v1988_v19  ;;  %v1948_v18 = vld [vmem:[%s3594_s0 + $0x358] sm:$0xff] }
  0x58   :  { %2356 = vmatprep.mubr.msk.f32.mxu0 %vm54_vm0, %v1917_v20  ;;  %2418 = vmatprep.mubr.msk.f32.mxu1 %vm54_vm0, %v1989_v21  ;;  %v2020_v19 = vld [vmem:[%s3594_s0 + $0x478] sm:$0xff] }
  0x5b   :  { %2357 = vmatmul.mubr.msk.f32.gmra.mxu0 %vm54_vm0, %v1918_v22  ;;  %2419 = vmatmul.mubr.msk.f32.gmra.mxu1 %vm54_vm0, %v1990_v23 }
  0x5c   :  { %2359 = vmatprep.mubr.msk.f32.mxu0 %vm54_vm0, %v1919_v24  ;;  %2421 = vmatprep.mubr.msk.f32.mxu1 %vm54_vm0, %v1991_v25 }
  0x5f   :  { %2360 = vmatmul.mubr.msk.f32.gmra.mxu0 %vm54_vm0, %v1920_v26  ;;  %2422 = vmatmul.mubr.msk.f32.gmra.mxu1 %vm54_vm0, %v1992_v27 }
  0x60   :  { %2362 = vmatprep.mubr.msk.f32.mxu0 %vm54_vm0, %v1921_v28  ;;  %2424 = vmatprep.mubr.msk.f32.mxu1 %vm54_vm0, %v1993_v29 }
  0x63   :  { %2363 = vmatmul.mubr.msk.f32.gmra.mxu0 %vm54_vm0, %v1922_v30  ;;  %2425 = vmatmul.mubr.msk.f32.gmra.mxu1 %vm54_vm0, %v1994_v31 }
  0x64   :  { %2365 = vmatprep.mubr.msk.f32.mxu0 %vm54_vm0, %v1923_v32  ;;  %2427 = vmatprep.mubr.msk.f32.mxu1 %vm54_vm0, %v1995_v33 }
  0x67   :  { %2366 = vmatmul.mubr.msk.f32.gmra.mxu0 %vm54_vm0, %v1924_v34  ;;  %2428 = vmatmul.mubr.msk.f32.gmra.mxu1 %vm54_vm0, %v1996_v35 }
  0x68   :  { %2368 = vmatprep.mubr.msk.f32.mxu0 %vm54_vm0, %v1925_v36  ;;  %2430 = vmatprep.mubr.msk.f32.mxu1 %vm54_vm0, %v1997_v37 }
  0x6b   :  { %2369 = vmatmul.mubr.msk.f32.gmra.mxu0 %vm54_vm0, %v1926_v38  ;;  %2431 = vmatmul.mubr.msk.f32.gmra.mxu1 %vm54_vm0, %v1998_v39 }
  0x6c   :  { %2371 = vmatprep.mubr.msk.f32.mxu0 %vm54_vm0, %v1927_v40  ;;  %2433 = vmatprep.mubr.msk.f32.mxu1 %vm54_vm0, %v1999_v41 }
  0x6f   :  { %2372 = vmatmul.mubr.msk.f32.gmra.mxu0 %vm54_vm0, %v1928_v42  ;;  %2434 = vmatmul.mubr.msk.f32.gmra.mxu1 %vm54_vm0, %v2000_v43 }
  0x70   :  { %2374 = vmatprep.mubr.msk.f32.mxu0 %vm54_vm0, %v1929_v44  ;;  %2436 = vmatprep.mubr.msk.f32.mxu1 %vm54_vm0, %v2001_v45 }
  0x73   :  { %2375 = vmatmul.mubr.msk.f32.gmra.mxu0 %vm54_vm0, %v1930_v46  ;;  %2437 = vmatmul.mubr.msk.f32.gmra.mxu1 %vm54_vm0, %v2002_v47 }
  0x74   :  { %2377 = vmatprep.mubr.msk.f32.mxu0 %vm54_vm0, %v1931_v48  ;;  %2439 = vmatprep.mubr.msk.f32.mxu1 %vm54_vm0, %v2003_v49 }
  0x77   :  { %2378 = vmatmul.mubr.msk.f32.gmra.mxu0 %vm54_vm0, %v1932_v50  ;;  %2440 = vmatmul.mubr.msk.f32.gmra.mxu1 %vm54_vm0, %v2004_v51 }
  0x78   :  { %2380 = vmatprep.mubr.msk.f32.mxu0 %vm54_vm0, %v1933_v52  ;;  %2442 = vmatprep.mubr.msk.f32.mxu1 %vm54_vm0, %v2005_v53 }
  0x7b   :  { %2381 = vmatmul.mubr.msk.f32.gmra.mxu0 %vm54_vm0, %v1934_v54  ;;  %2443 = vmatmul.mubr.msk.f32.gmra.mxu1 %vm54_vm0, %v2006_v55 }
  0x7c   :  { %2383 = vmatprep.mubr.msk.f32.mxu0 %vm54_vm0, %v1935_v56  ;;  %2445 = vmatprep.mubr.msk.f32.mxu1 %vm54_vm0, %v2007_v57 }
  0x7f   :  { %2384 = vmatmul.mubr.msk.f32.gmra.mxu0 %vm54_vm0, %v1936_v58  ;;  %2446 = vmatmul.mubr.msk.f32.gmra.mxu1 %vm54_vm0, %v2008_v59 }
  0x80   :  { %2386 = vmatprep.mubr.msk.f32.mxu0 %vm54_vm0, %v1937_v60  ;;  %2448 = vmatprep.mubr.msk.f32.mxu1 %vm54_vm0, %v2009_v61 }
  0x83   :  { %2387 = vmatmul.mubr.msk.f32.gmra.mxu0 %vm54_vm0, %v1938_v62  ;;  %2449 = vmatmul.mubr.msk.f32.gmra.mxu1 %vm54_vm0, %v2010_v63 }
  0x84   :  { %2389 = vmatprep.mubr.msk.f32.mxu0 %vm54_vm0, %v1939_v0  ;;  %2451 = vmatprep.mubr.msk.f32.mxu1 %vm54_vm0, %v2011_v1 }
  0x87   :  { %2390 = vmatmul.mubr.msk.f32.gmra.mxu0 %vm54_vm0, %v1940_v2  ;;  %2452 = vmatmul.mubr.msk.f32.gmra.mxu1 %vm54_vm0, %v2012_v3 }
  0x88   :  { %2392 = vmatprep.mubr.msk.f32.mxu0 %vm54_vm0, %v1941_v4  ;;  %2454 = vmatprep.mubr.msk.f32.mxu1 %vm54_vm0, %v2013_v5 }
  0x8b   :  { %2393 = vmatmul.mubr.msk.f32.gmra.mxu0 %vm54_vm0, %v1942_v6  ;;  %2455 = vmatmul.mubr.msk.f32.gmra.mxu1 %vm54_vm0, %v2014_v7 }
  0x8c   :  { %2395 = vmatprep.mubr.msk.f32.mxu0 %vm54_vm0, %v1943_v8  ;;  %2457 = vmatprep.mubr.msk.f32.mxu1 %vm54_vm0, %v2015_v9 }
  0x8f   :  { %2396 = vmatmul.mubr.msk.f32.gmra.mxu0 %vm54_vm0, %v1944_v10  ;;  %2458 = vmatmul.mubr.msk.f32.gmra.mxu1 %vm54_vm0, %v2016_v11 }
  0x90   :  { %2398 = vmatprep.mubr.msk.f32.mxu0 %vm54_vm0, %v1945_v12  ;;  %2460 = vmatprep.mubr.msk.f32.mxu1 %vm54_vm0, %v2017_v13 }
  0x93   :  { %2399 = vmatmul.mubr.msk.f32.gmra.mxu0 %vm54_vm0, %v1946_v14  ;;  %2461 = vmatmul.mubr.msk.f32.gmra.mxu1 %vm54_vm0, %v2018_v15 }
  0x94   :  { %2401 = vmatprep.mubr.msk.f32.mxu0 %vm54_vm0, %v1947_v16  ;;  %2463 = vmatprep.mubr.msk.f32.mxu1 %vm54_vm0, %v2019_v17 }
  0x97   :  { %2402 = vmatmul.mubr.msk.f32.gmra.mxu0 %vm54_vm0, %v1948_v18  ;;  %2464 = vmatmul.mubr.msk.f32.gmra.mxu1 %vm54_vm0, %v2020_v19 }
  0xcb   :  { %v3084_v20 = vpop.f32.mrf.mxu0  ;;  %v3086_v21 = vpop.f32.mrf.mxu1 }
  0xcd   :  { %v3090_v23 = vpop.f32.mrf.mxu0  ;;  %v3092_v24 = vpop.f32.mrf.mxu1 }
  0xcf   :  { %v3096_v26 = vpop.f32.mrf.mxu0  ;;  %v3098_v27 = vpop.f32.mrf.mxu1 }
  0xd1   :  { %v3102_v29 = vpop.f32.mrf.mxu0  ;;  %v3104_v30 = vpop.f32.mrf.mxu1 }
  0xd3   :  { %v3108_v32 = vpop.f32.mrf.mxu0  ;;  %v3110_v33 = vpop.f32.mrf.mxu1 }
  0xd5   :  { %v3114_v35 = vpop.f32.mrf.mxu0  ;;  %v3116_v36 = vpop.f32.mrf.mxu1 }
  0xd7   :  { %v3120_v38 = vpop.f32.mrf.mxu0  ;;  %v3122_v39 = vpop.f32.mrf.mxu1 }
  0xd9   :  { %v3126_v41 = vpop.f32.mrf.mxu0  ;;  %v3128_v42 = vpop.f32.mrf.mxu1 }
  0xdb   :  { %v3132_v44 = vpop.f32.mrf.mxu0  ;;  %v3134_v45 = vpop.f32.mrf.mxu1 }
  0xdd   :  { %v3138_v47 = vpop.f32.mrf.mxu0  ;;  %v3140_v48 = vpop.f32.mrf.mxu1 }
  0xdf   :  { %v3144_v50 = vpop.f32.mrf.mxu0  ;;  %v3146_v51 = vpop.f32.mrf.mxu1 }
  0xe1   :  { %v3150_v53 = vpop.f32.mrf.mxu0  ;;  %v3152_v54 = vpop.f32.mrf.mxu1 }
  0xe3   :  { %v3156_v56 = vpop.f32.mrf.mxu0  ;;  %v3158_v57 = vpop.f32.mrf.mxu1 }
  0xe5   :  { %v3162_v59 = vpop.f32.mrf.mxu0  ;;  %v3164_v60 = vpop.f32.mrf.mxu1 }
  0xe7   :  { %v3168_v62 = vpop.f32.mrf.mxu0  ;;  %v3170_v63 = vpop.f32.mrf.mxu1 }
  0xe9   :  { %v3174_v1 = vpop.f32.mrf.mxu0  ;;  %v3176_v2 = vpop.f32.mrf.mxu1 }
  0xeb   :  { %v3180_v4 = vpop.f32.mrf.mxu0  ;;  %v3182_v5 = vpop.f32.mrf.mxu1 }
  0xed   :  { %v3186_v7 = vpop.f32.mrf.mxu0  ;;  %v3188_v8 = vpop.f32.mrf.mxu1 }
  0xef   :  { %v3192_v10 = vpop.f32.mrf.mxu0  ;;  %v3194_v11 = vpop.f32.mrf.mxu1 }
  0xf1   :  { %v3198_v13 = vpop.f32.mrf.mxu0  ;;  %v3200_v14 = vpop.f32.mrf.mxu1 }
  0xf3   :  { %v3204_v16 = vpop.f32.mrf.mxu0  ;;  %v3206_v17 = vpop.f32.mrf.mxu1 }
  0xf5   :  { %v3210_v19 = vpop.f32.mrf.mxu0  ;;  %v3212_v9 = vpop.f32.mrf.mxu1 }
  0xf7   :  { %v3216_v6 = vpop.f32.mrf.mxu0  ;;  %v3218_v3 = vpop.f32.mrf.mxu1 }
  0xf9   :  { %v3222_v0 = vpop.f32.mrf.mxu0  ;;  %v3224_v61 = vpop.f32.mrf.mxu1 }
  0xfa   :  { %3622 = vst [vmem:[#allocation2_spill] sm:$0xff] %v3224_v61 }
  0xfb   :  { %v3228_v58 = vpop.f32.mrf.mxu0  ;;  %v3230_v55 = vpop.f32.mrf.mxu1 }
  0xfc   :  { %3623 = vst [vmem:[#allocation3_spill] sm:$0xff] %v3228_v58  ;;  %3624 = vst [vmem:[#allocation4_spill] sm:$0xff] %v3230_v55 }
  0xfd   :  { %v3234_v52 = vpop.f32.mrf.mxu0  ;;  %v3236_v49 = vpop.f32.mrf.mxu1 }
  0xfe   :  { %3625 = vst [vmem:[#allocation5_spill] sm:$0xff] %v3234_v52  ;;  %3626 = vst [vmem:[#allocation6_spill] sm:$0xff] %v3236_v49 }
  0xff   :  { %v3240_v46 = vpop.f32.mrf.mxu0  ;;  %v3242_v43 = vpop.f32.mrf.mxu1 }
 0x100   :  { %3627 = vst [vmem:[#allocation7_spill] sm:$0xff] %v3240_v46  ;;  %3628 = vst [vmem:[#allocation8_spill] sm:$0xff] %v3242_v43  ;;  %v3647_v46 = vmax.f32 %v3084_v20, %v3086_v21  ;;  %v3649_v20 = vmax.f32 %v3096_v26, %v3098_v27 }
 0x101   :  { %v3246_v40 = vpop.f32.mrf.mxu0  ;;  %v3248_v37 = vpop.f32.mrf.mxu1 }
 0x102   :  { %3629 = vst [vmem:[#allocation9_spill] sm:$0xff] %v3246_v40  ;;  %3630 = vst [vmem:[#allocation10_spill] sm:$0xff] %v3248_v37 }
 0x103   :  { %v3252_v34 = vpop.f32.mrf.mxu0  ;;  %v3254_v31 = vpop.f32.mrf.mxu1 }
 0x104   :  { %3631 = vst [vmem:[#allocation11_spill] sm:$0xff] %v3252_v34  ;;  %3632 = vst [vmem:[#allocation12_spill] sm:$0xff] %v3254_v31 }
 0x105   :  { %v3258_v28 = vpop.f32.mrf.mxu0  ;;  %v3260_v25 = vpop.f32.mrf.mxu1 }
 0x106   :  { %3633 = vst [vmem:[#allocation13_spill] sm:$0xff] %v3258_v28  ;;  %3634 = vst [vmem:[#allocation14_spill] sm:$0xff] %v3260_v25 }
 0x107   :  { %v3264_v22 = vpop.f32.mrf.mxu0  ;;  %v3266_v43 = vpop.f32.mrf.mxu1 }
 0x108   :  { %3635 = vst [vmem:[#allocation15_spill] sm:$0xff] %v3264_v22  ;;  %3636 = vst [vmem:[#allocation16_spill] sm:$0xff] %v3266_v43 }
 0x109   :  { %v3270_v37 = vpop.f32.mrf.mxu0  ;;  %v3272_v40 = vpop.f32.mrf.mxu1 }
 0x10a   :  { %3637 = vst [vmem:[#allocation17_spill] sm:$0xff] %v3270_v37  ;;  %3638 = vst [vmem:[#allocation18_spill] sm:$0xff] %v3272_v40 }
 0x10b   :  { %v3276_v31 = vpop.f32.mrf.mxu0  ;;  %v3278_v34 = vpop.f32.mrf.mxu1 }
 0x10c   :  { %3639 = vst [vmem:[#allocation19_spill] sm:$0xff] %v3276_v31  ;;  %3640 = vst [vmem:[#allocation20_spill] sm:$0xff] %v3278_v34 }
 0x10d   :  { %v3282_v25 = vpop.f32.mrf.mxu0  ;;  %v3284_v28 = vpop.f32.mrf.mxu1 }
 0x10e   :  { %3641 = vst [vmem:[#allocation21_spill] sm:$0xff] %v3282_v25  ;;  %3642 = vst [vmem:[#allocation22_spill] sm:$0xff] %v3284_v28  ;;  %v3306_v28 = vld [vmem:[%s3595_s2] ss:$0 sm:$0xff] }
 0x10f   :  { %v3288_v43 = vpop.f32.mrf.mxu0  ;;  %v3290_v22 = vpop.f32.mrf.mxu1 }
 0x110   :  { %3643 = vst [vmem:[#allocation23_spill] sm:$0xff] %v3288_v43  ;;  %3644 = vst [vmem:[#allocation24_spill] sm:$0xff] %v3290_v22  ;;  %v3648_v43 = vmax.f32 %v3090_v23, %v3092_v24 }
 0x111   :  { %v3294_v40 = vpop.f32.mrf.mxu0  ;;  %v3296_v37 = vpop.f32.mrf.mxu1 }
 0x112   :  { %3645 = vst [vmem:[#allocation25_spill] sm:$0xff] %v3294_v40  ;;  %3646 = vst [vmem:[#allocation26_spill] sm:$0xff] %v3296_v37 }
 0x113   :  { %v2352_v34 = vpop.f32.mrf.mxu0  ;;  %v2414_v31 = vpop.f32.mrf.mxu1 }
 0x114   :  { %v1225_v12 = vmax.f32 %v3647_v46, %v2352_v34 }
 0x115   :  { %v1045_v25 = vpop.f32.mrf.mxu0  ;;  %v1471_v15 = vpop.f32.mrf.mxu1 }
 0x116   :  { %v1651_v22 = vmax.f32 %v1225_v12, %v2414_v31  ;;  %v1224_v49 = vmax.f32 %v3648_v43, %v1045_v25  ;;  %v3650_v31 = vmax.f32 %v3102_v29, %v3104_v30 }
 0x117   :  { %v2355_v52 = vpop.f32.mrf.mxu0  ;;  %v2417_v18 = vpop.f32.mrf.mxu1 }
 0x118   :  { %v1694_v37 = vadd.f32 %v3306_v28, %v1651_v22  ;;  %v1650_v40 = vmax.f32 %v1224_v49, %v1471_v15  ;;  %v1227_v21 = vmax.f32 %v3649_v20, %v2355_v52 }
 0x119   :  { %v1055_v34 = vpop.f32.mrf.mxu0  ;;  %v1481_v46 = vpop.f32.mrf.mxu1 }
 0x11a   :  { %v1730_v55 = vmax.f32 %v1694_v37, 0.0  ;;  %v1693_v58 = vadd.f32 %v3306_v28, %v1650_v40  ;;  %v1653_v61 = vmax.f32 %v1227_v21, %v2417_v18  ;;  %v1226_v23 = vmax.f32 %v3650_v31, %v1055_v34 }
 0x11b   :  { %v2358_v24 = vpop.f32.mrf.mxu0  ;;  %v2420_v25 = vpop.f32.mrf.mxu1  ;;  %v3651_v37 = vmax.f32 %v3108_v32, %v3110_v33  ;;  %v3653_v18 = vmax.f32 %v3120_v38, %v3122_v39  ;;  %v3654_v31 = vmax.f32 %v3126_v41, %v3128_v42 }
 0x11c   :  { %1766 = vst.msk [vmem:[%s3596_s3 + $0x8] sm:$0xff] %vm54_vm0, %v1730_v55  ;;  %v1729_v22 = vmax.f32 %v1693_v58, 0.0  ;;  %v1696_v26 = vadd.f32 %v3306_v28, %v1653_v61  ;;  %v1652_v27 = vmax.f32 %v1226_v23, %v1481_v46  ;;  %v3652_v55 = vmax.f32 %v3114_v35, %v3116_v36 }
 0x11d   :  { %v1229_v40 = vmax.f32 %v3651_v37, %v2358_v24  ;;  %v1065_v43 = vpop.f32.mrf.mxu0  ;;  %v1491_v49 = vpop.f32.mrf.mxu1 }
 0x11e   :  { %1765 = vst.msk [vmem:[%s3596_s3] sm:$0xff] %vm54_vm0, %v1729_v22  ;;  %v1732_v29 = vmax.f32 %v1696_v26, 0.0  ;;  %v1695_v30 = vadd.f32 %v3306_v28, %v1652_v27  ;;  %v1228_v58 = vmax.f32 %v3652_v55, %v1065_v43  ;;  %v3655_v26 = vmax.f32 %v3132_v44, %v3134_v45 }
 0x11f   :  { %v1655_v52 = vmax.f32 %v1229_v40, %v2420_v25  ;;  %v2361_v61 = vpop.f32.mrf.mxu0  ;;  %v2423_v12 = vpop.f32.mrf.mxu1 }
 0x120   :  { %1768 = vst.msk [vmem:[%s3596_s3 + $0x18] sm:$0xff] %vm54_vm0, %v1732_v29  ;;  %v1731_v32 = vmax.f32 %v1695_v30, 0.0  ;;  %v1654_v15 = vmax.f32 %v1228_v58, %v1491_v49  ;;  %v1231_v20 = vmax.f32 %v3653_v18, %v2361_v61  ;;  %v3656_v49 = vmax.f32 %v3138_v47, %v3140_v48 }
 0x121   :  { %v1698_v33 = vadd.f32 %v3306_v28, %v1655_v52  ;;  %v1075_v21 = vpop.f32.mrf.mxu0  ;;  %v1501_v34 = vpop.f32.mrf.mxu1  ;;  %v3657_v58 = vmax.f32 %v3144_v50, %v3146_v51 }
 0x122   :  { %1767 = vst.msk [vmem:[%s3596_s3 + $0x10] sm:$0xff] %vm54_vm0, %v1731_v32  ;;  %v1697_v36 = vadd.f32 %v3306_v28, %v1654_v15  ;;  %v1657_v46 = vmax.f32 %v1231_v20, %v2423_v12  ;;  %v1230_v23 = vmax.f32 %v3654_v31, %v1075_v21  ;;  %v3658_v15 = vmax.f32 %v3150_v53, %v3152_v54 }
 0x123   :  { %v1734_v35 = vmax.f32 %v1698_v33, 0.0  ;;  %v2364_v24 = vpop.f32.mrf.mxu0  ;;  %v2426_v25 = vpop.f32.mrf.mxu1 }
 0x124   :  { %v1733_v38 = vmax.f32 %v1697_v36, 0.0  ;;  %v1700_v39 = vadd.f32 %v3306_v28, %v1657_v46  ;;  %v1656_v22 = vmax.f32 %v1230_v23, %v1501_v34  ;;  %v1233_v27 = vmax.f32 %v3655_v26, %v2364_v24 }
 0x125   :  { %1770 = vst.msk [vmem:[%s3596_s3 + $0x28] sm:$0xff] %vm54_vm0, %v1734_v35  ;;  %v1085_v37 = vpop.f32.mrf.mxu0  ;;  %v1511_v40 = vpop.f32.mrf.mxu1  ;;  %v3659_v35 = vmax.f32 %v3156_v56, %v3158_v57  ;;  %v3660_v24 = vmax.f32 %v3162_v59, %v3164_v60  ;;  %v3661_v26 = vmax.f32 %v3168_v62, %v3170_v63 }
 0x126   :  { %1769 = vst.msk [vmem:[%s3596_s3 + $0x20] sm:$0xff] %vm54_vm0, %v1733_v38  ;;  %v1736_v41 = vmax.f32 %v1700_v39, 0.0  ;;  %v1699_v42 = vadd.f32 %v3306_v28, %v1656_v22  ;;  %v1659_v43 = vmax.f32 %v1233_v27, %v2426_v25  ;;  %v1232_v29 = vmax.f32 %v3656_v49, %v1085_v37 }
 0x127   :  { %v2367_v30 = vpop.f32.mrf.mxu0  ;;  %v2429_v52 = vpop.f32.mrf.mxu1 }
 0x128   :  { %1772 = vst.msk [vmem:[%s3596_s3 + $0x38] sm:$0xff] %vm54_vm0, %v1736_v41  ;;  %v1735_v44 = vmax.f32 %v1699_v42, 0.0  ;;  %v1702_v45 = vadd.f32 %v3306_v28, %v1659_v43  ;;  %v1658_v55 = vmax.f32 %v1232_v29, %v1511_v40  ;;  %v1235_v61 = vmax.f32 %v3657_v58, %v2367_v30 }
 0x129   :  { %v1095_v12 = vpop.f32.mrf.mxu0  ;;  %v1521_v32 = vpop.f32.mrf.mxu1  ;;  %v3662_v42 = vmax.f32 %v3174_v1, %v3176_v2 }
 0x12a   :  { %1771 = vst.msk [vmem:[%s3596_s3 + $0x30] sm:$0xff] %vm54_vm0, %v1735_v44  ;;  %v1738_v47 = vmax.f32 %v1702_v45, 0.0  ;;  %v1701_v48 = vadd.f32 %v3306_v28, %v1658_v55  ;;  %v1661_v33 = vmax.f32 %v1235_v61, %v2429_v52  ;;  %v1234_v18 = vmax.f32 %v3658_v15, %v1095_v12 }
 0x12b   :  { %v2370_v20 = vpop.f32.mrf.mxu0  ;;  %v2432_v21 = vpop.f32.mrf.mxu1  ;;  %v3663_v52 = vmax.f32 %v3180_v4, %v3182_v5  ;;  %v3664_v61 = vmax.f32 %v3186_v7, %v3188_v8 }
 0x12c   :  { %1774 = vst.msk [vmem:[%s3596_s3 + $0x48] sm:$0xff] %vm54_vm0, %v1738_v47  ;;  %v1737_v50 = vmax.f32 %v1701_v48, 0.0  ;;  %v1704_v51 = vadd.f32 %v3306_v28, %v1661_v33  ;;  %v1660_v34 = vmax.f32 %v1234_v18, %v1521_v32  ;;  %v1237_v36 = vmax.f32 %v3659_v35, %v2370_v20 }
 0x12d   :  { %v1105_v46 = vpop.f32.mrf.mxu0  ;;  %v1531_v31 = vpop.f32.mrf.mxu1  ;;  %v3665_v33 = vmax.f32 %v3192_v10, %v3194_v11 }
 0x12e   :  { %1773 = vst.msk [vmem:[%s3596_s3 + $0x40] sm:$0xff] %vm54_vm0, %v1737_v50  ;;  %v1740_v53 = vmax.f32 %v1704_v51, 0.0  ;;  %v1703_v54 = vadd.f32 %v3306_v28, %v1660_v34  ;;  %v1663_v23 = vmax.f32 %v1237_v36, %v2432_v21  ;;  %v1236_v25 = vmax.f32 %v3660_v24, %v1105_v46 }
 0x12f   :  { %v2373_v38 = vpop.f32.mrf.mxu0  ;;  %v2435_v39 = vpop.f32.mrf.mxu1  ;;  %v3666_v50 = vmax.f32 %v3198_v13, %v3200_v14  ;;  %v3667_v46 = vmax.f32 %v3204_v16, %v3206_v17  ;;  %v3668_v24 = vmax.f32 %v3210_v19, %v3212_v9 }
 0x130   :  { %1776 = vst.msk [vmem:[%s3596_s3 + $0x58] sm:$0xff] %vm54_vm0, %v1740_v53  ;;  %v1739_v56 = vmax.f32 %v1703_v54, 0.0  ;;  %v1706_v57 = vadd.f32 %v3306_v28, %v1663_v23  ;;  %v1662_v22 = vmax.f32 %v1236_v25, %v1531_v31  ;;  %v1239_v27 = vmax.f32 %v3661_v26, %v2373_v38 }
 0x131   :  { %v1115_v37 = vpop.f32.mrf.mxu0  ;;  %v1541_v40 = vpop.f32.mrf.mxu1 }
 0x132   :  { %1775 = vst.msk [vmem:[%s3596_s3 + $0x50] sm:$0xff] %vm54_vm0, %v1739_v56  ;;  %v1742_v59 = vmax.f32 %v1706_v57, 0.0  ;;  %v1705_v60 = vadd.f32 %v3306_v28, %v1662_v22  ;;  %v1665_v41 = vmax.f32 %v1239_v27, %v2435_v39  ;;  %v1238_v43 = vmax.f32 %v3662_v42, %v1115_v37 }
 0x133   :  { %v2376_v49 = vpop.f32.mrf.mxu0  ;;  %v2438_v29 = vpop.f32.mrf.mxu1  ;;  %v3669_v57 = vmax.f32 %v3216_v6, %v3218_v3 }
 0x134   :  { %1778 = vst.msk [vmem:[%s3596_s3 + $0x68] sm:$0xff] %vm54_vm0, %v1742_v59  ;;  %v1741_v62 = vmax.f32 %v1705_v60, 0.0  ;;  %v1708_v63 = vadd.f32 %v3306_v28, %v1665_v41  ;;  %v1664_v30 = vmax.f32 %v1238_v43, %v1541_v40  ;;  %v1241_v44 = vmax.f32 %v3663_v52, %v2376_v49  ;;  %v3670_v40 = vld [vmem:[#allocation2_spill] sm:$0xff]  ;;  %v3672_v49 = vld [vmem:[#allocation3_spill] sm:$0xff] }
 0x135   :  { %v1125_v45 = vpop.f32.mrf.mxu0  ;;  %v1551_v55 = vpop.f32.mrf.mxu1  ;;  %v3671_v59 = vmax.f32 %v3222_v0, %v3670_v40  ;;  %v3691_v40 = vld [vmem:[#allocation16_spill] sm:$0xff] }
 0x136   :  { %1777 = vst.msk [vmem:[%s3596_s3 + $0x60] sm:$0xff] %vm54_vm0, %v1741_v62  ;;  %v1744_v1 = vmax.f32 %v1708_v63, 0.0  ;;  %v1707_v2 = vadd.f32 %v3306_v28, %v1664_v30  ;;  %v1667_v58 = vmax.f32 %v1241_v44, %v2438_v29  ;;  %v1240_v12 = vmax.f32 %v3664_v61, %v1125_v45  ;;  %v3673_v29 = vld [vmem:[#allocation4_spill] sm:$0xff] }
 0x137   :  { %v2379_v32 = vpop.f32.mrf.mxu0  ;;  %v2441_v47 = vpop.f32.mrf.mxu1  ;;  %v3674_v62 = vmax.f32 %v3672_v49, %v3673_v29  ;;  %v3693_v49 = vld [vmem:[#allocation17_spill] sm:$0xff]  ;;  %v3694_v29 = vld [vmem:[#allocation18_spill] sm:$0xff] }
 0x138   :  { %1780 = vst.msk [vmem:[%s3596_s3 + $0x78] sm:$0xff] %vm54_vm0, %v1744_v1  ;;  %v1743_v4 = vmax.f32 %v1707_v2, 0.0  ;;  %v1710_v5 = vadd.f32 %v3306_v28, %v1667_v58  ;;  %v1666_v48 = vmax.f32 %v1240_v12, %v1551_v55  ;;  %v1243_v15 = vmax.f32 %v3665_v33, %v2379_v32  ;;  %v3675_v55 = vld [vmem:[#allocation5_spill] sm:$0xff]  ;;  %v3676_v1 = vld [vmem:[#allocation6_spill] sm:$0xff] }
 0x139   :  { %v1135_v18 = vpop.f32.mrf.mxu0  ;;  %v1561_v20 = vpop.f32.mrf.mxu1  ;;  %v3677_v2 = vmax.f32 %v3675_v55, %v3676_v1  ;;  %v3696_v55 = vld [vmem:[#allocation19_spill] sm:$0xff]  ;;  %v3697_v1 = vld [vmem:[#allocation20_spill] sm:$0xff] }
 0x13a   :  { %1779 = vst.msk [vmem:[%s3596_s3 + $0x70] sm:$0xff] %vm54_vm0, %v1743_v4  ;;  %v1746_v7 = vmax.f32 %v1710_v5, 0.0  ;;  %v1709_v8 = vadd.f32 %v3306_v28, %v1666_v48  ;;  %v1669_v21 = vmax.f32 %v1243_v15, %v2441_v47  ;;  %v1242_v51 = vmax.f32 %v3666_v50, %v1135_v18  ;;  %v3678_v5 = vld [vmem:[#allocation7_spill] sm:$0xff]  ;;  %v3679_v48 = vld [vmem:[#allocation8_spill] sm:$0xff]  ;;  %v3681_v50 = vld [vmem:[#allocation9_spill] sm:$0xff] }
 0x13b   :  { %v2382_v34 = vpop.f32.mrf.mxu0  ;;  %v2444_v35 = vpop.f32.mrf.mxu1  ;;  %v3680_v33 = vmax.f32 %v3678_v5, %v3679_v48  ;;  %v3699_v5 = vld [vmem:[#allocation21_spill] sm:$0xff]  ;;  %v3700_v48 = vld [vmem:[#allocation22_spill] sm:$0xff] }
 0x13c   :  { %1782 = vst.msk [vmem:[%s3596_s3 + $0x88] sm:$0xff] %vm54_vm0, %v1746_v7  ;;  %v1745_v10 = vmax.f32 %v1709_v8, 0.0  ;;  %v1712_v11 = vadd.f32 %v3306_v28, %v1669_v21  ;;  %v1668_v36 = vmax.f32 %v1242_v51, %v1561_v20  ;;  %v1245_v31 = vmax.f32 %v3667_v46, %v2382_v34  ;;  %v3682_v51 = vld [vmem:[#allocation10_spill] sm:$0xff] }
 0x13d   :  { %v1145_v53 = vpop.f32.mrf.mxu0  ;;  %v1571_v54 = vpop.f32.mrf.mxu1  ;;  %v3683_v34 = vmax.f32 %v3681_v50, %v3682_v51  ;;  %v3702_v50 = vld [vmem:[#allocation23_spill] sm:$0xff]  ;;  %v3703_v51 = vld [vmem:[#allocation24_spill] sm:$0xff] }
 0x13e   :  { %1781 = vst.msk [vmem:[%s3596_s3 + $0x80] sm:$0xff] %vm54_vm0, %v1745_v10  ;;  %v1748_v13 = vmax.f32 %v1712_v11, 0.0  ;;  %v1711_v14 = vadd.f32 %v3306_v28, %v1668_v36  ;;  %v1671_v23 = vmax.f32 %v1245_v31, %v2444_v35  ;;  %v1244_v25 = vmax.f32 %v3668_v24, %v1145_v53  ;;  %v3684_v53 = vld [vmem:[#allocation11_spill] sm:$0xff] }
 0x13f   :  { %v2385_v38 = vpop.f32.mrf.mxu0  ;;  %v2447_v39 = vpop.f32.mrf.mxu1 }
 0x140   :  { %1784 = vst.msk [vmem:[%s3596_s3 + $0x98] sm:$0xff] %vm54_vm0, %v1748_v13  ;;  %v1747_v16 = vmax.f32 %v1711_v14, 0.0  ;;  %v1714_v17 = vadd.f32 %v3306_v28, %v1671_v23  ;;  %v1670_v56 = vmax.f32 %v1244_v25, %v1571_v54  ;;  %v1247_v22 = vmax.f32 %v3669_v57, %v2385_v38  ;;  %v3685_v54 = vld [vmem:[#allocation12_spill] sm:$0xff] }
 0x141   :  { %v1155_v26 = vpop.f32.mrf.mxu0  ;;  %v1581_v27 = vpop.f32.mrf.mxu1  ;;  %v3686_v13 = vmax.f32 %v3684_v53, %v3685_v54  ;;  %v3706_v53 = vld [vmem:[#allocation26_spill] sm:$0xff] }
 0x142   :  { %1783 = vst.msk [vmem:[%s3596_s3 + $0x90] sm:$0xff] %vm54_vm0, %v1747_v16  ;;  %v1750_v9 = vmax.f32 %v1714_v17, 0.0  ;;  %v1713_v19 = vadd.f32 %v3306_v28, %v1670_v56  ;;  %v1673_v37 = vmax.f32 %v1247_v22, %v2447_v39  ;;  %v1246_v60 = vmax.f32 %v3671_v59, %v1155_v26  ;;  %v3687_v16 = vld [vmem:[#allocation13_spill] sm:$0xff]  ;;  %v3688_v17 = vld [vmem:[#allocation14_spill] sm:$0xff] }
 0x143   :  { %v2388_v41 = vpop.f32.mrf.mxu0  ;;  %v2450_v42 = vpop.f32.mrf.mxu1  ;;  %v3689_v56 = vmax.f32 %v3687_v16, %v3688_v17 }
 0x144   :  { %1786 = vst.msk [vmem:[%s3596_s3 + $0xa8] sm:$0xff] %vm54_vm0, %v1750_v9  ;;  %v1749_v3 = vmax.f32 %v1713_v19, 0.0  ;;  %v1716_v6 = vadd.f32 %v3306_v28, %v1673_v37  ;;  %v1672_v43 = vmax.f32 %v1246_v60, %v1581_v27  ;;  %v1249_v63 = vmax.f32 %v3674_v62, %v2388_v41  ;;  %v3690_v37 = vld [vmem:[#allocation15_spill] sm:$0xff] }
 0x145   :  { %v1165_v30 = vpop.f32.mrf.mxu0  ;;  %v1591_v52 = vpop.f32.mrf.mxu1  ;;  %v3692_v59 = vmax.f32 %v3690_v37, %v3691_v40  ;;  %v3695_v62 = vmax.f32 %v3693_v49, %v3694_v29 }
 0x146   :  { %1785 = vst.msk [vmem:[%s3596_s3 + $0xa0] sm:$0xff] %vm54_vm0, %v1749_v3  ;;  %v1752_v0 = vmax.f32 %v1716_v6, 0.0  ;;  %v1715_v44 = vadd.f32 %v3306_v28, %v1672_v43  ;;  %v1675_v45 = vmax.f32 %v1249_v63, %v2450_v42  ;;  %v1248_v58 = vmax.f32 %v3677_v2, %v1165_v30 }
 0x147   :  { %v2391_v61 = vpop.f32.mrf.mxu0  ;;  %v2453_v12 = vpop.f32.mrf.mxu1  ;;  %v3698_v2 = vmax.f32 %v3696_v55, %v3697_v1 }
 0x148   :  { %1788 = vst.msk [vmem:[%s3596_s3 + $0xb8] sm:$0xff] %vm54_vm0, %v1752_v0  ;;  %v1751_v32 = vmax.f32 %v1715_v44, 0.0  ;;  %v1718_v47 = vadd.f32 %v3306_v28, %v1675_v45  ;;  %v1674_v4 = vmax.f32 %v1248_v58, %v1591_v52  ;;  %v1251_v15 = vmax.f32 %v3680_v33, %v2391_v61 }
 0x149   :  { %v1175_v18 = vpop.f32.mrf.mxu0  ;;  %v1601_v20 = vpop.f32.mrf.mxu1  ;;  %v3701_v33 = vmax.f32 %v3699_v5, %v3700_v48 }
 0x14a   :  { %1787 = vst.msk [vmem:[%s3596_s3 + $0xb0] sm:$0xff] %vm54_vm0, %v1751_v32  ;;  %v1754_v7 = vmax.f32 %v1718_v47, 0.0  ;;  %v1717_v8 = vadd.f32 %v3306_v28, %v1674_v4  ;;  %v1677_v21 = vmax.f32 %v1251_v15, %v2453_v12  ;;  %v1250_v35 = vmax.f32 %v3683_v34, %v1175_v18 }
 0x14b   :  { %v2394_v10 = vpop.f32.mrf.mxu0  ;;  %v2456_v11 = vpop.f32.mrf.mxu1  ;;  %v3704_v34 = vmax.f32 %v3702_v50, %v3703_v51 }
 0x14c   :  { %1790 = vst.msk [vmem:[%s3596_s3 + $0xc8] sm:$0xff] %vm54_vm0, %v1754_v7  ;;  %v1753_v36 = vmax.f32 %v1717_v8, 0.0  ;;  %v1720_v46 = vadd.f32 %v3306_v28, %v1677_v21  ;;  %v1676_v31 = vmax.f32 %v1250_v35, %v1601_v20  ;;  %v1253_v14 = vmax.f32 %v3686_v13, %v2394_v10 }
 0x14d   :  { %v1185_v23 = vpop.f32.mrf.mxu0  ;;  %v1611_v24 = vpop.f32.mrf.mxu1 }
 0x14e   :  { %1789 = vst.msk [vmem:[%s3596_s3 + $0xc0] sm:$0xff] %vm54_vm0, %v1753_v36  ;;  %v1756_v25 = vmax.f32 %v1720_v46, 0.0  ;;  %v1719_v38 = vadd.f32 %v3306_v28, %v1676_v31  ;;  %v1679_v39 = vmax.f32 %v1253_v14, %v2456_v11  ;;  %v1252_v57 = vmax.f32 %v3689_v56, %v1185_v23  ;;  %v3705_v31 = vld [vmem:[#allocation25_spill] sm:$0xff] }
 0x14f   :  { %v2397_v22 = vpop.f32.mrf.mxu0  ;;  %v2459_v26 = vpop.f32.mrf.mxu1  ;;  %v3707_v54 = vmax.f32 %v3705_v31, %v3706_v53 }
 0x150   :  { %1792 = vst.msk [vmem:[%s3596_s3 + $0xd8] sm:$0xff] %vm54_vm0, %v1756_v25  ;;  %v1755_v27 = vmax.f32 %v1719_v38, 0.0  ;;  %v1722_v9 = vadd.f32 %v3306_v28, %v1679_v39  ;;  %v1678_v19 = vmax.f32 %v1252_v57, %v1611_v24  ;;  %v1255_v60 = vmax.f32 %v3692_v59, %v2397_v22 }
 0x151   :  { %v1195_v41 = vpop.f32.mrf.mxu0  ;;  %v1621_v42 = vpop.f32.mrf.mxu1 }
 0x152   :  { %1791 = vst.msk [vmem:[%s3596_s3 + $0xd0] sm:$0xff] %vm54_vm0, %v1755_v27  ;;  %v1758_v3 = vmax.f32 %v1722_v9, 0.0  ;;  %v1721_v6 = vadd.f32 %v3306_v28, %v1678_v19  ;;  %v1681_v43 = vmax.f32 %v1255_v60, %v2459_v26  ;;  %v1254_v63 = vmax.f32 %v3695_v62, %v1195_v41 }
 0x153   :  { %v2400_v30 = vpop.f32.mrf.mxu0  ;;  %v2462_v52 = vpop.f32.mrf.mxu1 }
 0x154   :  { %1794 = vst.msk [vmem:[%s3596_s3 + $0xe8] sm:$0xff] %vm54_vm0, %v1758_v3  ;;  %v1757_v0 = vmax.f32 %v1721_v6, 0.0  ;;  %v1724_v44 = vadd.f32 %v3306_v28, %v1681_v43  ;;  %v1680_v45 = vmax.f32 %v1254_v63, %v1621_v42  ;;  %v1257_v58 = vmax.f32 %v3698_v2, %v2400_v30 }
 0x155   :  { %v1205_v61 = vpop.f32.mrf.mxu0  ;;  %v1631_v12 = vpop.f32.mrf.mxu1 }
 0x156   :  { %1793 = vst.msk [vmem:[%s3596_s3 + $0xe0] sm:$0xff] %vm54_vm0, %v1757_v0  ;;  %v1760_v32 = vmax.f32 %v1724_v44, 0.0  ;;  %v1723_v47 = vadd.f32 %v3306_v28, %v1680_v45  ;;  %v1683_v4 = vmax.f32 %v1257_v58, %v2462_v52  ;;  %v1256_v15 = vmax.f32 %v3701_v33, %v1205_v61 }
 0x157   :  { %v2403_v18 = vpop.f32.mrf.mxu0  ;;  %v2465_v20 = vpop.f32.mrf.mxu1 }
 0x158   :  { %1796 = vst.msk [vmem:[%s3596_s3 + $0xf8] sm:$0xff] %vm54_vm0, %v1760_v32  ;;  %v1759_v7 = vmax.f32 %v1723_v47, 0.0  ;;  %v1726_v8 = vadd.f32 %v3306_v28, %v1683_v4  ;;  %v1682_v21 = vmax.f32 %v1256_v15, %v1631_v12  ;;  %v1259_v35 = vmax.f32 %v3704_v34, %v2403_v18 }
 0x159   :  { %v1215_v10 = vpop.f32.mrf.mxu0  ;;  %v1641_v14 = vpop.f32.mrf.mxu1 }
 0x15a   :  { %1795 = vst.msk [vmem:[%s3596_s3 + $0xf0] sm:$0xff] %vm54_vm0, %v1759_v7  ;;  %v1762_v11 = vmax.f32 %v1726_v8, 0.0  ;;  %v1725_v36 = vadd.f32 %v3306_v28, %v1682_v21  ;;  %v1685_v46 = vmax.f32 %v1259_v35, %v2465_v20  ;;  %v1258_v13 = vmax.f32 %v3707_v54, %v1215_v10 }
 0x15c   :  { %1798 = vst.msk [vmem:[%s3596_s3 + $0x108] sm:$0xff] %vm54_vm0, %v1762_v11  ;;  %v1761_v23 = vmax.f32 %v1725_v36, 0.0  ;;  %v1728_v24 = vadd.f32 %v3306_v28, %v1685_v46  ;;  %v1684_v25 = vmax.f32 %v1258_v13, %v1641_v14 }
 0x15e   :  { %1797 = vst.msk [vmem:[%s3596_s3 + $0x100] sm:$0xff] %vm54_vm0, %v1761_v23  ;;  %v1764_v38 = vmax.f32 %v1728_v24, 0.0  ;;  %v1727_v39 = vadd.f32 %v3306_v28, %v1684_v25 }
 0x160   :  { %1800 = vst.msk [vmem:[%s3596_s3 + $0x118] sm:$0xff] %vm54_vm0, %v1764_v38  ;;  %v1763_v16 = vmax.f32 %v1727_v39, 0.0 }
 0x162   :  { %1799 = vst.msk [vmem:[%s3596_s3 + $0x110] sm:$0xff] %vm54_vm0, %v1763_v16 }

// kernel: cnn_simple_forward.4
= control target key start
LH: loop header
LB: loop body
LE: loop exit
PB: predicated region body
PF: predicated region fallthrough
CT: control target
= control target key end

     0   :  { %vm142_vm0 = vcmask 261120   ;;  %vm1665_vm1 = vcmask 523264   ;;  %s3937_s1 = inlined_call_operand.vmem [shape: f32[800,64], index: 1, kind: input, shape index: {}]   ;;  %s3938_s0 = inlined_call_operand.vmem [shape: f32[4,32,800], index: 0, kind: input, shape index: {}]   ;;  %s3939_s2 = inlined_call_operand.vmem [shape: f32[1,64], index: 2, kind: input, shape index: {}]   ;;  %s3940_s3 = inlined_call_operand.vmem [shape: f32[32,64], index: 3, kind: output, shape index: {}]  }
   0x1   :  { %v2477_v0 = vld [vmem:[%s3937_s1 + $0xf8] sm:$0xff]  ;;  %v2499_v4 = vld [vmem:[%s3937_s1 + $0xf0] sm:$0xff]  ;;  %v2521_v8 = vld [vmem:[%s3937_s1 + $0xe8] sm:$0xff] }
   0x2   :  { %4045 = vst [vmem:[#allocation2_spill] sm:$0xff] %v2477_v0  ;;  %v2482_v1 = vld [vmem:[%s3937_s1 + $0x1f8] sm:$0xff]  ;;  %1775 = vmatprep.subr.mxu0 %v2477_v0  ;;  %4047 = vst [vmem:[#allocation4_spill] sm:$0xff] %v2499_v4  ;;  %v2504_v5 = vld [vmem:[%s3937_s1 + $0x1f0] sm:$0xff] }
   0x3   :  { %v2487_v2 = vld [vmem:[%s3937_s1 + $0x78] sm:$0xff]  ;;  %1819 = vmatprep.subr.mxu1 %v2482_v1  ;;  %v2511_v6 = vld [vmem:[%s3937_s1 + $0x70] sm:$0xff]  ;;  %4049 = vst [vmem:[#allocation6_spill] sm:$0xff] %v2521_v8  ;;  %v2528_v9 = vld [vmem:[%s3937_s1 + $0x1e8] sm:$0xff] }
   0x4   :  { %4046 = vst [vmem:[#allocation3_spill] sm:$0xff] %v2487_v2  ;;  %v2494_v3 = vld [vmem:[%s3937_s1 + $0x178] sm:$0xff]  ;;  %1776 = vmatpush3.msra.mxu0 %v2487_v2  ;;  %4048 = vst [vmem:[#allocation5_spill] sm:$0xff] %v2511_v6  ;;  %v2516_v7 = vld [vmem:[%s3937_s1 + $0x170] sm:$0xff] }
   0x5   :  { %1820 = vmatpush3.msra.mxu1 %v2494_v3  ;;  %1777 = vmatprep.subr.mxu0 %v2499_v4  ;;  %v2533_v10 = vld [vmem:[%s3937_s1 + $0x68] sm:$0xff]  ;;  %v2545_v12 = vld [vmem:[%s3937_s1 + $0xe0] sm:$0xff]  ;;  %v2569_v16 = vld [vmem:[%s3937_s1 + $0xd8] sm:$0xff] }
   0x6   :  { %1821 = vmatprep.subr.mxu1 %v2504_v5  ;;  %4050 = vst [vmem:[#allocation7_spill] sm:$0xff] %v2533_v10  ;;  %v2538_v11 = vld [vmem:[%s3937_s1 + $0x168] sm:$0xff]  ;;  %1778 = vmatpush3.msra.mxu0 %v2511_v6  ;;  %4051 = vst [vmem:[#allocation8_spill] sm:$0xff] %v2545_v12  ;;  %v2550_v13 = vld [vmem:[%s3937_s1 + $0x1e0] sm:$0xff] }
   0x7   :  { %1822 = vmatpush3.msra.mxu1 %v2516_v7  ;;  %1779 = vmatprep.subr.mxu0 %v2521_v8  ;;  %v2557_v14 = vld [vmem:[%s3937_s1 + $0x60] sm:$0xff]  ;;  %4053 = vst [vmem:[#allocation10_spill] sm:$0xff] %v2569_v16  ;;  %v2574_v17 = vld [vmem:[%s3937_s1 + $0x1d8] sm:$0xff]  ;;  %v2593_v20 = vld [vmem:[%s3937_s1 + $0xd0] sm:$0xff] }
   0x8   :  { %1823 = vmatprep.subr.mxu1 %v2528_v9  ;;  %4052 = vst [vmem:[#allocation9_spill] sm:$0xff] %v2557_v14  ;;  %v2562_v15 = vld [vmem:[%s3937_s1 + $0x160] sm:$0xff]  ;;  %1780 = vmatpush3.msra.mxu0 %v2533_v10  ;;  %v2581_v18 = vld [vmem:[%s3937_s1 + $0x58] sm:$0xff]  ;;  %4055 = vst [vmem:[#allocation12_spill] sm:$0xff] %v2593_v20 }
   0x9   :  { %1824 = vmatpush3.msra.mxu1 %v2538_v11  ;;  %1781 = vmatprep.subr.mxu0 %v2545_v12  ;;  %4054 = vst [vmem:[#allocation11_spill] sm:$0xff] %v2581_v18  ;;  %v2586_v19 = vld [vmem:[%s3937_s1 + $0x158] sm:$0xff]  ;;  %v2598_v21 = vld [vmem:[%s3937_s1 + $0x1d0] sm:$0xff]  ;;  %v2617_v24 = vld [vmem:[%s3937_s1 + $0xc8] sm:$0xff] }
   0xa   :  { %1825 = vmatprep.subr.mxu1 %v2550_v13  ;;  %1782 = vmatpush3.msra.mxu0 %v2557_v14  ;;  %v2605_v22 = vld [vmem:[%s3937_s1 + $0x50] sm:$0xff]  ;;  %4057 = vst [vmem:[#allocation14_spill] sm:$0xff] %v2617_v24  ;;  %v2622_v25 = vld [vmem:[%s3937_s1 + $0x1c8] sm:$0xff]  ;;  %v2641_v28 = vld [vmem:[%s3937_s1 + $0xc0] sm:$0xff] }
   0xb   :  { %1826 = vmatpush3.msra.mxu1 %v2562_v15  ;;  %1783 = vmatprep.subr.mxu0 %v2569_v16  ;;  %4056 = vst [vmem:[#allocation13_spill] sm:$0xff] %v2605_v22  ;;  %v2610_v23 = vld [vmem:[%s3937_s1 + $0x150] sm:$0xff]  ;;  %v2629_v26 = vld [vmem:[%s3937_s1 + $0x48] sm:$0xff]  ;;  %4058 = vst [vmem:[#allocation15_spill] sm:$0xff] %v2641_v28 }
   0xc   :  { %1827 = vmatprep.subr.mxu1 %v2574_v17  ;;  %1784 = vmatpush3.msra.mxu0 %v2581_v18  ;;  %v2634_v27 = vld [vmem:[%s3937_s1 + $0x148] sm:$0xff]  ;;  %v2646_v29 = vld [vmem:[%s3937_s1 + $0x1c0] sm:$0xff]  ;;  %v2665_v32 = vld [vmem:[%s3937_s1 + $0xb8] sm:$0xff] }
   0xd   :  { %1828 = vmatpush3.msra.mxu1 %v2586_v19  ;;  %1785 = vmatprep.subr.mxu0 %v2593_v20  ;;  %v2653_v30 = vld [vmem:[%s3937_s1 + $0x40] sm:$0xff]  ;;  %v2670_v33 = vld [vmem:[%s3937_s1 + $0x1b8] sm:$0xff]  ;;  %v2689_v36 = vld [vmem:[%s3937_s1 + $0xb0] sm:$0xff] }
   0xe   :  { %1829 = vmatprep.subr.mxu1 %v2598_v21  ;;  %1786 = vmatpush3.msra.mxu0 %v2605_v22  ;;  %v2658_v31 = vld [vmem:[%s3937_s1 + $0x140] sm:$0xff]  ;;  %v2677_v34 = vld [vmem:[%s3937_s1 + $0x38] sm:$0xff]  ;;  %v2694_v37 = vld [vmem:[%s3937_s1 + $0x1b0] sm:$0xff] }
   0xf   :  { %1830 = vmatpush3.msra.mxu1 %v2610_v23  ;;  %1787 = vmatprep.subr.mxu0 %v2617_v24  ;;  %v2682_v35 = vld [vmem:[%s3937_s1 + $0x138] sm:$0xff]  ;;  %v2701_v38 = vld [vmem:[%s3937_s1 + $0x30] sm:$0xff]  ;;  %v2713_v40 = vld [vmem:[%s3937_s1 + $0xa8] sm:$0xff] }
  0x10   :  { %1831 = vmatprep.subr.mxu1 %v2622_v25  ;;  %1788 = vmatpush3.msra.mxu0 %v2629_v26  ;;  %v2706_v39 = vld [vmem:[%s3937_s1 + $0x130] sm:$0xff]  ;;  %v2718_v41 = vld [vmem:[%s3937_s1 + $0x1a8] sm:$0xff]  ;;  %v2737_v44 = vld [vmem:[%s3937_s1 + $0xa0] sm:$0xff] }
  0x11   :  { %1832 = vmatpush3.msra.mxu1 %v2634_v27  ;;  %1789 = vmatprep.subr.mxu0 %v2641_v28  ;;  %4059 = vst [vmem:[#allocation16_spill] sm:$0xff] %v2706_v39  ;;  %4060 = vst [vmem:[#allocation17_spill] sm:$0xff] %v2718_v41  ;;  %v2725_v42 = vld [vmem:[%s3937_s1 + $0x28] sm:$0xff]  ;;  %v2742_v45 = vld [vmem:[%s3937_s1 + $0x1a0] sm:$0xff] }
  0x12   :  { %1833 = vmatprep.subr.mxu1 %v2646_v29  ;;  %1790 = vmatpush3.msra.mxu0 %v2653_v30  ;;  %v2730_v43 = vld [vmem:[%s3937_s1 + $0x128] sm:$0xff]  ;;  %4062 = vst [vmem:[#allocation19_spill] sm:$0xff] %v2742_v45  ;;  %v2749_v46 = vld [vmem:[%s3937_s1 + $0x20] sm:$0xff]  ;;  %v2761_v48 = vld [vmem:[%s3937_s1 + $0x98] sm:$0xff] }
  0x13   :  { %1834 = vmatpush3.msra.mxu1 %v2658_v31  ;;  %1791 = vmatprep.subr.mxu0 %v2665_v32  ;;  %4061 = vst [vmem:[#allocation18_spill] sm:$0xff] %v2730_v43  ;;  %4063 = vst [vmem:[#allocation20_spill] sm:$0xff] %v2749_v46  ;;  %v2754_v47 = vld [vmem:[%s3937_s1 + $0x120] sm:$0xff]  ;;  %v2766_v49 = vld [vmem:[%s3937_s1 + $0x198] sm:$0xff] }
  0x14   :  { %1835 = vmatprep.subr.mxu1 %v2670_v33  ;;  %1792 = vmatpush3.msra.mxu0 %v2677_v34  ;;  %4064 = vst [vmem:[#allocation21_spill] sm:$0xff] %v2754_v47  ;;  %4065 = vst [vmem:[#allocation22_spill] sm:$0xff] %v2766_v49  ;;  %v2773_v50 = vld [vmem:[%s3937_s1 + $0x18] sm:$0xff]  ;;  %v2785_v52 = vld [vmem:[%s3937_s1 + $0x90] sm:$0xff] }
  0x15   :  { %1836 = vmatpush3.msra.mxu1 %v2682_v35  ;;  %1793 = vmatprep.subr.mxu0 %v2689_v36  ;;  %v2778_v51 = vld [vmem:[%s3937_s1 + $0x118] sm:$0xff]  ;;  %4067 = vst [vmem:[#allocation24_spill] sm:$0xff] %v2785_v52  ;;  %v2790_v53 = vld [vmem:[%s3937_s1 + $0x190] sm:$0xff]  ;;  %v2809_v56 = vld [vmem:[%s3937_s1 + $0x88] sm:$0xff] }
  0x16   :  { %1837 = vmatprep.subr.mxu1 %v2694_v37  ;;  %1794 = vmatpush3.msra.mxu0 %v2701_v38  ;;  %4066 = vst [vmem:[#allocation23_spill] sm:$0xff] %v2778_v51  ;;  %4068 = vst [vmem:[#allocation25_spill] sm:$0xff] %v2790_v53  ;;  %v2797_v54 = vld [vmem:[%s3937_s1 + $0x10] sm:$0xff]  ;;  %v2814_v57 = vld [vmem:[%s3937_s1 + $0x188] sm:$0xff] }
  0x17   :  { %1838 = vmatpush3.msra.mxu1 %v2706_v39  ;;  %1795 = vmatprep.subr.mxu0 %v2713_v40  ;;  %4069 = vst [vmem:[#allocation26_spill] sm:$0xff] %v2797_v54  ;;  %v2802_v55 = vld [vmem:[%s3937_s1 + $0x110] sm:$0xff]  ;;  %4071 = vst [vmem:[#allocation28_spill] sm:$0xff] %v2809_v56  ;;  %v2821_v58 = vld [vmem:[%s3937_s1 + $0x8] sm:$0xff] }
  0x18   :  { %1839 = vmatprep.subr.mxu1 %v2718_v41  ;;  %1796 = vmatpush3.msra.mxu0 %v2725_v42  ;;  %4070 = vst [vmem:[#allocation27_spill] sm:$0xff] %v2802_v55  ;;  %4072 = vst [vmem:[#allocation29_spill] sm:$0xff] %v2814_v57  ;;  %v2826_v59 = vld [vmem:[%s3937_s1 + $0x108] sm:$0xff]  ;;  %v2833_v60 = vld [vmem:[%s3937_s1 + $0x80] sm:$0xff] }
  0x19   :  { %1840 = vmatpush3.msra.mxu1 %v2730_v43  ;;  %1797 = vmatprep.subr.mxu0 %v2737_v44  ;;  %4073 = vst [vmem:[#allocation30_spill] sm:$0xff] %v2821_v58  ;;  %4074 = vst [vmem:[#allocation31_spill] sm:$0xff] %v2826_v59  ;;  %v2838_v61 = vld [vmem:[%s3937_s1 + $0x180] sm:$0xff]  ;;  %v115_v63 = vld [vmem:[%s3938_s0 + $0x8] sm:$0xff] }
  0x1a   :  { %1841 = vmatprep.subr.mxu1 %v2742_v45  ;;  %1798 = vmatpush3.msra.mxu0 %v2749_v46  ;;  %4075 = vst [vmem:[#allocation32_spill] sm:$0xff] %v2833_v60  ;;  %4076 = vst [vmem:[#allocation33_spill] sm:$0xff] %v2838_v61  ;;  %v2845_v62 = vld [vmem:[%s3937_s1] sm:$0xff]  ;;  %v2915_v45 = vld [vmem:[%s3937_s1 + $0x2e8] sm:$0xff] }
  0x1b   :  { %1842 = vmatpush3.msra.mxu1 %v2754_v47  ;;  %1799 = vmatprep.subr.mxu0 %v2761_v48  ;;  %4077 = vst [vmem:[#allocation34_spill] sm:$0xff] %v2845_v62  ;;  %v122_v47 = vld [vmem:[%s3938_s0 + $0x40] sm:$0xff]  ;;  %4084 = vst [vmem:[#allocation41_spill] sm:$0xff] %v2915_v45  ;;  %v2926_v43 = vld [vmem:[%s3937_s1 + $0x268] sm:$0xff] }
  0x1c   :  { %1843 = vmatprep.subr.mxu1 %v2766_v49  ;;  %1800 = vmatpush3.msra.mxu0 %v2773_v50  ;;  %v2883_v49 = vld [vmem:[%s3937_s1 + $0x278] sm:$0xff]  ;;  %4086 = vst [vmem:[#allocation43_spill] sm:$0xff] %v2926_v43 }
  0x1d   :  { %1844 = vmatpush3.msra.mxu1 %v2778_v51  ;;  %1801 = vmatprep.subr.mxu0 %v2785_v52  ;;  %v2872_v51 = vld [vmem:[%s3937_s1 + $0x2f8] sm:$0xff]  ;;  %4081 = vst [vmem:[#allocation38_spill] sm:$0xff] %v2883_v49 }
  0x1e   :  { %1845 = vmatprep.subr.mxu1 %v2790_v53  ;;  %1802 = vmatpush3.msra.mxu0 %v2797_v54  ;;  %v114_v53 = vld [vmem:[%s3938_s0] sm:$0xff]  ;;  %4079 = vst [vmem:[#allocation36_spill] sm:$0xff] %v2872_v51  ;;  %v129_v41 = vld [vmem:[%s3938_s0 + $0x78] sm:$0xff] }
  0x1f   :  { %1846 = vmatpush3.msra.mxu1 %v2802_v55  ;;  %1803 = vmatprep.subr.mxu0 %v2809_v56  ;;  %v2855_v55 = vld [vmem:[%s3937_s1 + $0x100] sm:$0xff]  ;;  %v2958_v39 = vld [vmem:[%s3937_s1 + $0x2d8] sm:$0xff] }
  0x20   :  { %1847 = vmatprep.subr.mxu1 %v2814_v57  ;;  %1804 = vmatpush3.msra.mxu0 %v2821_v58  ;;  %4078 = vst [vmem:[#allocation35_spill] sm:$0xff] %v2855_v55  ;;  %v117_v57 = vld [vmem:[%s3938_s0 + $0x18] sm:$0xff]  ;;  %4089 = vst [vmem:[#allocation46_spill] sm:$0xff] %v2958_v39 }
  0x21   :  { %1848 = vmatpush3.msra.mxu1 %v2826_v59  ;;  %1805 = vmatprep.subr.mxu0 %v2833_v60  ;;  %v116_v59 = vld [vmem:[%s3938_s0 + $0x10] sm:$0xff] }
  0x22   :  { %1849 = vmatprep.subr.mxu1 %v2838_v61  ;;  %1806 = vmatpush3.msra.mxu0 %v2845_v62  ;;  %v2877_v61 = vld [vmem:[%s3937_s1 + $0x318] sm:$0xff] }
  0x23   :  { %219 = vmatprep.mubr.f32.mxu0 %v115_v63  ;;  %4080 = vst [vmem:[#allocation37_spill] sm:$0xff] %v2877_v61  ;;  %1850 = vmatpush3.msra.mxu1 %v2855_v55  ;;  %v2888_v63 = vld [vmem:[%s3937_s1 + $0x2f0] sm:$0xff]  ;;  %v123_v55 = vld [vmem:[%s3938_s0 + $0x48] sm:$0xff] }
  0x24   :  { %304 = vmatprep.mubr.f32.mxu1 %v117_v57  ;;  %220 = vmatmul.mubr.f32.vlgmr.msra.gmra.mxu0 %v114_v53  ;;  %4082 = vst [vmem:[#allocation39_spill] sm:$0xff] %v2888_v63  ;;  %v124_v57 = vld [vmem:[%s3938_s0 + $0x50] sm:$0xff] }
  0x25   :  { %305 = vmatmul.mubr.f32.vlgmr.msra.gmra.mxu1 %v116_v59  ;;  %1863 = vmatprep.subr.mxu0 %v2872_v51  ;;  %v2901_v53 = vld [vmem:[%s3937_s1 + $0x270] sm:$0xff]  ;;  %v121_v59 = vld [vmem:[%s3938_s0 + $0x38] sm:$0xff] }
  0x26   :  { %2335 = vmatprep.subr.mxu1 %v2877_v61  ;;  %4083 = vst [vmem:[#allocation40_spill] sm:$0xff] %v2901_v53  ;;  %1864 = vmatpush3.msra.mxu0 %v2883_v49 }
  0x27   :  { %2336 = vmatpush3.msra.mxu1 %v2877_v61  ;;  %1865 = vmatprep.subr.mxu0 %v2888_v63  ;;  %v2920_v61 = vld [vmem:[%s3937_s1 + $0x310] sm:$0xff] }
  0x28   :  { %224 = vmatprep.mubr.f32.mxu0 %v122_v47  ;;  %4085 = vst [vmem:[#allocation42_spill] sm:$0xff] %v2920_v61  ;;  %309 = vmatprep.mubr.f32.mxu1 %v124_v57  ;;  %v2931_v47 = vld [vmem:[%s3937_s1 + $0x2e0] sm:$0xff]  ;;  %v131_v57 = vld [vmem:[%s3938_s0 + $0x88] sm:$0xff] }
  0x29   :  { %1866 = vmatpush3.msra.mxu0 %v2901_v53  ;;  %310 = vmatmul.mubr.f32.gmra.mxu1 %v123_v55  ;;  %4087 = vst [vmem:[#allocation44_spill] sm:$0xff] %v2931_v47  ;;  %v2944_v55 = vld [vmem:[%s3937_s1 + $0x260] sm:$0xff] }
  0x2a   :  { %225 = vmatmul.mubr.f32.gmra.mxu0 %v121_v59  ;;  %1867 = vmatprep.subr.mxu0 %v2915_v45  ;;  %4088 = vst [vmem:[#allocation45_spill] sm:$0xff] %v2944_v55  ;;  %v128_v59 = vld [vmem:[%s3938_s0 + $0x70] sm:$0xff]  ;;  %v130_v45 = vld [vmem:[%s3938_s0 + $0x80] sm:$0xff] }
  0x2b   :  { %2337 = vmatprep.subr.mxu1 %v2920_v61  ;;  %1868 = vmatpush3.msra.mxu0 %v2926_v43  ;;  %v2969_v43 = vld [vmem:[%s3937_s1 + $0x258] sm:$0xff] }
  0x2c   :  { %2338 = vmatpush3.msra.mxu1 %v2920_v61  ;;  %1869 = vmatprep.subr.mxu0 %v2931_v47  ;;  %v2963_v61 = vld [vmem:[%s3937_s1 + $0x308] sm:$0xff]  ;;  %4091 = vst [vmem:[#allocation48_spill] sm:$0xff] %v2969_v43  ;;  %v136_v47 = vld [vmem:[%s3938_s0 + $0xb0] sm:$0xff] }
  0x2d   :  { %229 = vmatprep.mubr.f32.mxu0 %v129_v41  ;;  %4090 = vst [vmem:[#allocation47_spill] sm:$0xff] %v2963_v61  ;;  %314 = vmatprep.mubr.f32.mxu1 %v131_v57  ;;  %v2974_v41 = vld [vmem:[%s3937_s1 + $0x2d0] sm:$0xff]  ;;  %v138_v57 = vld [vmem:[%s3938_s0 + $0xc0] sm:$0xff] }
  0x2e   :  { %1870 = vmatpush3.msra.mxu0 %v2944_v55  ;;  %315 = vmatmul.mubr.f32.gmra.mxu1 %v130_v45  ;;  %4092 = vst [vmem:[#allocation49_spill] sm:$0xff] %v2974_v41  ;;  %v2987_v45 = vld [vmem:[%s3937_s1 + $0x250] sm:$0xff]  ;;  %v3001_v55 = vld [vmem:[%s3937_s1 + $0x2c8] sm:$0xff] }
  0x2f   :  { %230 = vmatmul.mubr.f32.gmra.mxu0 %v128_v59  ;;  %1871 = vmatprep.subr.mxu0 %v2958_v39  ;;  %4093 = vst [vmem:[#allocation50_spill] sm:$0xff] %v2987_v45  ;;  %v135_v59 = vld [vmem:[%s3938_s0 + $0xa8] sm:$0xff]  ;;  %v137_v39 = vld [vmem:[%s3938_s0 + $0xb8] sm:$0xff]  ;;  %4094 = vst [vmem:[#allocation51_spill] sm:$0xff] %v3001_v55 }
  0x30   :  { %2339 = vmatprep.subr.mxu1 %v2963_v61  ;;  %1872 = vmatpush3.msra.mxu0 %v2969_v43  ;;  %v3012_v43 = vld [vmem:[%s3937_s1 + $0x248] sm:$0xff] }
  0x31   :  { %2340 = vmatpush3.msra.mxu1 %v2963_v61  ;;  %1873 = vmatprep.subr.mxu0 %v2974_v41  ;;  %v3006_v61 = vld [vmem:[%s3937_s1 + $0x300] sm:$0xff]  ;;  %4096 = vst [vmem:[#allocation53_spill] sm:$0xff] %v3012_v43  ;;  %v120_v41 = vld [vmem:[%s3938_s0 + $0x30] sm:$0xff] }
  0x32   :  { %234 = vmatprep.mubr.f32.mxu0 %v136_v47  ;;  %4095 = vst [vmem:[#allocation52_spill] sm:$0xff] %v3006_v61  ;;  %319 = vmatprep.mubr.f32.mxu1 %v138_v57  ;;  %v3017_v47 = vld [vmem:[%s3937_s1 + $0x2c0] sm:$0xff] }
  0x33   :  { %1874 = vmatpush3.msra.mxu0 %v2987_v45  ;;  %320 = vmatmul.mubr.f32.gmra.mxu1 %v137_v39  ;;  %4097 = vst [vmem:[#allocation54_spill] sm:$0xff] %v3017_v47  ;;  %v3027_v57 = vld [vmem:[%s3937_s1 + $0x240] sm:$0xff]  ;;  %v3034_v39 = vld [vmem:[%s3937_s1 + $0x2b8] sm:$0xff] }
  0x34   :  { %235 = vmatmul.mubr.f32.gmra.mxu0 %v135_v59  ;;  %1875 = vmatprep.subr.mxu0 %v3001_v55  ;;  %4098 = vst [vmem:[#allocation55_spill] sm:$0xff] %v3027_v57  ;;  %4099 = vst [vmem:[#allocation56_spill] sm:$0xff] %v3034_v39  ;;  %v127_v59 = vld [vmem:[%s3938_s0 + $0x68] sm:$0xff]  ;;  %v3044_v55 = vld [vmem:[%s3937_s1 + $0x238] sm:$0xff] }
  0x35   :  { %2341 = vmatprep.subr.mxu1 %v3006_v61  ;;  %1876 = vmatpush3.msra.mxu0 %v3012_v43 }
  0x36   :  { %2342 = vmatpush3.msra.mxu1 %v3006_v61  ;;  %1877 = vmatprep.subr.mxu0 %v3017_v47  ;;  %v3051_v61 = vld [vmem:[%s3937_s1 + $0x2b0] sm:$0xff] }
  0x37   :  { %2343 = vmatprep.mubr.msk.f32.mxu1 %vm142_vm0, %v120_v41  ;;  %1878 = vmatpush3.msra.mxu0 %v3027_v57  ;;  %v3058_v41 = vld [vmem:[%s3937_s1 + $0x230] sm:$0xff] }
  0x38   :  { %1915 = vmatprep.subr.mxu1 %v2477_v0  ;;  %1879 = vmatprep.subr.mxu0 %v3034_v39  ;;  %v3065_v0 = vld [vmem:[%s3937_s1 + $0x2a8] sm:$0xff] }
  0x39   :  { %2344 = vmatmul.mubr.msk.f32.vlgmr.msra.gmra.mxu1 %vm142_vm0, %v127_v59  ;;  %1880 = vmatpush3.msra.mxu0 %v3044_v55  ;;  %v3072_v59 = vld [vmem:[%s3937_s1 + $0x228] sm:$0xff] }
  0x3a   :  { %1916 = vmatpush3.msra.mxu1 %v2487_v2  ;;  %1881 = vmatprep.subr.mxu0 %v3051_v61  ;;  %v3079_v2 = vld [vmem:[%s3937_s1 + $0x2a0] sm:$0xff] }
  0x3b   :  { %1917 = vmatprep.subr.mxu1 %v2499_v4  ;;  %1882 = vmatpush3.msra.mxu0 %v3058_v41  ;;  %v3086_v4 = vld [vmem:[%s3937_s1 + $0x220] sm:$0xff] }
  0x3c   :  { %1918 = vmatpush3.msra.mxu1 %v2511_v6  ;;  %1883 = vmatprep.subr.mxu0 %v3065_v0  ;;  %v3093_v6 = vld [vmem:[%s3937_s1 + $0x298] sm:$0xff] }
  0x3d   :  { %1919 = vmatprep.subr.mxu1 %v2521_v8  ;;  %1884 = vmatpush3.msra.mxu0 %v3072_v59  ;;  %v3100_v8 = vld [vmem:[%s3937_s1 + $0x218] sm:$0xff] }
  0x3e   :  { %1920 = vmatpush3.msra.mxu1 %v2533_v10  ;;  %1885 = vmatprep.subr.mxu0 %v3079_v2  ;;  %v3107_v10 = vld [vmem:[%s3937_s1 + $0x290] sm:$0xff] }
  0x3f   :  { %1921 = vmatprep.subr.mxu1 %v2545_v12  ;;  %1886 = vmatpush3.msra.mxu0 %v3086_v4  ;;  %v3114_v12 = vld [vmem:[%s3937_s1 + $0x210] sm:$0xff] }
  0x40   :  { %1922 = vmatpush3.msra.mxu1 %v2557_v14  ;;  %1887 = vmatprep.subr.mxu0 %v3093_v6  ;;  %v3121_v14 = vld [vmem:[%s3937_s1 + $0x288] sm:$0xff] }
  0x41   :  { %1923 = vmatprep.subr.mxu1 %v2569_v16  ;;  %1888 = vmatpush3.msra.mxu0 %v3100_v8  ;;  %4100 = vst [vmem:[#allocation57_spill] sm:$0xff] %v3121_v14  ;;  %v3128_v16 = vld [vmem:[%s3937_s1 + $0x208] sm:$0xff] }
  0x42   :  { %1924 = vmatpush3.msra.mxu1 %v2581_v18  ;;  %1889 = vmatprep.subr.mxu0 %v3107_v10  ;;  %4101 = vst [vmem:[#allocation58_spill] sm:$0xff] %v3128_v16  ;;  %v3135_v18 = vld [vmem:[%s3937_s1 + $0x280] sm:$0xff] }
  0x43   :  { %1925 = vmatprep.subr.mxu1 %v2593_v20  ;;  %1890 = vmatpush3.msra.mxu0 %v3114_v12  ;;  %4102 = vst [vmem:[#allocation59_spill] sm:$0xff] %v3135_v18  ;;  %v3142_v20 = vld [vmem:[%s3937_s1 + $0x200] sm:$0xff] }
  0x44   :  { %1926 = vmatpush3.msra.mxu1 %v2605_v22  ;;  %1891 = vmatprep.subr.mxu0 %v3121_v14  ;;  %4103 = vst [vmem:[#allocation60_spill] sm:$0xff] %v3142_v20  ;;  %v119_v22 = vld [vmem:[%s3938_s0 + $0x28] sm:$0xff] }
  0x45   :  { %1927 = vmatprep.subr.mxu1 %v2617_v24  ;;  %1892 = vmatpush3.msra.mxu0 %v3128_v16  ;;  %v118_v24 = vld [vmem:[%s3938_s0 + $0x20] sm:$0xff] }
  0x46   :  { %1928 = vmatpush3.msra.mxu1 %v2629_v26  ;;  %1893 = vmatprep.subr.mxu0 %v3135_v18 }
  0x47   :  { %1929 = vmatprep.subr.mxu1 %v2641_v28  ;;  %1894 = vmatpush3.msra.mxu0 %v3142_v20  ;;  %v126_v28 = vld [vmem:[%s3938_s0 + $0x60] sm:$0xff] }
  0x48   :  { %1930 = vmatpush3.msra.mxu1 %v2653_v30  ;;  %389 = vmatprep.mubr.f32.mxu0 %v119_v22  ;;  %v125_v22 = vld [vmem:[%s3938_s0 + $0x58] sm:$0xff] }
  0x49   :  { %1931 = vmatprep.subr.mxu1 %v2665_v32  ;;  %390 = vmatmul.mubr.f32.vlgmr.msra.gmra.mxu0 %v118_v24  ;;  %v133_v24 = vld [vmem:[%s3938_s0 + $0x98] sm:$0xff] }
  0x4a   :  { %1932 = vmatpush3.msra.mxu1 %v2677_v34  ;;  %1959 = vmatprep.subr.mxu0 %v2482_v1 }
  0x4b   :  { %1933 = vmatprep.subr.mxu1 %v2689_v36  ;;  %1960 = vmatpush3.msra.mxu0 %v2494_v3 }
  0x4c   :  { %1934 = vmatpush3.msra.mxu1 %v2701_v38  ;;  %1961 = vmatprep.subr.mxu0 %v2504_v5 }
  0x4d   :  { %394 = vmatprep.mubr.f32.mxu0 %v126_v28  ;;  %1935 = vmatprep.subr.mxu1 %v2713_v40  ;;  %v132_v28 = vld [vmem:[%s3938_s0 + $0x90] sm:$0xff] }
  0x4e   :  { %1962 = vmatpush3.msra.mxu0 %v2516_v7  ;;  %1936 = vmatpush3.msra.mxu1 %v2725_v42 }
  0x4f   :  { %395 = vmatmul.mubr.f32.gmra.mxu0 %v125_v22  ;;  %1963 = vmatprep.subr.mxu0 %v2528_v9  ;;  %v134_v22 = vld [vmem:[%s3938_s0 + $0xa0] sm:$0xff] }
  0x50   :  { %1937 = vmatprep.subr.mxu1 %v2737_v44  ;;  %1964 = vmatpush3.msra.mxu0 %v2538_v11 }
  0x51   :  { %1938 = vmatpush3.msra.mxu1 %v2749_v46  ;;  %1965 = vmatprep.subr.mxu0 %v2550_v13  ;;  %v141_v46 = vld [vmem:[%s3938_s0 + $0xd8] sm:$0xff] }
  0x52   :  { %399 = vmatprep.mubr.f32.mxu0 %v133_v24  ;;  %1939 = vmatprep.subr.mxu1 %v2761_v48  ;;  %v140_v24 = vld [vmem:[%s3938_s0 + $0xd0] sm:$0xff] }
  0x53   :  { %1966 = vmatpush3.msra.mxu0 %v2562_v15  ;;  %1940 = vmatpush3.msra.mxu1 %v2773_v50 }
  0x54   :  { %400 = vmatmul.mubr.f32.gmra.mxu0 %v132_v28  ;;  %1967 = vmatprep.subr.mxu0 %v2574_v17  ;;  %v139_v28 = vld [vmem:[%s3938_s0 + $0xc8] sm:$0xff] }
  0x55   :  { %2346 = vmatprep.mubr.msk.f32.mxu1 %vm142_vm0, %v134_v22  ;;  %1941 = vmatprep.subr.mxu1 %v2785_v52  ;;  %v1678_v22 = vld [vmem:[%s3938_s0 + $0xe0] sm:$0xff]  ;;  %v4120_v52 = vld [vmem:[#allocation51_spill] sm:$0xff] }
  0x56   :  { %1968 = vmatpush3.msra.mxu0 %v2586_v19  ;;  %2347 = vmatmul.mubr.msk.f32.gmra.mxu1 %vm142_vm0, %v141_v46  ;;  %v1679_v46 = vld [vmem:[%s3938_s0 + $0xe8] sm:$0xff] }
  0x57   :  { %1969 = vmatprep.subr.mxu0 %v2598_v21  ;;  %1942 = vmatpush3.msra.mxu1 %v2797_v54  ;;  %v4117_v54 = vld [vmem:[#allocation49_spill] sm:$0xff] }
  0x58   :  { %404 = vmatprep.mubr.f32.mxu0 %v140_v24  ;;  %1943 = vmatprep.subr.mxu1 %v2809_v56  ;;  %v4104_v24 = vld [vmem:[#allocation16_spill] sm:$0xff] }
  0x59   :  { %1970 = vmatpush3.msra.mxu0 %v2610_v23  ;;  %1944 = vmatpush3.msra.mxu1 %v2821_v58  ;;  %v4113_v58 = vld [vmem:[#allocation46_spill] sm:$0xff]  ;;  %v4115_v56 = vld [vmem:[#allocation48_spill] sm:$0xff] }
  0x5a   :  { %405 = vmatmul.mubr.f32.gmra.mxu0 %v139_v28  ;;  %1971 = vmatprep.subr.mxu0 %v2622_v25  ;;  %v4105_v28 = vld [vmem:[#allocation41_spill] sm:$0xff] }
  0x5b   :  { %1945 = vmatprep.subr.mxu1 %v2833_v60  ;;  %1972 = vmatpush3.msra.mxu0 %v2634_v27  ;;  %v4111_v60 = vld [vmem:[#allocation45_spill] sm:$0xff] }
  0x5c   :  { %1946 = vmatpush3.msra.mxu1 %v2845_v62  ;;  %600 = vmatprep.mubr.f32.mxu1 %v1679_v46  ;;  %v4106_v46 = vld [vmem:[#allocation17_spill] sm:$0xff]  ;;  %v4109_v62 = vld [vmem:[#allocation44_spill] sm:$0xff] }
  0x5d   :  { %1973 = vmatprep.subr.mxu0 %v2646_v29  ;;  %601 = vmatmul.mubr.f32.vlgmr.msra.gmra.mxu1 %v1678_v22  ;;  %v4107_v22 = vld [vmem:[#allocation43_spill] sm:$0xff] }
  0x5e   :  { %1974 = vmatpush3.msra.mxu0 %v2658_v31  ;;  %2003 = vmatprep.subr.mxu1 %v2872_v51  ;;  %v4108_v51 = vld [vmem:[#allocation18_spill] sm:$0xff] }
  0x5f   :  { %1975 = vmatprep.subr.mxu0 %v2670_v33  ;;  %2004 = vmatpush3.msra.mxu1 %v2883_v49  ;;  %v4110_v49 = vld [vmem:[#allocation19_spill] sm:$0xff] }
  0x60   :  { %1976 = vmatpush3.msra.mxu0 %v2682_v35  ;;  %2005 = vmatprep.subr.mxu1 %v2888_v63  ;;  %v4112_v63 = vld [vmem:[#allocation21_spill] sm:$0xff] }
  0x61   :  { %1977 = vmatprep.subr.mxu0 %v2694_v37  ;;  %2006 = vmatpush3.msra.mxu1 %v2901_v53  ;;  %v4114_v53 = vld [vmem:[#allocation22_spill] sm:$0xff] }
  0x62   :  { %1978 = vmatpush3.msra.mxu0 %v4104_v24  ;;  %2007 = vmatprep.subr.mxu1 %v4105_v28  ;;  %v4116_v28 = vld [vmem:[#allocation23_spill] sm:$0xff] }
  0x63   :  { %1979 = vmatprep.subr.mxu0 %v4106_v46  ;;  %2008 = vmatpush3.msra.mxu1 %v4107_v22  ;;  %v4118_v22 = vld [vmem:[#allocation25_spill] sm:$0xff] }
  0x64   :  { %1980 = vmatpush3.msra.mxu0 %v4108_v51  ;;  %2009 = vmatprep.subr.mxu1 %v4109_v62  ;;  %v4119_v62 = vld [vmem:[#allocation27_spill] sm:$0xff] }
  0x65   :  { %1981 = vmatprep.subr.mxu0 %v4110_v49  ;;  %2010 = vmatpush3.msra.mxu1 %v4111_v60  ;;  %v4121_v60 = vld [vmem:[#allocation29_spill] sm:$0xff] }
  0x66   :  { %1982 = vmatpush3.msra.mxu0 %v4112_v63  ;;  %2011 = vmatprep.subr.mxu1 %v4113_v58  ;;  %v4122_v58 = vld [vmem:[#allocation31_spill] sm:$0xff] }
  0x67   :  { %1983 = vmatprep.subr.mxu0 %v4114_v53  ;;  %2012 = vmatpush3.msra.mxu1 %v4115_v56  ;;  %v1681_v56 = vld [vmem:[%s3938_s0 + $0xf8] sm:$0xff] }
  0x68   :  { %1984 = vmatpush3.msra.mxu0 %v4116_v28  ;;  %2013 = vmatprep.subr.mxu1 %v4117_v54  ;;  %v4123_v54 = vld [vmem:[#allocation33_spill] sm:$0xff] }
  0x69   :  { %1985 = vmatprep.subr.mxu0 %v4118_v22  ;;  %2014 = vmatpush3.msra.mxu1 %v2987_v45  ;;  %v1680_v45 = vld [vmem:[%s3938_s0 + $0xf0] sm:$0xff] }
  0x6a   :  { %1986 = vmatpush3.msra.mxu0 %v4119_v62  ;;  %2015 = vmatprep.subr.mxu1 %v4120_v52  ;;  %v4124_v52 = vld [vmem:[#allocation35_spill] sm:$0xff] }
  0x6b   :  { %1987 = vmatprep.subr.mxu0 %v4121_v60  ;;  %2016 = vmatpush3.msra.mxu1 %v3012_v43  ;;  %v1686_v43 = vld [vmem:[%s3938_s0 + $0x120] sm:$0xff] }
  0x6c   :  { %1988 = vmatpush3.msra.mxu0 %v4122_v58  ;;  %2017 = vmatprep.subr.mxu1 %v3017_v47  ;;  %v1685_v47 = vld [vmem:[%s3938_s0 + $0x118] sm:$0xff] }
  0x6d   :  { %1989 = vmatprep.subr.mxu0 %v4123_v54  ;;  %2018 = vmatpush3.msra.mxu1 %v3027_v57  ;;  %v1688_v54 = vld [vmem:[%s3938_s0 + $0x130] sm:$0xff]  ;;  %v1693_v57 = vld [vmem:[%s3938_s0 + $0x158] sm:$0xff] }
  0x6e   :  { %1990 = vmatpush3.msra.mxu0 %v4124_v52  ;;  %685 = vmatprep.mubr.f32.mxu0 %v1681_v56  ;;  %v1687_v56 = vld [vmem:[%s3938_s0 + $0x128] sm:$0xff] }
  0x6f   :  { %2019 = vmatprep.subr.mxu1 %v3034_v39  ;;  %686 = vmatmul.mubr.f32.vlgmr.msra.gmra.mxu0 %v1680_v45  ;;  %v1695_v39 = vld [vmem:[%s3938_s0 + $0x168] sm:$0xff]  ;;  %v1692_v45 = vld [vmem:[%s3938_s0 + $0x150] sm:$0xff] }
  0x70   :  { %2020 = vmatpush3.msra.mxu1 %v3044_v55  ;;  %605 = vmatprep.mubr.f32.mxu1 %v1686_v43  ;;  %v1694_v43 = vld [vmem:[%s3938_s0 + $0x160] sm:$0xff] }
  0x71   :  { %2021 = vmatprep.subr.mxu1 %v3051_v61  ;;  %606 = vmatmul.mubr.f32.gmra.mxu1 %v1685_v47  ;;  %v1700_v47 = vld [vmem:[%s3938_s0 + $0x190] sm:$0xff] }
  0x72   :  { %690 = vmatprep.mubr.f32.mxu0 %v1688_v54  ;;  %2022 = vmatpush3.msra.mxu1 %v3058_v41  ;;  %v4125_v54 = vld [vmem:[#allocation37_spill] sm:$0xff] }
  0x73   :  { %610 = vmatprep.mubr.f32.mxu1 %v1693_v57  ;;  %2023 = vmatprep.subr.mxu1 %v3065_v0  ;;  %v1699_v57 = vld [vmem:[%s3938_s0 + $0x188] sm:$0xff] }
  0x74   :  { %691 = vmatmul.mubr.f32.gmra.mxu0 %v1687_v56  ;;  %2024 = vmatpush3.msra.mxu1 %v3072_v59  ;;  %v4126_v56 = vld [vmem:[#allocation42_spill] sm:$0xff] }
  0x75   :  { %695 = vmatprep.mubr.f32.mxu0 %v1695_v39  ;;  %2025 = vmatprep.subr.mxu1 %v3079_v2  ;;  %v1702_v39 = vld [vmem:[%s3938_s0 + $0x1a0] sm:$0xff] }
  0x76   :  { %611 = vmatmul.mubr.f32.gmra.mxu1 %v1692_v45  ;;  %2349 = vmatprep.subr.mxu0 %v4125_v54  ;;  %v1701_v45 = vld [vmem:[%s3938_s0 + $0x198] sm:$0xff] }
  0x77   :  { %2026 = vmatpush3.msra.mxu1 %v3086_v4  ;;  %2350 = vmatpush3.msra.mxu0 %v4125_v54 }
  0x78   :  { %2027 = vmatprep.subr.mxu1 %v3093_v6  ;;  %696 = vmatmul.mubr.f32.gmra.mxu0 %v1694_v43  ;;  %v4127_v43 = vld [vmem:[#allocation47_spill] sm:$0xff] }
  0x79   :  { %2028 = vmatpush3.msra.mxu1 %v3100_v8  ;;  %615 = vmatprep.mubr.f32.mxu1 %v1700_v47  ;;  %v1683_v47 = vld [vmem:[%s3938_s0 + $0x108] sm:$0xff] }
  0x7a   :  { %2029 = vmatprep.subr.mxu1 %v3107_v10  ;;  %2351 = vmatprep.subr.mxu0 %v4126_v56 }
  0x7b   :  { %616 = vmatmul.mubr.f32.gmra.mxu1 %v1699_v57  ;;  %2352 = vmatpush3.msra.mxu0 %v4126_v56  ;;  %v1682_v57 = vld [vmem:[%s3938_s0 + $0x100] sm:$0xff] }
  0x7c   :  { %2030 = vmatpush3.msra.mxu1 %v3114_v12  ;;  %700 = vmatprep.mubr.f32.mxu0 %v1702_v39  ;;  %v4128_v39 = vld [vmem:[#allocation52_spill] sm:$0xff] }
  0x7d   :  { %2031 = vmatprep.subr.mxu1 %v3121_v14  ;;  %2353 = vmatprep.subr.mxu0 %v4127_v43  ;;  %v4129_v14 = vld [vmem:[#allocation2_spill] sm:$0xff] }
  0x7e   :  { %701 = vmatmul.mubr.f32.gmra.mxu0 %v1701_v45  ;;  %2032 = vmatpush3.msra.mxu1 %v3128_v16  ;;  %v1684_v45 = vld [vmem:[%s3938_s0 + $0x110] sm:$0xff]  ;;  %v1691_v16 = vld [vmem:[%s3938_s0 + $0x148] sm:$0xff] }
  0x7f   :  { %2354 = vmatpush3.msra.mxu0 %v4127_v43  ;;  %2033 = vmatprep.subr.mxu1 %v3135_v18  ;;  %v4131_v18 = vld [vmem:[#allocation4_spill] sm:$0xff] }
  0x80   :  { %2355 = vmatprep.subr.mxu0 %v4128_v39  ;;  %2034 = vmatpush3.msra.mxu1 %v3142_v20  ;;  %v1690_v20 = vld [vmem:[%s3938_s0 + $0x140] sm:$0xff] }
  0x81   :  { %770 = vmatprep.mubr.f32.mxu1 %v1683_v47  ;;  %2356 = vmatpush3.msra.mxu0 %v4128_v39  ;;  %v4130_v47 = vld [vmem:[#allocation3_spill] sm:$0xff] }
  0x82   :  { %771 = vmatmul.mubr.f32.vlgmr.msra.gmra.mxu1 %v1682_v57  ;;  %2357 = vmatprep.mubr.msk.f32.mxu0 %vm142_vm0, %v1684_v45  ;;  %v4138_v57 = vld [vmem:[#allocation11_spill] sm:$0xff]  ;;  %v4139_v45 = vld [vmem:[#allocation12_spill] sm:$0xff] }
  0x83   :  { %2055 = vmatprep.subr.mxu0 %v4129_v14  ;;  %2099 = vmatprep.subr.mxu1 %v2482_v1  ;;  %v1689_v14 = vld [vmem:[%s3938_s0 + $0x138] sm:$0xff] }
  0x84   :  { %2358 = vmatmul.mubr.msk.f32.vlgmr.msra.gmra.mxu0 %vm142_vm0, %v1691_v16  ;;  %2100 = vmatpush3.msra.mxu1 %v2494_v3  ;;  %v4132_v1 = vld [vmem:[#allocation5_spill] sm:$0xff]  ;;  %v4133_v16 = vld [vmem:[#allocation6_spill] sm:$0xff] }
  0x85   :  { %2056 = vmatpush3.msra.mxu0 %v4130_v47  ;;  %2101 = vmatprep.subr.mxu1 %v2504_v5  ;;  %v1697_v3 = vld [vmem:[%s3938_s0 + $0x178] sm:$0xff]  ;;  %v4135_v5 = vld [vmem:[#allocation8_spill] sm:$0xff] }
  0x86   :  { %2057 = vmatprep.subr.mxu0 %v4131_v18  ;;  %775 = vmatprep.mubr.f32.mxu1 %v1690_v20  ;;  %v4134_v18 = vld [vmem:[#allocation7_spill] sm:$0xff]  ;;  %v4136_v20 = vld [vmem:[#allocation9_spill] sm:$0xff] }
  0x87   :  { %2058 = vmatpush3.msra.mxu0 %v4132_v1  ;;  %2102 = vmatpush3.msra.mxu1 %v2516_v7  ;;  %v1696_v7 = vld [vmem:[%s3938_s0 + $0x170] sm:$0xff]  ;;  %v4140_v47 = vld [vmem:[#allocation13_spill] sm:$0xff] }
  0x88   :  { %2059 = vmatprep.subr.mxu0 %v4133_v16  ;;  %776 = vmatmul.mubr.f32.gmra.mxu1 %v1689_v14  ;;  %v1733_v14 = vld [vmem:[%s3938_s0 + $0x278] sm:$0xff]  ;;  %v4162_v16 = vld [vmem:[#allocation50_spill] sm:$0xff] }
  0x89   :  { %2103 = vmatprep.subr.mxu1 %v2528_v9  ;;  %2060 = vmatpush3.msra.mxu0 %v4134_v18  ;;  %v4137_v9 = vld [vmem:[#allocation10_spill] sm:$0xff]  ;;  %v4161_v1 = vld [vmem:[#allocation49_spill] sm:$0xff] }
  0x8a   :  { %2104 = vmatpush3.msra.mxu1 %v2538_v11  ;;  %2061 = vmatprep.subr.mxu0 %v4135_v5  ;;  %v1704_v11 = vld [vmem:[%s3938_s0 + $0x1b0] sm:$0xff]  ;;  %v4164_v18 = vld [vmem:[#allocation53_spill] sm:$0xff]  ;;  %v1723_v5 = vld [vmem:[%s3938_s0 + $0x228] sm:$0xff] }
  0x8b   :  { %2105 = vmatprep.subr.mxu1 %v2550_v13  ;;  %780 = vmatprep.mubr.f32.mxu1 %v1697_v3  ;;  %v1698_v13 = vld [vmem:[%s3938_s0 + $0x180] sm:$0xff]  ;;  %v4163_v3 = vld [vmem:[#allocation51_spill] sm:$0xff] }
  0x8c   :  { %2062 = vmatpush3.msra.mxu0 %v4136_v20  ;;  %2106 = vmatpush3.msra.mxu1 %v2562_v15  ;;  %v1703_v15 = vld [vmem:[%s3938_s0 + $0x1a8] sm:$0xff] }
  0x8d   :  { %2063 = vmatprep.subr.mxu0 %v4137_v9  ;;  %781 = vmatmul.mubr.f32.gmra.mxu1 %v1696_v7  ;;  %v4165_v7 = vld [vmem:[#allocation54_spill] sm:$0xff]  ;;  %v4166_v20 = vld [vmem:[#allocation55_spill] sm:$0xff]  ;;  %v2391_v9 = vld [vmem:[%s3937_s1 + $0xf8] sm:$0xff] }
  0x8e   :  { %2107 = vmatprep.subr.mxu1 %v2574_v17  ;;  %2064 = vmatpush3.msra.mxu0 %v4138_v57  ;;  %v1705_v17 = vld [vmem:[%s3938_s0 + $0x1b8] sm:$0xff]  ;;  %v2394_v57 = vld [vmem:[%s3937_s1 + $0x70] sm:$0xff] }
  0x8f   :  { %2108 = vmatpush3.msra.mxu1 %v2586_v19  ;;  %2065 = vmatprep.subr.mxu0 %v4139_v45  ;;  %v4141_v19 = vld [vmem:[#allocation14_spill] sm:$0xff]  ;;  %v2395_v45 = vld [vmem:[%s3937_s1 + $0xe8] sm:$0xff] }
  0x90   :  { %2109 = vmatprep.subr.mxu1 %v2598_v21  ;;  %785 = vmatprep.mubr.f32.mxu1 %v1704_v11  ;;  %v4142_v21 = vld [vmem:[#allocation15_spill] sm:$0xff]  ;;  %v4167_v11 = vld [vmem:[#allocation56_spill] sm:$0xff] }
  0x91   :  { %2360 = vmatprep.mubr.msk.f32.mxu0 %vm142_vm0, %v1698_v13  ;;  %2066 = vmatpush3.msra.mxu0 %v4140_v47  ;;  %v2393_v13 = vld [vmem:[%s3937_s1 + $0xf0] sm:$0xff]  ;;  %v2398_v47 = vld [vmem:[%s3937_s1 + $0x60] sm:$0xff] }
  0x92   :  { %2110 = vmatpush3.msra.mxu1 %v2610_v23  ;;  %2361 = vmatmul.mubr.msk.f32.gmra.mxu0 %vm142_vm0, %v1705_v17  ;;  %v4143_v23 = vld [vmem:[#allocation20_spill] sm:$0xff]  ;;  %v2397_v17 = vld [vmem:[%s3937_s1 + $0xe0] sm:$0xff] }
  0x93   :  { %786 = vmatmul.mubr.f32.gmra.mxu1 %v1703_v15  ;;  %2067 = vmatprep.subr.mxu0 %v4141_v19  ;;  %v2396_v15 = vld [vmem:[%s3937_s1 + $0x68] sm:$0xff]  ;;  %v2399_v19 = vld [vmem:[%s3937_s1 + $0xd8] sm:$0xff] }
  0x94   :  { %2111 = vmatprep.subr.mxu1 %v2622_v25  ;;  %2068 = vmatpush3.msra.mxu0 %v2629_v26  ;;  %v4144_v25 = vld [vmem:[#allocation24_spill] sm:$0xff]  ;;  %v4145_v26 = vld [vmem:[#allocation26_spill] sm:$0xff] }
  0x95   :  { %2112 = vmatpush3.msra.mxu1 %v2634_v27  ;;  %2069 = vmatprep.subr.mxu0 %v4142_v21  ;;  %v4146_v27 = vld [vmem:[#allocation28_spill] sm:$0xff]  ;;  %v2400_v21 = vld [vmem:[%s3937_s1 + $0x58] sm:$0xff] }
  0x96   :  { %2113 = vmatprep.subr.mxu1 %v2646_v29  ;;  %2070 = vmatpush3.msra.mxu0 %v2653_v30  ;;  %v1711_v29 = vld [vmem:[%s3938_s0 + $0x1c8] sm:$0xff]  ;;  %v4147_v30 = vld [vmem:[#allocation30_spill] sm:$0xff] }
  0x97   :  { %2114 = vmatpush3.msra.mxu1 %v2658_v31  ;;  %2071 = vmatprep.subr.mxu0 %v2665_v32  ;;  %v1713_v31 = vld [vmem:[%s3938_s0 + $0x1d8] sm:$0xff]  ;;  %v4148_v32 = vld [vmem:[#allocation32_spill] sm:$0xff] }
  0x98   :  { %2115 = vmatprep.subr.mxu1 %v2670_v33  ;;  %2072 = vmatpush3.msra.mxu0 %v2677_v34  ;;  %v4149_v33 = vld [vmem:[#allocation33_spill] sm:$0xff]  ;;  %v1710_v34 = vld [vmem:[%s3938_s0 + $0x1c0] sm:$0xff] }
  0x99   :  { %2116 = vmatpush3.msra.mxu1 %v2682_v35  ;;  %2073 = vmatprep.subr.mxu0 %v2689_v36  ;;  %v1712_v35 = vld [vmem:[%s3938_s0 + $0x1d0] sm:$0xff]  ;;  %v4150_v36 = vld [vmem:[#allocation34_spill] sm:$0xff] }
  0x9a   :  { %2117 = vmatprep.subr.mxu1 %v2694_v37  ;;  %2074 = vmatpush3.msra.mxu0 %v2701_v38  ;;  %v1718_v37 = vld [vmem:[%s3938_s0 + $0x200] sm:$0xff]  ;;  %v4151_v38 = vld [vmem:[#allocation36_spill] sm:$0xff] }
  0x9b   :  { %2118 = vmatpush3.msra.mxu1 %v4104_v24  ;;  %2075 = vmatprep.subr.mxu0 %v2713_v40  ;;  %v1720_v40 = vld [vmem:[%s3938_s0 + $0x210] sm:$0xff]  ;;  %v4158_v24 = vld [vmem:[#allocation45_spill] sm:$0xff] }
  0x9c   :  { %2119 = vmatprep.subr.mxu1 %v4106_v46  ;;  %2076 = vmatpush3.msra.mxu0 %v2725_v42  ;;  %v4152_v42 = vld [vmem:[#allocation38_spill] sm:$0xff] }
  0x9d   :  { %2120 = vmatpush3.msra.mxu1 %v4108_v51  ;;  %2077 = vmatprep.subr.mxu0 %v2737_v44  ;;  %v1717_v44 = vld [vmem:[%s3938_s0 + $0x1f8] sm:$0xff]  ;;  %v4159_v46 = vld [vmem:[#allocation46_spill] sm:$0xff] }
  0x9e   :  { %2121 = vmatprep.subr.mxu1 %v4110_v49  ;;  %2078 = vmatpush3.msra.mxu0 %v4143_v23  ;;  %v4153_v49 = vld [vmem:[#allocation39_spill] sm:$0xff]  ;;  %v1725_v51 = vld [vmem:[%s3938_s0 + $0x238] sm:$0xff]  ;;  %v2401_v23 = vld [vmem:[%s3937_s1 + $0xd0] sm:$0xff] }
  0x9f   :  { %2122 = vmatpush3.msra.mxu1 %v4112_v63  ;;  %2079 = vmatprep.subr.mxu0 %v2761_v48  ;;  %v1719_v48 = vld [vmem:[%s3938_s0 + $0x208] sm:$0xff]  ;;  %v1726_v63 = vld [vmem:[%s3938_s0 + $0x240] sm:$0xff] }
  0xa0   :  { %2123 = vmatprep.subr.mxu1 %v4114_v53  ;;  %2080 = vmatpush3.msra.mxu0 %v2773_v50  ;;  %v4154_v50 = vld [vmem:[#allocation40_spill] sm:$0xff] }
  0xa1   :  { %2124 = vmatpush3.msra.mxu1 %v4116_v28  ;;  %2081 = vmatprep.subr.mxu0 %v4144_v25  ;;  %v4157_v53 = vld [vmem:[#allocation44_spill] sm:$0xff] }
  0xa2   :  { %2125 = vmatprep.subr.mxu1 %v4118_v22  ;;  %2082 = vmatpush3.msra.mxu0 %v4145_v26  ;;  %v1732_v28 = vld [vmem:[%s3938_s0 + $0x270] sm:$0xff]  ;;  %v1734_v22 = vld [vmem:[%s3938_s0 + $0x280] sm:$0xff] }
  0xa3   :  { %2126 = vmatpush3.msra.mxu1 %v4119_v62  ;;  %2083 = vmatprep.subr.mxu0 %v4146_v27  ;;  %v1724_v62 = vld [vmem:[%s3938_s0 + $0x230] sm:$0xff] }
  0xa4   :  { %2127 = vmatprep.subr.mxu1 %v4121_v60  ;;  %2084 = vmatpush3.msra.mxu0 %v4147_v30  ;;  %v4156_v60 = vld [vmem:[#allocation43_spill] sm:$0xff]  ;;  %v2402_v27 = vld [vmem:[%s3937_s1 + $0x50] sm:$0xff] }
  0xa5   :  { %2128 = vmatpush3.msra.mxu1 %v4122_v58  ;;  %2085 = vmatprep.subr.mxu0 %v4148_v32  ;;  %v1727_v58 = vld [vmem:[%s3938_s0 + $0x248] sm:$0xff] }
  0xa6   :  { %2129 = vmatprep.subr.mxu1 %v4149_v33  ;;  %2086 = vmatpush3.msra.mxu0 %v4150_v36  ;;  %v2404_v33 = vld [vmem:[%s3937_s1 + $0x48] sm:$0xff] }
  0xa7   :  { %985 = vmatprep.mubr.f32.mxu0 %v1711_v29  ;;  %2130 = vmatpush3.msra.mxu1 %v4124_v52  ;;  %v4155_v52 = vld [vmem:[#allocation41_spill] sm:$0xff]  ;;  %v2403_v29 = vld [vmem:[%s3937_s1 + $0xc8] sm:$0xff] }
  0xa8   :  { %1070 = vmatprep.mubr.f32.mxu1 %v1713_v31  ;;  %986 = vmatmul.mubr.f32.vlgmr.msra.gmra.mxu0 %v1710_v34  ;;  %v4168_v31 = vld [vmem:[#allocation57_spill] sm:$0xff]  ;;  %v4169_v34 = vld [vmem:[#allocation58_spill] sm:$0xff] }
  0xa9   :  { %1071 = vmatmul.mubr.f32.vlgmr.msra.gmra.mxu1 %v1712_v35  ;;  %2143 = vmatprep.subr.mxu0 %v4151_v38  ;;  %v1715_v35 = vld [vmem:[%s3938_s0 + $0x1e8] sm:$0xff] }
  0xaa   :  { %2363 = vmatprep.subr.mxu1 %v4125_v54  ;;  %2144 = vmatpush3.msra.mxu0 %v4152_v42 }
  0xab   :  { %2364 = vmatpush3.msra.mxu1 %v4125_v54  ;;  %2145 = vmatprep.subr.mxu0 %v4153_v49  ;;  %v4160_v54 = vld [vmem:[#allocation48_spill] sm:$0xff] }
  0xac   :  { %990 = vmatprep.mubr.f32.mxu0 %v1718_v37  ;;  %1075 = vmatprep.mubr.f32.mxu1 %v1720_v40  ;;  %v2405_v37 = vld [vmem:[%s3937_s1 + $0xc0] sm:$0xff]  ;;  %v4170_v40 = vld [vmem:[#allocation59_spill] sm:$0xff] }
  0xad   :  { %2146 = vmatpush3.msra.mxu0 %v4154_v50  ;;  %1076 = vmatmul.mubr.f32.gmra.mxu1 %v1719_v48  ;;  %v2406_v48 = vld [vmem:[%s3937_s1 + $0x40] sm:$0xff] }
  0xae   :  { %991 = vmatmul.mubr.f32.gmra.mxu0 %v1717_v44  ;;  %2147 = vmatprep.subr.mxu0 %v4155_v52  ;;  %v1714_v44 = vld [vmem:[%s3938_s0 + $0x1e0] sm:$0xff] }
  0xaf   :  { %2365 = vmatprep.subr.mxu1 %v4126_v56  ;;  %2148 = vmatpush3.msra.mxu0 %v4156_v60 }
  0xb0   :  { %2366 = vmatpush3.msra.mxu1 %v4126_v56  ;;  %2149 = vmatprep.subr.mxu0 %v4157_v53  ;;  %v1731_v56 = vld [vmem:[%s3938_s0 + $0x268] sm:$0xff] }
  0xb1   :  { %995 = vmatprep.mubr.f32.mxu0 %v1725_v51  ;;  %1080 = vmatprep.mubr.f32.mxu1 %v1727_v58  ;;  %v4171_v51 = vld [vmem:[#allocation60_spill] sm:$0xff]  ;;  %v2407_v58 = vld [vmem:[%s3937_s1 + $0xb8] sm:$0xff] }
  0xb2   :  { %2150 = vmatpush3.msra.mxu0 %v4158_v24  ;;  %1081 = vmatmul.mubr.f32.gmra.mxu1 %v1726_v63  ;;  %v1722_v63 = vld [vmem:[%s3938_s0 + $0x220] sm:$0xff] }
  0xb3   :  { %996 = vmatmul.mubr.f32.gmra.mxu0 %v1724_v62  ;;  %2151 = vmatprep.subr.mxu0 %v4159_v46  ;;  %v2408_v62 = vld [vmem:[%s3937_s1 + $0x38] sm:$0xff] }
  0xb4   :  { %2367 = vmatprep.subr.mxu1 %v4127_v43  ;;  %2152 = vmatpush3.msra.mxu0 %v4160_v54 }
  0xb5   :  { %2368 = vmatpush3.msra.mxu1 %v4127_v43  ;;  %2153 = vmatprep.subr.mxu0 %v4161_v1  ;;  %v1716_v43 = vld [vmem:[%s3938_s0 + $0x1f0] sm:$0xff] }
  0xb6   :  { %1000 = vmatprep.mubr.f32.mxu0 %v1732_v28  ;;  %1085 = vmatprep.mubr.f32.mxu1 %v1734_v22  ;;  %v2409_v28 = vld [vmem:[%s3937_s1 + $0x1f8] sm:$0xff]  ;;  %v2410_v22 = vld [vmem:[%s3937_s1 + $0xb0] sm:$0xff] }
  0xb7   :  { %2154 = vmatpush3.msra.mxu0 %v4162_v16  ;;  %1086 = vmatmul.mubr.f32.gmra.mxu1 %v1733_v14  ;;  %v2412_v14 = vld [vmem:[%s3937_s1 + $0x30] sm:$0xff] }
  0xb8   :  { %1001 = vmatmul.mubr.f32.gmra.mxu0 %v1731_v56  ;;  %2155 = vmatprep.subr.mxu0 %v4163_v3  ;;  %v2411_v56 = vld [vmem:[%s3937_s1 + $0x178] sm:$0xff] }
  0xb9   :  { %2369 = vmatprep.subr.mxu1 %v4128_v39  ;;  %2156 = vmatpush3.msra.mxu0 %v4164_v18 }
  0xba   :  { %2370 = vmatpush3.msra.mxu1 %v4128_v39  ;;  %2157 = vmatprep.subr.mxu0 %v4165_v7  ;;  %v2392_v39 = vld [vmem:[%s3937_s1 + $0x78] sm:$0xff] }
  0xbb   :  { %2371 = vmatprep.mubr.msk.f32.mxu1 %vm142_vm0, %v1716_v43  ;;  %2158 = vmatpush3.msra.mxu0 %v4166_v20  ;;  %v1721_v43 = vld [vmem:[%s3938_s0 + $0x218] sm:$0xff] }
  0xbc   :  { %2195 = vmatprep.subr.mxu1 %v2391_v9  ;;  %2159 = vmatprep.subr.mxu0 %v4167_v11  ;;  %v2414_v9 = vld [vmem:[%s3937_s1 + $0xa8] sm:$0xff] }
  0xbd   :  { %2372 = vmatmul.mubr.msk.f32.vlgmr.msra.gmra.mxu1 %vm142_vm0, %v1723_v5  ;;  %2160 = vmatpush3.msra.mxu0 %v3044_v55  ;;  %v2413_v5 = vld [vmem:[%s3937_s1 + $0x1f0] sm:$0xff] }
  0xbe   :  { %2196 = vmatpush3.msra.mxu1 %v2392_v39  ;;  %2161 = vmatprep.subr.mxu0 %v3051_v61  ;;  %v2415_v39 = vld [vmem:[%s3937_s1 + $0x170] sm:$0xff] }
  0xbf   :  { %2197 = vmatprep.subr.mxu1 %v2393_v13  ;;  %2162 = vmatpush3.msra.mxu0 %v3058_v41  ;;  %v2416_v13 = vld [vmem:[%s3937_s1 + $0x28] sm:$0xff] }
  0xc0   :  { %2198 = vmatpush3.msra.mxu1 %v2394_v57  ;;  %2163 = vmatprep.subr.mxu0 %v3065_v0  ;;  %v1729_v57 = vld [vmem:[%s3938_s0 + $0x258] sm:$0xff] }
  0xc1   :  { %2199 = vmatprep.subr.mxu1 %v2395_v45  ;;  %2164 = vmatpush3.msra.mxu0 %v3072_v59  ;;  %v2417_v45 = vld [vmem:[%s3937_s1 + $0x1e8] sm:$0xff] }
  0xc2   :  { %2200 = vmatpush3.msra.mxu1 %v2396_v15  ;;  %2165 = vmatprep.subr.mxu0 %v3079_v2  ;;  %v2418_v15 = vld [vmem:[%s3937_s1 + $0xa0] sm:$0xff] }
  0xc3   :  { %2201 = vmatprep.subr.mxu1 %v2397_v17  ;;  %2166 = vmatpush3.msra.mxu0 %v3086_v4  ;;  %v2419_v17 = vld [vmem:[%s3937_s1 + $0x168] sm:$0xff] }
  0xc4   :  { %2202 = vmatpush3.msra.mxu1 %v2398_v47  ;;  %2167 = vmatprep.subr.mxu0 %v3093_v6  ;;  %v2420_v47 = vld [vmem:[%s3937_s1 + $0x20] sm:$0xff] }
  0xc5   :  { %2203 = vmatprep.subr.mxu1 %v2399_v19  ;;  %2168 = vmatpush3.msra.mxu0 %v3100_v8  ;;  %v1728_v19 = vld [vmem:[%s3938_s0 + $0x250] sm:$0xff] }
  0xc6   :  { %2204 = vmatpush3.msra.mxu1 %v2400_v21  ;;  %2169 = vmatprep.subr.mxu0 %v3107_v10  ;;  %v2421_v21 = vld [vmem:[%s3937_s1 + $0x1e0] sm:$0xff] }
  0xc7   :  { %2205 = vmatprep.subr.mxu1 %v2401_v23  ;;  %2170 = vmatpush3.msra.mxu0 %v3114_v12  ;;  %v2422_v23 = vld [vmem:[%s3937_s1 + $0x98] sm:$0xff] }
  0xc8   :  { %2206 = vmatpush3.msra.mxu1 %v2402_v27  ;;  %2171 = vmatprep.subr.mxu0 %v4168_v31  ;;  %v2423_v27 = vld [vmem:[%s3937_s1 + $0x160] sm:$0xff] }
  0xc9   :  { %2207 = vmatprep.subr.mxu1 %v2403_v29  ;;  %2172 = vmatpush3.msra.mxu0 %v4169_v34  ;;  %v1730_v29 = vld [vmem:[%s3938_s0 + $0x260] sm:$0xff] }
  0xca   :  { %2208 = vmatpush3.msra.mxu1 %v2404_v33  ;;  %2173 = vmatprep.subr.mxu0 %v4170_v40  ;;  %v2424_v33 = vld [vmem:[%s3937_s1 + $0x18] sm:$0xff] }
  0xcb   :  { %2209 = vmatprep.subr.mxu1 %v2405_v37  ;;  %2174 = vmatpush3.msra.mxu0 %v4171_v51  ;;  %v1736_v37 = vld [vmem:[%s3938_s0 + $0x290] sm:$0xff] }
  0xcc   :  { %2210 = vmatpush3.msra.mxu1 %v2406_v48  ;;  %1155 = vmatprep.mubr.f32.mxu0 %v1715_v35  ;;  %v2425_v35 = vld [vmem:[%s3937_s1 + $0x1d8] sm:$0xff] }
  0xcd   :  { %2211 = vmatprep.subr.mxu1 %v2407_v58  ;;  %1156 = vmatmul.mubr.f32.vlgmr.msra.gmra.mxu0 %v1714_v44  ;;  %v1737_v44 = vld [vmem:[%s3938_s0 + $0x298] sm:$0xff]  ;;  %v1735_v58 = vld [vmem:[%s3938_s0 + $0x288] sm:$0xff] }
  0xce   :  { %2212 = vmatpush3.msra.mxu1 %v2408_v62  ;;  %2239 = vmatprep.subr.mxu0 %v2409_v28  ;;  %v2426_v48 = vld [vmem:[%s3937_s1 + $0x158] sm:$0xff]  ;;  %v2428_v62 = vld [vmem:[%s3937_s1 + $0x88] sm:$0xff] }
  0xcf   :  { %2213 = vmatprep.subr.mxu1 %v2410_v22  ;;  %2240 = vmatpush3.msra.mxu0 %v2411_v56  ;;  %v2430_v28 = vld [vmem:[%s3937_s1 + $0x1c8] sm:$0xff]  ;;  %v1742_v22 = vld [vmem:[%s3938_s0 + $0x2a0] sm:$0xff] }
  0xd0   :  { %2214 = vmatpush3.msra.mxu1 %v2412_v14  ;;  %2241 = vmatprep.subr.mxu0 %v2413_v5  ;;  %v2431_v56 = vld [vmem:[%s3937_s1 + $0x148] sm:$0xff]  ;;  %v2434_v14 = vld [vmem:[%s3937_s1 + $0x1b8] sm:$0xff] }
  0xd1   :  { %1160 = vmatprep.mubr.f32.mxu0 %v1722_v63  ;;  %2215 = vmatprep.subr.mxu1 %v2414_v9  ;;  %v1743_v63 = vld [vmem:[%s3938_s0 + $0x2a8] sm:$0xff] }
  0xd2   :  { %2242 = vmatpush3.msra.mxu0 %v2415_v39  ;;  %2216 = vmatpush3.msra.mxu1 %v2416_v13 }
  0xd3   :  { %1161 = vmatmul.mubr.f32.gmra.mxu0 %v1721_v43  ;;  %2243 = vmatprep.subr.mxu0 %v2417_v45  ;;  %v2436_v43 = vld [vmem:[%s3937_s1 + $0x1b0] sm:$0xff] }
  0xd4   :  { %2217 = vmatprep.subr.mxu1 %v2418_v15  ;;  %2244 = vmatpush3.msra.mxu0 %v2419_v17 }
  0xd5   :  { %2218 = vmatpush3.msra.mxu1 %v2420_v47  ;;  %2245 = vmatprep.subr.mxu0 %v2421_v21 }
  0xd6   :  { %1165 = vmatprep.mubr.f32.mxu0 %v1729_v57  ;;  %2219 = vmatprep.subr.mxu1 %v2422_v23 }
  0xd7   :  { %2246 = vmatpush3.msra.mxu0 %v2423_v27  ;;  %2220 = vmatpush3.msra.mxu1 %v2424_v33 }
  0xd8   :  { %1166 = vmatmul.mubr.f32.gmra.mxu0 %v1728_v19  ;;  %2247 = vmatprep.subr.mxu0 %v2425_v35  ;;  %v2448_v35 = vld [vmem:[%s3937_s1 + $0x180] sm:$0xff] }
  0xd9   :  { %2221 = vmatprep.subr.mxu1 %v4144_v25  ;;  %2248 = vmatpush3.msra.mxu0 %v2426_v48  ;;  %v2427_v25 = vld [vmem:[%s3937_s1 + $0x1d0] sm:$0xff]  ;;  %v2449_v48 = vld [vmem:[%s3937_s1 + $0x100] sm:$0xff] }
  0xda   :  { %2374 = vmatprep.mubr.msk.f32.mxu1 %vm142_vm0, %v1730_v29  ;;  %2222 = vmatpush3.msra.mxu1 %v4145_v26  ;;  %v2429_v26 = vld [vmem:[%s3937_s1 + $0x150] sm:$0xff] }
  0xdb   :  { %2249 = vmatprep.subr.mxu0 %v2427_v25  ;;  %1170 = vmatprep.mubr.f32.mxu0 %v1736_v37 }
  0xdc   :  { %2375 = vmatmul.mubr.msk.f32.gmra.mxu1 %vm142_vm0, %v1737_v44  ;;  %2223 = vmatprep.subr.mxu1 %v2428_v62  ;;  %v1749_v62 = vld [vmem:[%s3938_s0 + $0x2d8] sm:$0xff] }
  0xdd   :  { %2250 = vmatpush3.msra.mxu0 %v2429_v26  ;;  %2224 = vmatpush3.msra.mxu1 %v4147_v30  ;;  %v2432_v30 = vld [vmem:[%s3937_s1 + $0x1c0] sm:$0xff]  ;;  %v1757_v26 = vld [vmem:[%s3938_s0 + $0x318] sm:$0xff] }
  0xde   :  { %1171 = vmatmul.mubr.f32.gmra.mxu0 %v1735_v58  ;;  %2251 = vmatprep.subr.mxu0 %v2430_v28 }
  0xdf   :  { %2225 = vmatprep.subr.mxu1 %v4148_v32  ;;  %2252 = vmatpush3.msra.mxu0 %v2431_v56  ;;  %v2433_v32 = vld [vmem:[%s3937_s1 + $0x140] sm:$0xff] }
  0xe0   :  { %2226 = vmatpush3.msra.mxu1 %v4150_v36  ;;  %1370 = vmatprep.mubr.f32.mxu1 %v1743_v63  ;;  %v2435_v36 = vld [vmem:[%s3937_s1 + $0x138] sm:$0xff] }
  0xe1   :  { %2253 = vmatprep.subr.mxu0 %v2432_v30  ;;  %1371 = vmatmul.mubr.f32.vlgmr.msra.gmra.mxu1 %v1742_v22 }
  0xe2   :  { %2254 = vmatpush3.msra.mxu0 %v2433_v32  ;;  %2283 = vmatprep.subr.mxu1 %v4151_v38  ;;  %v1756_v32 = vld [vmem:[%s3938_s0 + $0x310] sm:$0xff] }
  0xe3   :  { %2255 = vmatprep.subr.mxu0 %v2434_v14  ;;  %2284 = vmatpush3.msra.mxu1 %v4152_v42  ;;  %v2437_v42 = vld [vmem:[%s3937_s1 + $0x130] sm:$0xff] }
  0xe4   :  { %2256 = vmatpush3.msra.mxu0 %v2435_v36  ;;  %2285 = vmatprep.subr.mxu1 %v4153_v49  ;;  %v1807_v38 = vpop.f32.mrf.mxu0  ;;  %v2438_v49 = vld [vmem:[%s3937_s1 + $0x1a8] sm:$0xff]  ;;  %v1764_v36 = vld [vmem:[%s3938_s0 + $0x350] sm:$0xff] }
  0xe5   :  { %2257 = vmatprep.subr.mxu0 %v2436_v43  ;;  %v1851_v5 = vpop.f32.mrf.mxu1  ;;  %2286 = vmatpush3.msra.mxu1 %v4154_v50  ;;  %v2439_v50 = vld [vmem:[%s3937_s1 + $0x128] sm:$0xff] }
  0xe6   :  { %2258 = vmatpush3.msra.mxu0 %v2437_v42  ;;  %2287 = vmatprep.subr.mxu1 %v4155_v52  ;;  %v1808_v9 = vpop.f32.mrf.mxu0  ;;  %v2440_v52 = vld [vmem:[%s3937_s1 + $0x1a0] sm:$0xff] }
  0xe7   :  { %2259 = vmatprep.subr.mxu0 %v2438_v49  ;;  %v1852_v39 = vpop.f32.mrf.mxu1  ;;  %2288 = vmatpush3.msra.mxu1 %v4156_v60  ;;  %v1809_v13 = vadd.f32 %v1808_v9, %v1807_v38  ;;  %v2441_v60 = vld [vmem:[%s3937_s1 + $0x120] sm:$0xff]  ;;  %v1761_v38 = vld [vmem:[%s3938_s0 + $0x338] sm:$0xff]  ;;  %v1760_v49 = vld [vmem:[%s3938_s0 + $0x330] sm:$0xff] }
  0xe8   :  { %2260 = vmatpush3.msra.mxu0 %v2439_v50  ;;  %v1853_v57 = vadd.f32 %v1852_v39, %v1851_v5  ;;  %2289 = vmatprep.subr.mxu1 %v4157_v53  ;;  %v2442_v53 = vld [vmem:[%s3937_s1 + $0x198] sm:$0xff]  ;;  %v2453_v5 = vld [vmem:[%s3937_s1 + $0x300] sm:$0xff]  ;;  %v1768_v9 = vld [vmem:[%s3938_s0 + $0x370] sm:$0xff] }
  0xe9   :  { %2261 = vmatprep.subr.mxu0 %v2440_v52  ;;  %2290 = vmatpush3.msra.mxu1 %v4158_v24  ;;  %v1854_v17 = vpop.f32.mrf.mxu1  ;;  %v2443_v24 = vld [vmem:[%s3937_s1 + $0x118] sm:$0xff]  ;;  %v1762_v42 = vld [vmem:[%s3938_s0 + $0x340] sm:$0xff]  ;;  %v1767_v52 = vld [vmem:[%s3938_s0 + $0x368] sm:$0xff] }
  0xea   :  { %2262 = vmatpush3.msra.mxu0 %v2441_v60  ;;  %v3722_v45 = vadd.f32 %v1853_v57, %v1809_v13  ;;  %v1810_v15 = vpop.f32.mrf.mxu0  ;;  %2291 = vmatprep.subr.mxu1 %v4159_v46  ;;  %v2444_v46 = vld [vmem:[%s3937_s1 + $0x190] sm:$0xff]  ;;  %v1769_v39 = vld [vmem:[%s3938_s0 + $0x378] sm:$0xff] }
  0xeb   :  { %2263 = vmatprep.subr.mxu0 %v2442_v53  ;;  %2292 = vmatpush3.msra.mxu1 %v4160_v54  ;;  %v1855_v19 = vpop.f32.mrf.mxu1  ;;  %v2445_v54 = vld [vmem:[%s3937_s1 + $0x110] sm:$0xff] }
  0xec   :  { %2264 = vmatpush3.msra.mxu0 %v2443_v24  ;;  %v1811_v47 = vpop.f32.mrf.mxu0  ;;  %2293 = vmatprep.subr.mxu1 %v4161_v1  ;;  %v1856_v23 = vadd.f32 %v1855_v19, %v1854_v17  ;;  %v2446_v1 = vld [vmem:[%s3937_s1 + $0x188] sm:$0xff] }
  0xed   :  { %2265 = vmatprep.subr.mxu0 %v2444_v46  ;;  %v1812_v21 = vadd.f32 %v1811_v47, %v1810_v15  ;;  %2294 = vmatpush3.msra.mxu1 %v4162_v16  ;;  %v2447_v16 = vld [vmem:[%s3937_s1 + $0x108] sm:$0xff] }
  0xee   :  { %2266 = vmatpush3.msra.mxu0 %v2445_v54  ;;  %2295 = vmatprep.subr.mxu1 %v4163_v3  ;;  %v1857_v33 = vpop.f32.mrf.mxu1  ;;  %v1745_v3 = vld [vmem:[%s3938_s0 + $0x2b8] sm:$0xff] }
  0xef   :  { %2267 = vmatprep.subr.mxu0 %v2446_v1  ;;  %v3744_v27 = vadd.f32 %v1856_v23, %v1812_v21  ;;  %v1813_v29 = vpop.f32.mrf.mxu0  ;;  %2296 = vmatpush3.msra.mxu1 %v4164_v18  ;;  %v1744_v18 = vld [vmem:[%s3938_s0 + $0x2b0] sm:$0xff] }
  0xf0   :  { %2268 = vmatpush3.msra.mxu0 %v2447_v16  ;;  %2297 = vmatprep.subr.mxu1 %v4165_v7  ;;  %v1858_v44 = vpop.f32.mrf.mxu1  ;;  %v1750_v7 = vld [vmem:[%s3938_s0 + $0x2e0] sm:$0xff] }
  0xf1   :  { %2269 = vmatprep.subr.mxu0 %v2448_v35  ;;  %v1814_v37 = vpop.f32.mrf.mxu0  ;;  %2298 = vmatpush3.msra.mxu1 %v4166_v20  ;;  %v1859_v58 = vadd.f32 %v1858_v44, %v1857_v33  ;;  %v1752_v20 = vld [vmem:[%s3938_s0 + $0x2f0] sm:$0xff] }
  0xf2   :  { %2270 = vmatpush3.msra.mxu0 %v2449_v48  ;;  %v1815_v25 = vadd.f32 %v1814_v37, %v1813_v29  ;;  %1455 = vmatprep.mubr.f32.mxu0 %v1745_v3 }
  0xf3   :  { %2299 = vmatprep.subr.mxu1 %v4167_v11  ;;  %1456 = vmatmul.mubr.f32.vlgmr.msra.gmra.mxu0 %v1744_v18  ;;  %v1860_v22 = vpop.f32.mrf.mxu1  ;;  %v1751_v11 = vld [vmem:[%s3938_s0 + $0x2e8] sm:$0xff] }
  0xf4   :  { %2300 = vmatpush3.msra.mxu1 %v3044_v55  ;;  %v3778_v63 = vadd.f32 %v1859_v58, %v1815_v25  ;;  %v1816_v28 = vpop.f32.mrf.mxu0  ;;  %1375 = vmatprep.mubr.f32.mxu1 %v1750_v7  ;;  %v1759_v55 = vld [vmem:[%s3938_s0 + $0x328] sm:$0xff] }
  0xf5   :  { %2301 = vmatprep.subr.mxu1 %v3051_v61  ;;  %1376 = vmatmul.mubr.f32.gmra.mxu1 %v1749_v62  ;;  %v1861_v30 = vpop.f32.mrf.mxu1 }
  0xf6   :  { %1460 = vmatprep.mubr.f32.mxu0 %v1752_v20  ;;  %v1817_v56 = vpop.f32.mrf.mxu0  ;;  %2302 = vmatpush3.msra.mxu1 %v3058_v41  ;;  %v1862_v14 = vadd.f32 %v1861_v30, %v1860_v22  ;;  %v1758_v41 = vld [vmem:[%s3938_s0 + $0x320] sm:$0xff] }
  0xf7   :  { %1380 = vmatprep.mubr.f32.mxu1 %v1757_v26  ;;  %v1818_v61 = vadd.f32 %v1817_v56, %v1816_v28  ;;  %2303 = vmatprep.subr.mxu1 %v3065_v0  ;;  %v1766_v0 = vld [vmem:[%s3938_s0 + $0x360] sm:$0xff] }
  0xf8   :  { %1461 = vmatmul.mubr.f32.gmra.mxu0 %v1751_v11  ;;  %2304 = vmatpush3.msra.mxu1 %v3072_v59  ;;  %v1763_v59 = vld [vmem:[%s3938_s0 + $0x348] sm:$0xff] }
  0xf9   :  { %1465 = vmatprep.mubr.f32.mxu0 %v1759_v55  ;;  %v3799_v43 = vadd.f32 %v1862_v14, %v1818_v61  ;;  %2305 = vmatprep.subr.mxu1 %v3079_v2  ;;  %v1765_v2 = vld [vmem:[%s3938_s0 + $0x358] sm:$0xff]  ;;  %v2345_v13 = vpop.f32.mrf.mxu1 }
  0xfa   :  { %1381 = vmatmul.mubr.f32.gmra.mxu1 %v1756_v32 }
  0xfb   :  { %2306 = vmatpush3.msra.mxu1 %v3086_v4  ;;  %1385 = vmatprep.mubr.f32.mxu1 %v1764_v36  ;;  %v2450_v4 = vld [vmem:[%s3937_s1 + $0x318] sm:$0xff]  ;;  %v476_v53 = vpop.f32.mrf.mxu1 }
  0xfc   :  { %2307 = vmatprep.subr.mxu1 %v3093_v6  ;;  %1466 = vmatmul.mubr.f32.gmra.mxu0 %v1758_v41  ;;  %v1747_v6 = vld [vmem:[%s3938_s0 + $0x2c8] sm:$0xff] }
  0xfd   :  { %2308 = vmatpush3.msra.mxu1 %v3100_v8  ;;  %1470 = vmatprep.mubr.f32.mxu0 %v1766_v0  ;;  %v1746_v8 = vld [vmem:[%s3938_s0 + $0x2c0] sm:$0xff] }
  0xfe   :  { %2309 = vmatprep.subr.mxu1 %v3107_v10  ;;  %1386 = vmatmul.mubr.f32.gmra.mxu1 %v1763_v59  ;;  %v2451_v10 = vld [vmem:[%s3937_s1 + $0x310] sm:$0xff] }
  0xff   :  { %2310 = vmatpush3.msra.mxu1 %v3114_v12  ;;  %2377 = vmatprep.subr.mxu0 %v2450_v4  ;;  %v1754_v12 = vld [vmem:[%s3938_s0 + $0x300] sm:$0xff] }
 0x100   :  { %2311 = vmatprep.subr.mxu1 %v4168_v31  ;;  %1471 = vmatmul.mubr.f32.gmra.mxu0 %v1765_v2  ;;  %v1748_v31 = vld [vmem:[%s3938_s0 + $0x2d0] sm:$0xff] }
 0x101   :  { %2312 = vmatpush3.msra.mxu1 %v4169_v34  ;;  %2378 = vmatpush3.msra.mxu0 %v2450_v4  ;;  %v2452_v34 = vld [vmem:[%s3937_s1 + $0x308] sm:$0xff] }
 0x102   :  { %2313 = vmatprep.subr.mxu1 %v4170_v40  ;;  %2379 = vmatprep.subr.mxu0 %v2451_v10  ;;  %v1753_v40 = vld [vmem:[%s3938_s0 + $0x2f8] sm:$0xff] }
 0x103   :  { %2314 = vmatpush3.msra.mxu1 %v4171_v51  ;;  %1540 = vmatprep.mubr.f32.mxu1 %v1747_v6  ;;  %v1755_v51 = vld [vmem:[%s3938_s0 + $0x308] sm:$0xff] }
 0x104   :  { %2380 = vmatpush3.msra.mxu0 %v2451_v10  ;;  %1541 = vmatmul.mubr.f32.vlgmr.msra.gmra.mxu1 %v1746_v8 }
 0x105   :  { %2381 = vmatprep.subr.mxu0 %v2452_v34  ;;  %1545 = vmatprep.mubr.f32.mxu1 %v1754_v12 }
 0x106   :  { %2382 = vmatpush3.msra.mxu0 %v2452_v34  ;;  %2385 = vmatprep.mubr.msk.f32.mxu0 %vm142_vm0, %v1748_v31 }
 0x107   :  { %2383 = vmatprep.subr.mxu0 %v2453_v5 }
 0x108   :  { %2384 = vmatpush3.msra.mxu0 %v2453_v5  ;;  %1546 = vmatmul.mubr.f32.gmra.mxu1 %v1753_v40 }
 0x109   :  { %2386 = vmatmul.mubr.msk.f32.vlgmr.msra.gmra.mxu0 %vm142_vm0, %v1755_v51  ;;  %1550 = vmatprep.mubr.f32.mxu1 %v1761_v38  ;;  %v1895_v50 = vpop.f32.mrf.mxu0 }
 0x10a   :  { %2388 = vmatprep.mubr.msk.f32.mxu0 %vm142_vm0, %v1762_v42 }
 0x10b   :  { %v1896_v57 = vpop.f32.mrf.mxu0 }
 0x10c   :  { %1551 = vmatmul.mubr.f32.gmra.mxu1 %v1760_v49  ;;  %v1897_v60 = vadd.f32 %v1896_v57, %v1895_v50 }
 0x10d   :  { %1555 = vmatprep.mubr.f32.mxu1 %v1768_v9  ;;  %2389 = vmatmul.mubr.msk.f32.gmra.mxu0 %vm142_vm0, %v1769_v39 }
 0x10e   :  { %v392_v15 = vadd.f32 %v1897_v60, %v3722_v45 }
 0x10f   :  { %v1898_v17 = vpop.f32.mrf.mxu0 }
 0x110   :  { %1556 = vmatmul.mubr.f32.gmra.mxu1 %v1767_v52  ;;  %v3873_v47 = vadd.f32 %v476_v53, %v392_v15 }
 0x111   :  { %v1899_v24 = vpop.f32.mrf.mxu0 }
 0x112   :  { %v1900_v19 = vadd.f32 %v1899_v24, %v1898_v17 }
 0x114   :  { %v397_v46 = vadd.f32 %v1900_v19, %v3744_v27  ;;  %v1901_v21 = vpop.f32.mrf.mxu0 }
 0x116   :  { %v3876_v23 = vadd.f32 %v2345_v13, %v397_v46  ;;  %v1902_v54 = vpop.f32.mrf.mxu0  ;;  %v2348_v29 = vpop.f32.mrf.mxu1 }
 0x117   :  { %v1903_v1 = vadd.f32 %v1902_v54, %v1901_v21 }
 0x118   :  { %v486_v3 = vpop.f32.mrf.mxu1 }
 0x119   :  { %v402_v33 = vadd.f32 %v1903_v1, %v3778_v63 }
 0x11a   :  { %v1904_v16 = vpop.f32.mrf.mxu0 }
 0x11b   :  { %v3879_v45 = vadd.f32 %v486_v3, %v402_v33 }
 0x11c   :  { %v1905_v35 = vpop.f32.mrf.mxu0 }
 0x11d   :  { %v1906_v18 = vadd.f32 %v1905_v35, %v1904_v16  ;;  %v1947_v37 = vpop.f32.mrf.mxu1 }
 0x11f   :  { %v407_v44 = vadd.f32 %v1906_v18, %v3799_v43  ;;  %v1948_v48 = vpop.f32.mrf.mxu1 }
 0x120   :  { %v1949_v27 = vadd.f32 %v1948_v48, %v1947_v37 }
 0x121   :  { %v3882_v7 = vadd.f32 %v2348_v29, %v407_v44 }
 0x123   :  { %4172 = vst [vmem:[#allocation16_spill] sm:$0xff] %v3882_v7 }
 0x12f   :  { %v1991_v25 = vpop.f32.mrf.mxu0 }
 0x131   :  { %v1950_v58 = vpop.f32.mrf.mxu1  ;;  %v1992_v62 = vpop.f32.mrf.mxu0 }
 0x132   :  { %v1993_v20 = vadd.f32 %v1992_v62, %v1991_v25 }
 0x133   :  { %v1951_v26 = vpop.f32.mrf.mxu1 }
 0x134   :  { %v1994_v28 = vpop.f32.mrf.mxu0  ;;  %v688_v63 = vadd.f32 %v1993_v20, %v1949_v27  ;;  %v1952_v22 = vadd.f32 %v1951_v26, %v1950_v58 }
 0x136   :  { %v1953_v11 = vpop.f32.mrf.mxu1  ;;  %v1995_v55 = vpop.f32.mrf.mxu0 }
 0x137   :  { %v1996_v12 = vadd.f32 %v1995_v55, %v1994_v28 }
 0x138   :  { %v1954_v56 = vpop.f32.mrf.mxu1  ;;  %v1997_v30 = vpop.f32.mrf.mxu0 }
 0x139   :  { %v1955_v32 = vadd.f32 %v1954_v56, %v1953_v11  ;;  %v693_v38 = vadd.f32 %v1996_v12, %v1952_v22 }
 0x13a   :  { %v1998_v61 = vpop.f32.mrf.mxu0 }
 0x13b   :  { %v1956_v14 = vpop.f32.mrf.mxu1  ;;  %v1999_v42 = vadd.f32 %v1998_v61, %v1997_v30 }
 0x13d   :  { %v1957_v36 = vpop.f32.mrf.mxu1  ;;  %v698_v13 = vadd.f32 %v1999_v42, %v1955_v32 }
 0x13e   :  { %v1958_v41 = vadd.f32 %v1957_v36, %v1956_v14  ;;  %v2000_v43 = vpop.f32.mrf.mxu0 }
 0x140   :  { %v2001_v0 = vpop.f32.mrf.mxu0 }
 0x141   :  { %v2002_v52 = vadd.f32 %v2001_v0, %v2000_v43 }
 0x142   :  { %v2035_v59 = vpop.f32.mrf.mxu1 }
 0x143   :  { %v703_v46 = vadd.f32 %v2002_v52, %v1958_v41 }
 0x144   :  { %v2036_v2 = vpop.f32.mrf.mxu1  ;;  %v2359_v4 = vpop.f32.mrf.mxu0 }
 0x145   :  { %v2037_v6 = vadd.f32 %v2036_v2, %v2035_v59 }
 0x146   :  { %v857_v8 = vpop.f32.mrf.mxu0 }
 0x147   :  { %v773_v10 = vadd.f32 %v2037_v6, %v688_v63 }
 0x148   :  { %v2038_v31 = vpop.f32.mrf.mxu1 }
 0x149   :  { %v3884_v34 = vadd.f32 %v857_v8, %v773_v10 }
 0x14a   :  { %v2039_v40 = vpop.f32.mrf.mxu1 }
 0x14b   :  { %v2040_v5 = vadd.f32 %v2039_v40, %v2038_v31 }
 0x14d   :  { %v778_v49 = vadd.f32 %v2040_v5, %v693_v38  ;;  %v2041_v9 = vpop.f32.mrf.mxu1 }
 0x14f   :  { %v3888_v39 = vadd.f32 %v2359_v4, %v778_v49  ;;  %v2042_v50 = vpop.f32.mrf.mxu1 }
 0x150   :  { %v2043_v57 = vadd.f32 %v2042_v50, %v2041_v9 }
 0x152   :  { %v2362_v17 = vpop.f32.mrf.mxu0  ;;  %v783_v53 = vadd.f32 %v2043_v57, %v698_v13 }
 0x153   :  { %v2044_v15 = vpop.f32.mrf.mxu1 }
 0x154   :  { %v867_v19 = vpop.f32.mrf.mxu0 }
 0x155   :  { %v2045_v24 = vpop.f32.mrf.mxu1  ;;  %v3892_v54 = vadd.f32 %v867_v19, %v783_v53 }
 0x156   :  { %v2046_v21 = vadd.f32 %v2045_v24, %v2044_v15 }
 0x158   :  { %v788_v1 = vadd.f32 %v2046_v21, %v703_v46 }
 0x15a   :  { %v3896_v33 = vadd.f32 %v2362_v17, %v788_v1 }
 0x15c   :  { %4173 = vst [vmem:[#allocation17_spill] sm:$0xff] %v3896_v33 }
 0x168   :  { %v2087_v3 = vpop.f32.mrf.mxu0 }
 0x169   :  { %v2131_v37 = vpop.f32.mrf.mxu1 }
 0x16a   :  { %v2088_v35 = vpop.f32.mrf.mxu0 }
 0x16b   :  { %v2132_v48 = vpop.f32.mrf.mxu1  ;;  %v2089_v9 = vadd.f32 %v2088_v35, %v2087_v3 }
 0x16c   :  { %v2133_v50 = vadd.f32 %v2132_v48, %v2131_v37 }
 0x16d   :  { %v2134_v25 = vpop.f32.mrf.mxu1 }
 0x16e   :  { %v2090_v18 = vpop.f32.mrf.mxu0  ;;  %v1073_v53 = vadd.f32 %v2133_v50, %v2089_v9 }
 0x16f   :  { %v2135_v62 = vpop.f32.mrf.mxu1 }
 0x170   :  { %v2091_v44 = vpop.f32.mrf.mxu0  ;;  %v2136_v15 = vadd.f32 %v2135_v62, %v2134_v25 }
 0x171   :  { %v2092_v52 = vadd.f32 %v2091_v44, %v2090_v18 }
 0x172   :  { %v2137_v26 = vpop.f32.mrf.mxu1 }
 0x173   :  { %v2093_v27 = vpop.f32.mrf.mxu0  ;;  %v1078_v1 = vadd.f32 %v2136_v15, %v2092_v52 }
 0x174   :  { %v2138_v63 = vpop.f32.mrf.mxu1 }
 0x175   :  { %v2094_v58 = vpop.f32.mrf.mxu0  ;;  %v2139_v29 = vadd.f32 %v2138_v63, %v2137_v26 }
 0x176   :  { %v2095_v16 = vadd.f32 %v2094_v58, %v2093_v27 }
 0x177   :  { %v2140_v11 = vpop.f32.mrf.mxu1 }
 0x178   :  { %v2096_v20 = vpop.f32.mrf.mxu0  ;;  %v1083_v44 = vadd.f32 %v2139_v29, %v2095_v16 }
 0x179   :  { %v2141_v56 = vpop.f32.mrf.mxu1 }
 0x17a   :  { %v2097_v28 = vpop.f32.mrf.mxu0  ;;  %v2142_v62 = vadd.f32 %v2141_v56, %v2140_v11  ;;  %v4176_v56 = vmax.f32 %v3876_v23, %v3888_v39  ;;  %v4177_v23 = vmax.f32 %v3879_v45, %v3892_v54 }
 0x17b   :  { %v2098_v25 = vadd.f32 %v2097_v28, %v2096_v20 }
 0x17d   :  { %v2373_v32 = vpop.f32.mrf.mxu1 }
 0x17f   :  { %v1242_v14 = vpop.f32.mrf.mxu1 }
 0x18d   :  { %v2175_v22 = vpop.f32.mrf.mxu0 }
 0x18f   :  { %v2176_v55 = vpop.f32.mrf.mxu0 }
 0x190   :  { %v2177_v17 = vadd.f32 %v2176_v55, %v2175_v22 }
 0x192   :  { %v1158_v60 = vadd.f32 %v2177_v17, %v1073_v53 }
 0x193   :  { %v2178_v30 = vpop.f32.mrf.mxu0 }
 0x194   :  { %v1243_v22 = vadd.f32 %v1242_v14, %v1158_v60 }
 0x195   :  { %v2179_v61 = vpop.f32.mrf.mxu0 }
 0x196   :  { %v2180_v24 = vadd.f32 %v2179_v61, %v2178_v30 }
 0x198   :  { %v2181_v36 = vpop.f32.mrf.mxu0  ;;  %v1163_v7 = vadd.f32 %v2180_v24, %v1078_v1 }
 0x19a   :  { %v2182_v43 = vpop.f32.mrf.mxu0  ;;  %v1248_v27 = vadd.f32 %v2373_v32, %v1163_v7  ;;  %v1774_v7 = vld [vmem:[%s3939_s2] ss:$0 sm:$0xff] }
 0x19c   :  { %v3900_v41 = vpop.f32.mrf.mxu1  ;;  %v1262_v32 = vmax.f32 %v4176_v56, %v1248_v27 }
 0x19d   :  { %4174 = vst [vmem:[#allocation18_spill] sm:$0xff] %v3900_v41  ;;  %v2183_v41 = vadd.f32 %v2182_v43, %v2181_v36 }
 0x19e   :  { %v3902_v0 = vpop.f32.mrf.mxu1  ;;  %v2184_v59 = vpop.f32.mrf.mxu0 }
 0x19f   :  { %v1168_v58 = vadd.f32 %v2183_v41, %v1083_v44 }
 0x1a0   :  { %v2185_v4 = vpop.f32.mrf.mxu0 }
 0x1a1   :  { %v2227_v2 = vpop.f32.mrf.mxu1  ;;  %v2186_v26 = vadd.f32 %v2185_v4, %v2184_v59  ;;  %v1253_v14 = vadd.f32 %v3902_v0, %v1168_v58 }
 0x1a3   :  { %v2228_v6 = vpop.f32.mrf.mxu1  ;;  %v1263_v39 = vmax.f32 %v4177_v23, %v1253_v14 }
 0x1a4   :  { %v2229_v33 = vadd.f32 %v2228_v6, %v2227_v2  ;;  %v4178_v9 = vld [vmem:[#allocation18_spill] sm:$0xff] }
 0x1b3   :  { %v2271_v8 = vpop.f32.mrf.mxu0 }
 0x1b5   :  { %v2230_v10 = vpop.f32.mrf.mxu1  ;;  %v2272_v12 = vpop.f32.mrf.mxu0 }
 0x1b6   :  { %v2273_v46 = vadd.f32 %v2272_v12, %v2271_v8 }
 0x1b7   :  { %v2231_v31 = vpop.f32.mrf.mxu1 }
 0x1b8   :  { %v2274_v40 = vpop.f32.mrf.mxu0  ;;  %v1458_v35 = vadd.f32 %v2273_v46, %v2229_v33  ;;  %v2232_v30 = vadd.f32 %v2231_v31, %v2230_v10  ;;  %v1088_v33 = vadd.f32 %v2142_v62, %v2098_v25  ;;  %v4179_v46 = vld [vmem:[#allocation16_spill] sm:$0xff] }
 0x1ba   :  { %v2233_v38 = vpop.f32.mrf.mxu1  ;;  %v2275_v5 = vpop.f32.mrf.mxu0  ;;  %v1173_v41 = vadd.f32 %v2186_v26, %v1088_v33 }
 0x1bb   :  { %v2276_v37 = vadd.f32 %v2275_v5, %v2274_v40 }
 0x1bc   :  { %v2234_v42 = vpop.f32.mrf.mxu1  ;;  %v2277_v49 = vpop.f32.mrf.mxu0  ;;  %v1258_v0 = vadd.f32 %v4178_v9, %v1173_v41 }
 0x1bd   :  { %v1463_v2 = vadd.f32 %v2276_v37, %v2232_v30  ;;  %v2235_v60 = vadd.f32 %v2234_v42, %v2233_v38 }
 0x1be   :  { %v2236_v13 = vpop.f32.mrf.mxu1  ;;  %v2278_v57 = vpop.f32.mrf.mxu0 }
 0x1bf   :  { %v2279_v6 = vadd.f32 %v2278_v57, %v2277_v49 }
 0x1c0   :  { %v2237_v19 = vpop.f32.mrf.mxu1  ;;  %v2280_v21 = vpop.f32.mrf.mxu0 }
 0x1c1   :  { %v2238_v5 = vadd.f32 %v2237_v19, %v2236_v13 }
 0x1c2   :  { %v2281_v48 = vpop.f32.mrf.mxu0 }
 0x1c4   :  { %v2315_v51 = vpop.f32.mrf.mxu1 }
 0x1c6   :  { %v2316_v3 = vpop.f32.mrf.mxu1 }
 0x1c7   :  { %v2317_v18 = vadd.f32 %v2316_v3, %v2315_v51  ;;  %v4175_v51 = vmax.f32 %v3873_v47, %v3884_v34  ;;  %v1468_v47 = vadd.f32 %v2279_v6, %v2235_v60  ;;  %v2282_v34 = vadd.f32 %v2281_v48, %v2280_v21  ;;  %v4180_v21 = vld [vmem:[#allocation17_spill] sm:$0xff] }
 0x1c8   :  { %v2318_v55 = vpop.f32.mrf.mxu1  ;;  %v4181_v45 = vmax.f32 %v4179_v46, %v4180_v21 }
 0x1c9   :  { %v2387_v61 = vpop.f32.mrf.mxu0  ;;  %v1543_v8 = vadd.f32 %v2317_v18, %v1458_v35  ;;  %v1261_v29 = vmax.f32 %v4175_v51, %v1243_v22  ;;  %v1473_v52 = vadd.f32 %v2282_v34, %v2238_v5 }
 0x1ca   :  { %v2319_v63 = vpop.f32.mrf.mxu1  ;;  %v1264_v54 = vmax.f32 %v4181_v45, %v1258_v0 }
 0x1cb   :  { %v2320_v36 = vadd.f32 %v2319_v63, %v2318_v55  ;;  %v1627_v43 = vpop.f32.mrf.mxu0 }
 0x1cc   :  { %v1628_v16 = vadd.f32 %v1627_v43, %v1543_v8  ;;  %v2321_v20 = vpop.f32.mrf.mxu1 }
 0x1cd   :  { %v1548_v28 = vadd.f32 %v2320_v36, %v1463_v2  ;;  %v2390_v11 = vpop.f32.mrf.mxu0 }
 0x1ce   :  { %v1646_v59 = vmax.f32 %v1261_v29, %v1628_v16  ;;  %v2322_v4 = vpop.f32.mrf.mxu1 }
 0x1cf   :  { %v1633_v10 = vadd.f32 %v2387_v61, %v1548_v28  ;;  %v2323_v12 = vadd.f32 %v2322_v4, %v2321_v20  ;;  %v1637_v38 = vpop.f32.mrf.mxu0 }
 0x1d0   :  { %v1657_v31 = vadd.f32 %v1774_v7, %v1646_v59  ;;  %v2324_v40 = vpop.f32.mrf.mxu1 }
 0x1d1   :  { %v1647_v42 = vmax.f32 %v1262_v32, %v1633_v10  ;;  %v1553_v49 = vadd.f32 %v2323_v12, %v1468_v47 }
 0x1d2   :  { %v1661_v50 = vmax.f32 %v1657_v31, 0.0  ;;  %v2325_v57 = vpop.f32.mrf.mxu1 }
 0x1d3   :  { %v1658_v15 = vadd.f32 %v1774_v7, %v1647_v42  ;;  %v2326_v17 = vadd.f32 %v2325_v57, %v2324_v40  ;;  %v1638_v53 = vadd.f32 %v1637_v38, %v1553_v49 }
 0x1d4   :  { %1666 = vst.msk [vmem:[%s3940_s3] sm:$0xff] %vm1665_vm1, %v1661_v50 }
 0x1d5   :  { %v1662_v13 = vmax.f32 %v1658_v15, 0.0  ;;  %v1558_v24 = vadd.f32 %v2326_v17, %v1473_v52  ;;  %v1648_v19 = vmax.f32 %v1263_v39, %v1638_v53 }
 0x1d7   :  { %1667 = vst.msk [vmem:[%s3940_s3 + $0x8] sm:$0xff] %vm1665_vm1, %v1662_v13  ;;  %v1643_v1 = vadd.f32 %v2390_v11, %v1558_v24  ;;  %v1659_v3 = vadd.f32 %v1774_v7, %v1648_v19 }
 0x1d9   :  { %v1649_v35 = vmax.f32 %v1264_v54, %v1643_v1  ;;  %v1663_v37 = vmax.f32 %v1659_v3, 0.0 }
 0x1db   :  { %v1660_v48 = vadd.f32 %v1774_v7, %v1649_v35  ;;  %1668 = vst.msk [vmem:[%s3940_s3 + $0x10] sm:$0xff] %vm1665_vm1, %v1663_v37 }
 0x1dd   :  { %v1664_v18 = vmax.f32 %v1660_v48, 0.0 }
 0x1df   :  { %1669 = vst.msk [vmem:[%s3940_s3 + $0x18] sm:$0xff] %vm1665_vm1, %v1664_v18 }

// kernel: cnn_simple_forward.5
= control target key start
LH: loop header
LB: loop body
LE: loop exit
PB: predicated region body
PF: predicated region fallthrough
CT: control target
= control target key end

     0   :  { %s3324_s0 = inlined_call_operand.vmem [shape: f32[2,1024], index: 0, kind: input, shape index: {}]   ;;  %s3325_s1 = inlined_call_operand.vmem [shape: f32[1024,512], index: 1, kind: input, shape index: {}]   ;;  %s3326_s2 = inlined_call_operand.vmem [shape: f32[1,512], index: 2, kind: input, shape index: {}]   ;;  %s3327_s3 = inlined_call_operand.vmem [shape: f32[512,128], index: 3, kind: input, shape index: {}]   ;;  %s3328_s4 = inlined_call_operand.vmem [shape: f32[1,128], index: 4, kind: input, shape index: {}]   ;;  %s3329_s5 = inlined_call_operand.hbm [shape: f32[2,128], index: 5, kind: output, shape index: {}]  }
   0x1   :  { %v84_v0 = vld [vmem:[%s3325_s1 + $0x1e8] sm:$0xff]  ;;  %v83_v2 = vld [vmem:[%s3325_s1 + $0x1e0] sm:$0xff] }
   0x2   :  { %v212_v1 = vld [vmem:[%s3325_s1 + $0x5e8] sm:$0xff]  ;;  %601 = vmatprep.subr.mxu0 %v84_v0  ;;  %v211_v3 = vld [vmem:[%s3325_s1 + $0x5e0] sm:$0xff] }
   0x3   :  { %672 = vmatprep.subr.mxu1 %v212_v1  ;;  %v80_v4 = vld [vmem:[%s3325_s1 + $0x1c8] sm:$0xff]  ;;  %602 = vmatpush1.msra.mxu0 %v83_v2  ;;  %v79_v6 = vld [vmem:[%s3325_s1 + $0x1c0] sm:$0xff] }
   0x4   :  { %v208_v5 = vld [vmem:[%s3325_s1 + $0x5c8] sm:$0xff]  ;;  %673 = vmatpush1.msra.mxu1 %v211_v3  ;;  %v207_v7 = vld [vmem:[%s3325_s1 + $0x5c0] sm:$0xff]  ;;  %603 = vmatprep.subr.mxu0 %v80_v4 }
   0x5   :  { %v76_v8 = vld [vmem:[%s3325_s1 + $0x1a8] sm:$0xff]  ;;  %674 = vmatprep.subr.mxu1 %v208_v5  ;;  %v75_v10 = vld [vmem:[%s3325_s1 + $0x1a0] sm:$0xff]  ;;  %604 = vmatpush1.msra.mxu0 %v79_v6 }
   0x6   :  { %v204_v9 = vld [vmem:[%s3325_s1 + $0x5a8] sm:$0xff]  ;;  %v203_v11 = vld [vmem:[%s3325_s1 + $0x5a0] sm:$0xff]  ;;  %675 = vmatpush1.msra.mxu1 %v207_v7  ;;  %605 = vmatprep.subr.mxu0 %v76_v8 }
   0x7   :  { %v72_v12 = vld [vmem:[%s3325_s1 + $0x188] sm:$0xff]  ;;  %676 = vmatprep.subr.mxu1 %v204_v9  ;;  %v71_v14 = vld [vmem:[%s3325_s1 + $0x180] sm:$0xff]  ;;  %606 = vmatpush1.msra.mxu0 %v75_v10 }
   0x8   :  { %v200_v13 = vld [vmem:[%s3325_s1 + $0x588] sm:$0xff]  ;;  %v199_v15 = vld [vmem:[%s3325_s1 + $0x580] sm:$0xff]  ;;  %677 = vmatpush1.msra.mxu1 %v203_v11  ;;  %607 = vmatprep.subr.mxu0 %v72_v12 }
   0x9   :  { %v68_v16 = vld [vmem:[%s3325_s1 + $0x168] sm:$0xff]  ;;  %678 = vmatprep.subr.mxu1 %v200_v13  ;;  %v67_v18 = vld [vmem:[%s3325_s1 + $0x160] sm:$0xff]  ;;  %608 = vmatpush1.msra.mxu0 %v71_v14 }
   0xa   :  { %v196_v17 = vld [vmem:[%s3325_s1 + $0x568] sm:$0xff]  ;;  %v195_v19 = vld [vmem:[%s3325_s1 + $0x560] sm:$0xff]  ;;  %679 = vmatpush1.msra.mxu1 %v199_v15  ;;  %609 = vmatprep.subr.mxu0 %v68_v16 }
   0xb   :  { %v64_v20 = vld [vmem:[%s3325_s1 + $0x148] sm:$0xff]  ;;  %680 = vmatprep.subr.mxu1 %v196_v17  ;;  %v63_v22 = vld [vmem:[%s3325_s1 + $0x140] sm:$0xff]  ;;  %610 = vmatpush1.msra.mxu0 %v67_v18 }
   0xc   :  { %v192_v21 = vld [vmem:[%s3325_s1 + $0x548] sm:$0xff]  ;;  %v191_v23 = vld [vmem:[%s3325_s1 + $0x540] sm:$0xff]  ;;  %681 = vmatpush1.msra.mxu1 %v195_v19  ;;  %611 = vmatprep.subr.mxu0 %v64_v20 }
   0xd   :  { %v60_v24 = vld [vmem:[%s3325_s1 + $0x128] sm:$0xff]  ;;  %682 = vmatprep.subr.mxu1 %v192_v21  ;;  %v59_v26 = vld [vmem:[%s3325_s1 + $0x120] sm:$0xff]  ;;  %612 = vmatpush1.msra.mxu0 %v63_v22 }
   0xe   :  { %v188_v25 = vld [vmem:[%s3325_s1 + $0x528] sm:$0xff]  ;;  %v187_v27 = vld [vmem:[%s3325_s1 + $0x520] sm:$0xff]  ;;  %683 = vmatpush1.msra.mxu1 %v191_v23  ;;  %613 = vmatprep.subr.mxu0 %v60_v24 }
   0xf   :  { %v56_v28 = vld [vmem:[%s3325_s1 + $0x108] sm:$0xff]  ;;  %684 = vmatprep.subr.mxu1 %v188_v25  ;;  %v55_v30 = vld [vmem:[%s3325_s1 + $0x100] sm:$0xff]  ;;  %614 = vmatpush1.msra.mxu0 %v59_v26 }
  0x10   :  { %v184_v29 = vld [vmem:[%s3325_s1 + $0x508] sm:$0xff]  ;;  %v183_v31 = vld [vmem:[%s3325_s1 + $0x500] sm:$0xff]  ;;  %685 = vmatpush1.msra.mxu1 %v187_v27  ;;  %615 = vmatprep.subr.mxu0 %v56_v28 }
  0x11   :  { %v52_v32 = vld [vmem:[%s3325_s1 + $0xe8] sm:$0xff]  ;;  %686 = vmatprep.subr.mxu1 %v184_v29  ;;  %v51_v34 = vld [vmem:[%s3325_s1 + $0xe0] sm:$0xff]  ;;  %616 = vmatpush1.msra.mxu0 %v55_v30  ;;  %v537_v30 = vlaneseq }
  0x12   :  { %v180_v33 = vld [vmem:[%s3325_s1 + $0x4e8] sm:$0xff]  ;;  %v179_v35 = vld [vmem:[%s3325_s1 + $0x4e0] sm:$0xff]  ;;  %687 = vmatpush1.msra.mxu1 %v183_v31  ;;  %617 = vmatprep.subr.mxu0 %v52_v32  ;;  %v1496_v31 = vmov 1983009808  }
  0x13   :  { %v48_v36 = vld [vmem:[%s3325_s1 + $0xc8] sm:$0xff]  ;;  %688 = vmatprep.subr.mxu1 %v180_v33  ;;  %v47_v38 = vld [vmem:[%s3325_s1 + $0xc0] sm:$0xff]  ;;  %618 = vmatpush1.msra.mxu0 %v51_v34  ;;  %v561_v32 = vunpack.c.l.s4 %v1496_v31 }
  0x14   :  { %v176_v37 = vld [vmem:[%s3325_s1 + $0x4c8] sm:$0xff]  ;;  %v175_v39 = vld [vmem:[%s3325_s1 + $0x4c0] sm:$0xff]  ;;  %689 = vmatpush1.msra.mxu1 %v179_v35  ;;  %619 = vmatprep.subr.mxu0 %v48_v36 }
  0x15   :  { %v44_v40 = vld [vmem:[%s3325_s1 + $0xa8] sm:$0xff]  ;;  %690 = vmatprep.subr.mxu1 %v176_v37  ;;  %v43_v42 = vld [vmem:[%s3325_s1 + $0xa0] sm:$0xff]  ;;  %620 = vmatpush1.msra.mxu0 %v47_v38 }
  0x16   :  { %v172_v41 = vld [vmem:[%s3325_s1 + $0x4a8] sm:$0xff]  ;;  %v171_v43 = vld [vmem:[%s3325_s1 + $0x4a0] sm:$0xff]  ;;  %691 = vmatpush1.msra.mxu1 %v175_v39  ;;  %621 = vmatprep.subr.mxu0 %v44_v40 }
  0x17   :  { %v40_v44 = vld [vmem:[%s3325_s1 + $0x88] sm:$0xff]  ;;  %692 = vmatprep.subr.mxu1 %v172_v41  ;;  %v39_v46 = vld [vmem:[%s3325_s1 + $0x80] sm:$0xff]  ;;  %622 = vmatpush1.msra.mxu0 %v43_v42  ;;  %v1834_v41 = vshrl.u32 %v537_v30, 7  ;;  %v562_v42 = vunpack.c.0.s8 %v561_v32 }
  0x18   :  { %v168_v45 = vld [vmem:[%s3325_s1 + $0x488] sm:$0xff]  ;;  %v167_v47 = vld [vmem:[%s3325_s1 + $0x480] sm:$0xff]  ;;  %693 = vmatpush1.msra.mxu1 %v171_v43  ;;  %623 = vmatprep.subr.mxu0 %v40_v44 }
  0x19   :  { %v36_v48 = vld [vmem:[%s3325_s1 + $0x68] sm:$0xff]  ;;  %694 = vmatprep.subr.mxu1 %v168_v45  ;;  %v35_v50 = vld [vmem:[%s3325_s1 + $0x60] sm:$0xff]  ;;  %624 = vmatpush1.msra.mxu0 %v39_v46 }
  0x1a   :  { %v164_v49 = vld [vmem:[%s3325_s1 + $0x468] sm:$0xff]  ;;  %v163_v51 = vld [vmem:[%s3325_s1 + $0x460] sm:$0xff]  ;;  %695 = vmatpush1.msra.mxu1 %v167_v47  ;;  %625 = vmatprep.subr.mxu0 %v36_v48 }
  0x1b   :  { %v32_v52 = vld [vmem:[%s3325_s1 + $0x48] sm:$0xff]  ;;  %696 = vmatprep.subr.mxu1 %v164_v49  ;;  %v31_v54 = vld [vmem:[%s3325_s1 + $0x40] sm:$0xff]  ;;  %626 = vmatpush1.msra.mxu0 %v35_v50 }
  0x1c   :  { %v160_v53 = vld [vmem:[%s3325_s1 + $0x448] sm:$0xff]  ;;  %v159_v55 = vld [vmem:[%s3325_s1 + $0x440] sm:$0xff]  ;;  %697 = vmatpush1.msra.mxu1 %v163_v51  ;;  %627 = vmatprep.subr.mxu0 %v32_v52  ;;  %v1864_v52 = vsub.s32 %v562_v42, %v1834_v41 }
  0x1d   :  { %v28_v56 = vld [vmem:[%s3325_s1 + $0x28] sm:$0xff]  ;;  %698 = vmatprep.subr.mxu1 %v160_v53  ;;  %v27_v58 = vld [vmem:[%s3325_s1 + $0x20] sm:$0xff]  ;;  %628 = vmatpush1.msra.mxu0 %v31_v54 }
  0x1e   :  { %v156_v57 = vld [vmem:[%s3325_s1 + $0x428] sm:$0xff]  ;;  %v155_v59 = vld [vmem:[%s3325_s1 + $0x420] sm:$0xff]  ;;  %699 = vmatpush1.msra.mxu1 %v159_v55  ;;  %629 = vmatprep.subr.mxu0 %v28_v56 }
  0x1f   :  { %v24_v60 = vld [vmem:[%s3325_s1 + $0x8] sm:$0xff]  ;;  %700 = vmatprep.subr.mxu1 %v156_v57  ;;  %v23_v62 = vld [vmem:[%s3325_s1] sm:$0xff]  ;;  %630 = vmatpush1.msra.mxu0 %v27_v58 }
  0x20   :  { %v152_v61 = vld [vmem:[%s3325_s1 + $0x408] sm:$0xff]  ;;  %v151_v63 = vld [vmem:[%s3325_s1 + $0x400] sm:$0xff]  ;;  %701 = vmatpush1.msra.mxu1 %v155_v59  ;;  %631 = vmatprep.subr.mxu0 %v24_v60 }
  0x21   :  { %v148_v0 = vld [vmem:[%s3325_s1 + $0x3e8] sm:$0xff]  ;;  %702 = vmatprep.subr.mxu1 %v152_v61  ;;  %v147_v2 = vld [vmem:[%s3325_s1 + $0x3e0] sm:$0xff]  ;;  %632 = vmatpush1.msra.mxu0 %v23_v62 }
  0x22   :  { %v276_v1 = vld [vmem:[%s3325_s1 + $0x7e8] sm:$0xff]  ;;  %v275_v3 = vld [vmem:[%s3325_s1 + $0x7e0] sm:$0xff]  ;;  %703 = vmatpush1.msra.mxu1 %v151_v63  ;;  %633 = vmatprep.subr.mxu0 %v148_v0 }
  0x23   :  { %v144_v4 = vld [vmem:[%s3325_s1 + $0x3c8] sm:$0xff]  ;;  %704 = vmatprep.subr.mxu1 %v276_v1  ;;  %v143_v6 = vld [vmem:[%s3325_s1 + $0x3c0] sm:$0xff]  ;;  %634 = vmatpush2.msra.mxu0 %v147_v2 }
  0x24   :  { %v272_v5 = vld [vmem:[%s3325_s1 + $0x7c8] sm:$0xff]  ;;  %v271_v7 = vld [vmem:[%s3325_s1 + $0x7c0] sm:$0xff]  ;;  %705 = vmatpush2.msra.mxu1 %v275_v3  ;;  %635 = vmatprep.subr.mxu0 %v144_v4 }
  0x25   :  { %v140_v8 = vld [vmem:[%s3325_s1 + $0x3a8] sm:$0xff]  ;;  %706 = vmatprep.subr.mxu1 %v272_v5  ;;  %v139_v10 = vld [vmem:[%s3325_s1 + $0x3a0] sm:$0xff]  ;;  %636 = vmatpush2.msra.mxu0 %v143_v6 }
  0x26   :  { %v268_v9 = vld [vmem:[%s3325_s1 + $0x7a8] sm:$0xff]  ;;  %v267_v11 = vld [vmem:[%s3325_s1 + $0x7a0] sm:$0xff]  ;;  %707 = vmatpush2.msra.mxu1 %v271_v7  ;;  %637 = vmatprep.subr.mxu0 %v140_v8 }
  0x27   :  { %v136_v12 = vld [vmem:[%s3325_s1 + $0x388] sm:$0xff]  ;;  %708 = vmatprep.subr.mxu1 %v268_v9  ;;  %v135_v14 = vld [vmem:[%s3325_s1 + $0x380] sm:$0xff]  ;;  %638 = vmatpush2.msra.mxu0 %v139_v10 }
  0x28   :  { %v264_v13 = vld [vmem:[%s3325_s1 + $0x788] sm:$0xff]  ;;  %v263_v15 = vld [vmem:[%s3325_s1 + $0x780] sm:$0xff]  ;;  %709 = vmatpush2.msra.mxu1 %v267_v11  ;;  %639 = vmatprep.subr.mxu0 %v136_v12 }
  0x29   :  { %v132_v16 = vld [vmem:[%s3325_s1 + $0x368] sm:$0xff]  ;;  %710 = vmatprep.subr.mxu1 %v264_v13  ;;  %v131_v18 = vld [vmem:[%s3325_s1 + $0x360] sm:$0xff]  ;;  %640 = vmatpush2.msra.mxu0 %v135_v14 }
  0x2a   :  { %v260_v17 = vld [vmem:[%s3325_s1 + $0x768] sm:$0xff]  ;;  %v259_v19 = vld [vmem:[%s3325_s1 + $0x760] sm:$0xff]  ;;  %711 = vmatpush2.msra.mxu1 %v263_v15  ;;  %641 = vmatprep.subr.mxu0 %v132_v16 }
  0x2b   :  { %v128_v20 = vld [vmem:[%s3325_s1 + $0x348] sm:$0xff]  ;;  %712 = vmatprep.subr.mxu1 %v260_v17  ;;  %v127_v22 = vld [vmem:[%s3325_s1 + $0x340] sm:$0xff]  ;;  %642 = vmatpush2.msra.mxu0 %v131_v18 }
  0x2c   :  { %v256_v21 = vld [vmem:[%s3325_s1 + $0x748] sm:$0xff]  ;;  %v255_v23 = vld [vmem:[%s3325_s1 + $0x740] sm:$0xff]  ;;  %713 = vmatpush2.msra.mxu1 %v259_v19  ;;  %643 = vmatprep.subr.mxu0 %v128_v20 }
  0x2d   :  { %v124_v24 = vld [vmem:[%s3325_s1 + $0x328] sm:$0xff]  ;;  %714 = vmatprep.subr.mxu1 %v256_v21  ;;  %v123_v26 = vld [vmem:[%s3325_s1 + $0x320] sm:$0xff]  ;;  %644 = vmatpush2.msra.mxu0 %v127_v22 }
  0x2e   :  { %v252_v25 = vld [vmem:[%s3325_s1 + $0x728] sm:$0xff]  ;;  %v251_v27 = vld [vmem:[%s3325_s1 + $0x720] sm:$0xff]  ;;  %715 = vmatpush2.msra.mxu1 %v255_v23  ;;  %645 = vmatprep.subr.mxu0 %v124_v24 }
  0x2f   :  { %v120_v28 = vld [vmem:[%s3325_s1 + $0x308] sm:$0xff]  ;;  %716 = vmatprep.subr.mxu1 %v252_v25  ;;  %v119_v33 = vld [vmem:[%s3325_s1 + $0x300] sm:$0xff]  ;;  %646 = vmatpush2.msra.mxu0 %v123_v26 }
  0x30   :  { %v248_v29 = vld [vmem:[%s3325_s1 + $0x708] sm:$0xff]  ;;  %v247_v34 = vld [vmem:[%s3325_s1 + $0x700] sm:$0xff]  ;;  %717 = vmatpush2.msra.mxu1 %v251_v27  ;;  %647 = vmatprep.subr.mxu0 %v120_v28 }
  0x31   :  { %v116_v35 = vld [vmem:[%s3325_s1 + $0x2e8] sm:$0xff]  ;;  %718 = vmatprep.subr.mxu1 %v248_v29  ;;  %v115_v37 = vld [vmem:[%s3325_s1 + $0x2e0] sm:$0xff]  ;;  %648 = vmatpush2.msra.mxu0 %v119_v33 }
  0x32   :  { %v244_v36 = vld [vmem:[%s3325_s1 + $0x6e8] sm:$0xff]  ;;  %v243_v38 = vld [vmem:[%s3325_s1 + $0x6e0] sm:$0xff]  ;;  %719 = vmatpush2.msra.mxu1 %v247_v34  ;;  %649 = vmatprep.subr.mxu0 %v116_v35 }
  0x33   :  { %v112_v39 = vld [vmem:[%s3325_s1 + $0x2c8] sm:$0xff]  ;;  %720 = vmatprep.subr.mxu1 %v244_v36  ;;  %v111_v43 = vld [vmem:[%s3325_s1 + $0x2c0] sm:$0xff]  ;;  %650 = vmatpush2.msra.mxu0 %v115_v37 }
  0x34   :  { %v240_v40 = vld [vmem:[%s3325_s1 + $0x6c8] sm:$0xff]  ;;  %v239_v44 = vld [vmem:[%s3325_s1 + $0x6c0] sm:$0xff]  ;;  %721 = vmatpush2.msra.mxu1 %v243_v38  ;;  %651 = vmatprep.subr.mxu0 %v112_v39 }
  0x35   :  { %v108_v45 = vld [vmem:[%s3325_s1 + $0x2a8] sm:$0xff]  ;;  %722 = vmatprep.subr.mxu1 %v240_v40  ;;  %v107_v47 = vld [vmem:[%s3325_s1 + $0x2a0] sm:$0xff]  ;;  %652 = vmatpush2.msra.mxu0 %v111_v43 }
  0x36   :  { %v236_v46 = vld [vmem:[%s3325_s1 + $0x6a8] sm:$0xff]  ;;  %v235_v48 = vld [vmem:[%s3325_s1 + $0x6a0] sm:$0xff]  ;;  %723 = vmatpush2.msra.mxu1 %v239_v44  ;;  %653 = vmatprep.subr.mxu0 %v108_v45 }
  0x37   :  { %v21_v49 = vld [vmem:[%s3324_s0] sm:$0xff]  ;;  %v104_v50 = vld [vmem:[%s3325_s1 + $0x288] sm:$0xff]  ;;  %724 = vmatprep.subr.mxu1 %v236_v46  ;;  %654 = vmatpush2.msra.mxu0 %v107_v47 }
  0x38   :  { %v232_v51 = vld [vmem:[%s3325_s1 + $0x688] sm:$0xff]  ;;  %v103_v53 = vld [vmem:[%s3325_s1 + $0x280] sm:$0xff]  ;;  %725 = vmatpush2.msra.mxu1 %v235_v48  ;;  %v559_v57 = vcombine.high %v21_v49, %v21_v49  ;;  %655 = vmatprep.subr.mxu0 %v104_v50  ;;  %v1891_v62 = vrot.slane %v21_v49, %v1864_v52 }
  0x39   :  { %v231_v54 = vld [vmem:[%s3325_s1 + $0x680] sm:$0xff]  ;;  %v100_v55 = vld [vmem:[%s3325_s1 + $0x268] sm:$0xff]  ;;  %726 = vmatprep.subr.mxu1 %v232_v51  ;;  %656 = vmatpush2.msra.mxu0 %v103_v53 }
  0x3a   :  { %v228_v56 = vld [vmem:[%s3325_s1 + $0x668] sm:$0xff]  ;;  %v99_v58 = vld [vmem:[%s3325_s1 + $0x260] sm:$0xff]  ;;  %727 = vmatpush2.msra.mxu1 %v231_v54  ;;  %657 = vmatprep.subr.mxu0 %v100_v55  ;;  %v1906_v3 = vrot.slane %v559_v57, %v1864_v52  ;;  %v1922_v8 = vcombine.high %v1891_v62, %v1891_v62 }
  0x3b   :  { %v227_v59 = vld [vmem:[%s3325_s1 + $0x660] sm:$0xff]  ;;  %v96_v60 = vld [vmem:[%s3325_s1 + $0x248] sm:$0xff]  ;;  %728 = vmatprep.subr.mxu1 %v228_v56  ;;  %658 = vmatpush2.msra.mxu0 %v99_v58 }
  0x3c   :  { %v224_v61 = vld [vmem:[%s3325_s1 + $0x648] sm:$0xff]  ;;  %v95_v63 = vld [vmem:[%s3325_s1 + $0x240] sm:$0xff]  ;;  %729 = vmatpush2.msra.mxu1 %v227_v59  ;;  %659 = vmatprep.subr.mxu0 %v96_v60  ;;  %v1932_v11 = vcombine.high %v1906_v3, %v1906_v3 }
  0x3d   :  { %v223_v0 = vld [vmem:[%s3325_s1 + $0x640] sm:$0xff]  ;;  %v92_v1 = vld [vmem:[%s3325_s1 + $0x228] sm:$0xff]  ;;  %730 = vmatprep.subr.mxu1 %v224_v61  ;;  %660 = vmatpush2.msra.mxu0 %v95_v63 }
  0x3e   :  { %v220_v2 = vld [vmem:[%s3325_s1 + $0x628] sm:$0xff]  ;;  %v91_v4 = vld [vmem:[%s3325_s1 + $0x220] sm:$0xff]  ;;  %731 = vmatpush2.msra.mxu1 %v223_v0  ;;  %661 = vmatprep.subr.mxu0 %v92_v1 }
  0x3f   :  { %v219_v5 = vld [vmem:[%s3325_s1 + $0x620] sm:$0xff]  ;;  %v88_v6 = vld [vmem:[%s3325_s1 + $0x208] sm:$0xff]  ;;  %732 = vmatprep.subr.mxu1 %v220_v2  ;;  %662 = vmatpush2.msra.mxu0 %v91_v4 }
  0x40   :  { %v216_v7 = vld [vmem:[%s3325_s1 + $0x608] sm:$0xff]  ;;  %v87_v9 = vld [vmem:[%s3325_s1 + $0x200] sm:$0xff]  ;;  %733 = vmatpush2.msra.mxu1 %v219_v5  ;;  %663 = vmatprep.subr.mxu0 %v88_v6 }
  0x41   :  { %v215_v10 = vld [vmem:[%s3325_s1 + $0x600] sm:$0xff]  ;;  %734 = vmatprep.subr.mxu1 %v216_v7  ;;  %v340_v12 = vld [vmem:[%s3325_s1 + $0x9e8] sm:$0xff]  ;;  %664 = vmatpush2.msra.mxu0 %v87_v9 }
  0x42   :  { %665 = vmatprep.mubr.f32.mxu0 %v1922_v8  ;;  %v468_v13 = vld [vmem:[%s3325_s1 + $0xde8] sm:$0xff]  ;;  %735 = vmatpush2.msra.mxu1 %v215_v10  ;;  %v339_v14 = vld [vmem:[%s3325_s1 + $0x9e0] sm:$0xff] }
  0x43   :  { %666 = vmatmul.mubr.f32.vlgmr.msra.gmra.mxu0 %v1891_v62  ;;  %v467_v15 = vld [vmem:[%s3325_s1 + $0xde0] sm:$0xff]  ;;  %736 = vmatprep.mubr.f32.mxu1 %v1932_v11  ;;  %v336_v16 = vld [vmem:[%s3325_s1 + $0x9c8] sm:$0xff] }
  0x44   :  { %743 = vmatprep.subr.mxu0 %v340_v12  ;;  %v464_v17 = vld [vmem:[%s3325_s1 + $0xdc8] sm:$0xff]  ;;  %814 = vmatprep.subr.mxu1 %v468_v13  ;;  %v335_v18 = vld [vmem:[%s3325_s1 + $0x9c0] sm:$0xff] }
  0x45   :  { %737 = vmatmul.mubr.f32.vlgmr.msra.gmra.mxu1 %v1906_v3  ;;  %v463_v19 = vld [vmem:[%s3325_s1 + $0xdc0] sm:$0xff]  ;;  %744 = vmatpush1.msra.mxu0 %v339_v14  ;;  %v332_v20 = vld [vmem:[%s3325_s1 + $0x9a8] sm:$0xff] }
  0x46   :  { %815 = vmatpush1.msra.mxu1 %v467_v15  ;;  %v460_v21 = vld [vmem:[%s3325_s1 + $0xda8] sm:$0xff]  ;;  %745 = vmatprep.subr.mxu0 %v336_v16  ;;  %v331_v22 = vld [vmem:[%s3325_s1 + $0x9a0] sm:$0xff] }
  0x47   :  { %816 = vmatprep.subr.mxu1 %v464_v17  ;;  %v459_v23 = vld [vmem:[%s3325_s1 + $0xda0] sm:$0xff]  ;;  %746 = vmatpush1.msra.mxu0 %v335_v18  ;;  %v328_v24 = vld [vmem:[%s3325_s1 + $0x988] sm:$0xff] }
  0x48   :  { %817 = vmatpush1.msra.mxu1 %v463_v19  ;;  %v456_v25 = vld [vmem:[%s3325_s1 + $0xd88] sm:$0xff]  ;;  %747 = vmatprep.subr.mxu0 %v332_v20  ;;  %v327_v26 = vld [vmem:[%s3325_s1 + $0x980] sm:$0xff] }
  0x49   :  { %818 = vmatprep.subr.mxu1 %v460_v21  ;;  %v455_v27 = vld [vmem:[%s3325_s1 + $0xd80] sm:$0xff]  ;;  %748 = vmatpush1.msra.mxu0 %v331_v22  ;;  %v324_v28 = vld [vmem:[%s3325_s1 + $0x968] sm:$0xff] }
  0x4a   :  { %819 = vmatpush1.msra.mxu1 %v459_v23  ;;  %v452_v29 = vld [vmem:[%s3325_s1 + $0xd68] sm:$0xff]  ;;  %749 = vmatprep.subr.mxu0 %v328_v24  ;;  %v323_v30 = vld [vmem:[%s3325_s1 + $0x960] sm:$0xff] }
  0x4b   :  { %820 = vmatprep.subr.mxu1 %v456_v25  ;;  %v451_v31 = vld [vmem:[%s3325_s1 + $0xd60] sm:$0xff]  ;;  %750 = vmatpush1.msra.mxu0 %v327_v26  ;;  %v320_v32 = vld [vmem:[%s3325_s1 + $0x948] sm:$0xff] }
  0x4c   :  { %821 = vmatpush1.msra.mxu1 %v455_v27  ;;  %v448_v33 = vld [vmem:[%s3325_s1 + $0xd48] sm:$0xff]  ;;  %751 = vmatprep.subr.mxu0 %v324_v28  ;;  %v319_v34 = vld [vmem:[%s3325_s1 + $0x940] sm:$0xff] }
  0x4d   :  { %822 = vmatprep.subr.mxu1 %v452_v29  ;;  %v447_v35 = vld [vmem:[%s3325_s1 + $0xd40] sm:$0xff]  ;;  %752 = vmatpush1.msra.mxu0 %v323_v30  ;;  %v316_v36 = vld [vmem:[%s3325_s1 + $0x928] sm:$0xff] }
  0x4e   :  { %823 = vmatpush1.msra.mxu1 %v451_v31  ;;  %v444_v37 = vld [vmem:[%s3325_s1 + $0xd28] sm:$0xff]  ;;  %753 = vmatprep.subr.mxu0 %v320_v32  ;;  %v315_v38 = vld [vmem:[%s3325_s1 + $0x920] sm:$0xff] }
  0x4f   :  { %824 = vmatprep.subr.mxu1 %v448_v33  ;;  %v443_v39 = vld [vmem:[%s3325_s1 + $0xd20] sm:$0xff]  ;;  %754 = vmatpush1.msra.mxu0 %v319_v34  ;;  %v312_v40 = vld [vmem:[%s3325_s1 + $0x908] sm:$0xff] }
  0x50   :  { %825 = vmatpush1.msra.mxu1 %v447_v35  ;;  %v440_v42 = vld [vmem:[%s3325_s1 + $0xd08] sm:$0xff]  ;;  %755 = vmatprep.subr.mxu0 %v316_v36  ;;  %v311_v43 = vld [vmem:[%s3325_s1 + $0x900] sm:$0xff] }
  0x51   :  { %826 = vmatprep.subr.mxu1 %v444_v37  ;;  %v439_v44 = vld [vmem:[%s3325_s1 + $0xd00] sm:$0xff]  ;;  %756 = vmatpush1.msra.mxu0 %v315_v38  ;;  %v308_v45 = vld [vmem:[%s3325_s1 + $0x8e8] sm:$0xff] }
  0x52   :  { %827 = vmatpush1.msra.mxu1 %v443_v39  ;;  %v436_v46 = vld [vmem:[%s3325_s1 + $0xce8] sm:$0xff]  ;;  %757 = vmatprep.subr.mxu0 %v312_v40  ;;  %v307_v47 = vld [vmem:[%s3325_s1 + $0x8e0] sm:$0xff] }
  0x53   :  { %828 = vmatprep.subr.mxu1 %v440_v42  ;;  %v435_v48 = vld [vmem:[%s3325_s1 + $0xce0] sm:$0xff]  ;;  %758 = vmatpush1.msra.mxu0 %v311_v43  ;;  %v304_v49 = vld [vmem:[%s3325_s1 + $0x8c8] sm:$0xff] }
  0x54   :  { %829 = vmatpush1.msra.mxu1 %v439_v44  ;;  %v432_v50 = vld [vmem:[%s3325_s1 + $0xcc8] sm:$0xff]  ;;  %759 = vmatprep.subr.mxu0 %v308_v45  ;;  %v303_v51 = vld [vmem:[%s3325_s1 + $0x8c0] sm:$0xff] }
  0x55   :  { %830 = vmatprep.subr.mxu1 %v436_v46  ;;  %v431_v53 = vld [vmem:[%s3325_s1 + $0xcc0] sm:$0xff]  ;;  %760 = vmatpush1.msra.mxu0 %v307_v47  ;;  %v300_v54 = vld [vmem:[%s3325_s1 + $0x8a8] sm:$0xff] }
  0x56   :  { %831 = vmatpush1.msra.mxu1 %v435_v48  ;;  %v428_v55 = vld [vmem:[%s3325_s1 + $0xca8] sm:$0xff]  ;;  %761 = vmatprep.subr.mxu0 %v304_v49  ;;  %v299_v56 = vld [vmem:[%s3325_s1 + $0x8a0] sm:$0xff] }
  0x57   :  { %832 = vmatprep.subr.mxu1 %v432_v50  ;;  %v427_v57 = vld [vmem:[%s3325_s1 + $0xca0] sm:$0xff]  ;;  %762 = vmatpush1.msra.mxu0 %v303_v51  ;;  %v296_v58 = vld [vmem:[%s3325_s1 + $0x888] sm:$0xff] }
  0x58   :  { %833 = vmatpush1.msra.mxu1 %v431_v53  ;;  %v424_v59 = vld [vmem:[%s3325_s1 + $0xc88] sm:$0xff]  ;;  %763 = vmatprep.subr.mxu0 %v300_v54  ;;  %v295_v60 = vld [vmem:[%s3325_s1 + $0x880] sm:$0xff] }
  0x59   :  { %834 = vmatprep.subr.mxu1 %v428_v55  ;;  %v423_v61 = vld [vmem:[%s3325_s1 + $0xc80] sm:$0xff]  ;;  %764 = vmatpush1.msra.mxu0 %v299_v56  ;;  %v292_v63 = vld [vmem:[%s3325_s1 + $0x868] sm:$0xff] }
  0x5a   :  { %835 = vmatpush1.msra.mxu1 %v427_v57  ;;  %v420_v0 = vld [vmem:[%s3325_s1 + $0xc68] sm:$0xff]  ;;  %765 = vmatprep.subr.mxu0 %v296_v58  ;;  %v291_v1 = vld [vmem:[%s3325_s1 + $0x860] sm:$0xff] }
  0x5b   :  { %836 = vmatprep.subr.mxu1 %v424_v59  ;;  %v419_v2 = vld [vmem:[%s3325_s1 + $0xc60] sm:$0xff]  ;;  %766 = vmatpush1.msra.mxu0 %v295_v60  ;;  %v288_v4 = vld [vmem:[%s3325_s1 + $0x848] sm:$0xff] }
  0x5c   :  { %837 = vmatpush1.msra.mxu1 %v423_v61  ;;  %v416_v5 = vld [vmem:[%s3325_s1 + $0xc48] sm:$0xff]  ;;  %767 = vmatprep.subr.mxu0 %v292_v63  ;;  %v287_v6 = vld [vmem:[%s3325_s1 + $0x840] sm:$0xff] }
  0x5d   :  { %838 = vmatprep.subr.mxu1 %v420_v0  ;;  %v415_v7 = vld [vmem:[%s3325_s1 + $0xc40] sm:$0xff]  ;;  %768 = vmatpush1.msra.mxu0 %v291_v1  ;;  %v284_v9 = vld [vmem:[%s3325_s1 + $0x828] sm:$0xff] }
  0x5e   :  { %839 = vmatpush1.msra.mxu1 %v419_v2  ;;  %v412_v10 = vld [vmem:[%s3325_s1 + $0xc28] sm:$0xff]  ;;  %769 = vmatprep.subr.mxu0 %v288_v4  ;;  %v283_v12 = vld [vmem:[%s3325_s1 + $0x820] sm:$0xff] }
  0x5f   :  { %840 = vmatprep.subr.mxu1 %v416_v5  ;;  %v411_v13 = vld [vmem:[%s3325_s1 + $0xc20] sm:$0xff]  ;;  %770 = vmatpush1.msra.mxu0 %v287_v6  ;;  %v280_v14 = vld [vmem:[%s3325_s1 + $0x808] sm:$0xff] }
  0x60   :  { %841 = vmatpush1.msra.mxu1 %v415_v7  ;;  %v408_v15 = vld [vmem:[%s3325_s1 + $0xc08] sm:$0xff]  ;;  %771 = vmatprep.subr.mxu0 %v284_v9  ;;  %v279_v16 = vld [vmem:[%s3325_s1 + $0x800] sm:$0xff] }
  0x61   :  { %842 = vmatprep.subr.mxu1 %v412_v10  ;;  %v407_v17 = vld [vmem:[%s3325_s1 + $0xc00] sm:$0xff]  ;;  %772 = vmatpush1.msra.mxu0 %v283_v12  ;;  %v404_v18 = vld [vmem:[%s3325_s1 + $0xbe8] sm:$0xff] }
  0x62   :  { %843 = vmatpush1.msra.mxu1 %v411_v13  ;;  %v532_v19 = vld [vmem:[%s3325_s1 + $0xfe8] sm:$0xff]  ;;  %773 = vmatprep.subr.mxu0 %v280_v14  ;;  %v403_v20 = vld [vmem:[%s3325_s1 + $0xbe0] sm:$0xff] }
  0x63   :  { %844 = vmatprep.subr.mxu1 %v408_v15  ;;  %v531_v21 = vld [vmem:[%s3325_s1 + $0xfe0] sm:$0xff]  ;;  %774 = vmatpush1.msra.mxu0 %v279_v16  ;;  %v400_v22 = vld [vmem:[%s3325_s1 + $0xbc8] sm:$0xff] }
  0x64   :  { %845 = vmatpush1.msra.mxu1 %v407_v17  ;;  %v528_v23 = vld [vmem:[%s3325_s1 + $0xfc8] sm:$0xff]  ;;  %775 = vmatprep.subr.mxu0 %v404_v18  ;;  %v399_v24 = vld [vmem:[%s3325_s1 + $0xbc0] sm:$0xff] }
  0x65   :  { %846 = vmatprep.subr.mxu1 %v532_v19  ;;  %v527_v25 = vld [vmem:[%s3325_s1 + $0xfc0] sm:$0xff]  ;;  %776 = vmatpush2.msra.mxu0 %v403_v20  ;;  %v396_v26 = vld [vmem:[%s3325_s1 + $0xba8] sm:$0xff] }
  0x66   :  { %847 = vmatpush2.msra.mxu1 %v531_v21  ;;  %v524_v27 = vld [vmem:[%s3325_s1 + $0xfa8] sm:$0xff]  ;;  %777 = vmatprep.subr.mxu0 %v400_v22  ;;  %v395_v28 = vld [vmem:[%s3325_s1 + $0xba0] sm:$0xff] }
  0x67   :  { %848 = vmatprep.subr.mxu1 %v528_v23  ;;  %v523_v29 = vld [vmem:[%s3325_s1 + $0xfa0] sm:$0xff]  ;;  %778 = vmatpush2.msra.mxu0 %v399_v24  ;;  %v392_v30 = vld [vmem:[%s3325_s1 + $0xb88] sm:$0xff] }
  0x68   :  { %849 = vmatpush2.msra.mxu1 %v527_v25  ;;  %v520_v31 = vld [vmem:[%s3325_s1 + $0xf88] sm:$0xff]  ;;  %779 = vmatprep.subr.mxu0 %v396_v26  ;;  %v391_v32 = vld [vmem:[%s3325_s1 + $0xb80] sm:$0xff] }
  0x69   :  { %850 = vmatprep.subr.mxu1 %v524_v27  ;;  %v519_v33 = vld [vmem:[%s3325_s1 + $0xf80] sm:$0xff]  ;;  %780 = vmatpush2.msra.mxu0 %v395_v28  ;;  %v388_v34 = vld [vmem:[%s3325_s1 + $0xb68] sm:$0xff] }
  0x6a   :  { %851 = vmatpush2.msra.mxu1 %v523_v29  ;;  %v516_v35 = vld [vmem:[%s3325_s1 + $0xf68] sm:$0xff]  ;;  %781 = vmatprep.subr.mxu0 %v392_v30  ;;  %v387_v36 = vld [vmem:[%s3325_s1 + $0xb60] sm:$0xff]  ;;  %v86_v29 = vld [vmem:[%s3325_s1 + $0x1f8] sm:$0xff] }
  0x6b   :  { %852 = vmatprep.subr.mxu1 %v520_v31  ;;  %v515_v37 = vld [vmem:[%s3325_s1 + $0xf60] sm:$0xff]  ;;  %782 = vmatpush2.msra.mxu0 %v391_v32  ;;  %v384_v38 = vld [vmem:[%s3325_s1 + $0xb48] sm:$0xff]  ;;  %v214_v30 = vld [vmem:[%s3325_s1 + $0x5f8] sm:$0xff] }
  0x6c   :  { %853 = vmatpush2.msra.mxu1 %v519_v33  ;;  %v512_v39 = vld [vmem:[%s3325_s1 + $0xf48] sm:$0xff]  ;;  %783 = vmatprep.subr.mxu0 %v388_v34  ;;  %v383_v40 = vld [vmem:[%s3325_s1 + $0xb40] sm:$0xff]  ;;  %v85_v31 = vld [vmem:[%s3325_s1 + $0x1f0] sm:$0xff] }
  0x6d   :  { %854 = vmatprep.subr.mxu1 %v516_v35  ;;  %v511_v42 = vld [vmem:[%s3325_s1 + $0xf40] sm:$0xff]  ;;  %784 = vmatpush2.msra.mxu0 %v387_v36  ;;  %v380_v43 = vld [vmem:[%s3325_s1 + $0xb28] sm:$0xff]  ;;  %v213_v32 = vld [vmem:[%s3325_s1 + $0x5f0] sm:$0xff] }
  0x6e   :  { %855 = vmatpush2.msra.mxu1 %v515_v37  ;;  %v508_v44 = vld [vmem:[%s3325_s1 + $0xf28] sm:$0xff]  ;;  %785 = vmatprep.subr.mxu0 %v384_v38  ;;  %v379_v45 = vld [vmem:[%s3325_s1 + $0xb20] sm:$0xff]  ;;  %v82_v33 = vld [vmem:[%s3325_s1 + $0x1d8] sm:$0xff] }
  0x6f   :  { %856 = vmatprep.subr.mxu1 %v512_v39  ;;  %v507_v46 = vld [vmem:[%s3325_s1 + $0xf20] sm:$0xff]  ;;  %786 = vmatpush2.msra.mxu0 %v383_v40  ;;  %v376_v47 = vld [vmem:[%s3325_s1 + $0xb08] sm:$0xff]  ;;  %v210_v34 = vld [vmem:[%s3325_s1 + $0x5d8] sm:$0xff] }
  0x70   :  { %857 = vmatpush2.msra.mxu1 %v511_v42  ;;  %v504_v48 = vld [vmem:[%s3325_s1 + $0xf08] sm:$0xff]  ;;  %787 = vmatprep.subr.mxu0 %v380_v43  ;;  %v375_v49 = vld [vmem:[%s3325_s1 + $0xb00] sm:$0xff]  ;;  %v81_v35 = vld [vmem:[%s3325_s1 + $0x1d0] sm:$0xff] }
  0x71   :  { %858 = vmatprep.subr.mxu1 %v508_v44  ;;  %v503_v50 = vld [vmem:[%s3325_s1 + $0xf00] sm:$0xff]  ;;  %788 = vmatpush2.msra.mxu0 %v379_v45  ;;  %v372_v51 = vld [vmem:[%s3325_s1 + $0xae8] sm:$0xff]  ;;  %v209_v36 = vld [vmem:[%s3325_s1 + $0x5d0] sm:$0xff] }
  0x72   :  { %859 = vmatpush2.msra.mxu1 %v507_v46  ;;  %v500_v53 = vld [vmem:[%s3325_s1 + $0xee8] sm:$0xff]  ;;  %789 = vmatprep.subr.mxu0 %v376_v47  ;;  %v371_v54 = vld [vmem:[%s3325_s1 + $0xae0] sm:$0xff]  ;;  %v78_v37 = vld [vmem:[%s3325_s1 + $0x1b8] sm:$0xff] }
  0x73   :  { %860 = vmatprep.subr.mxu1 %v504_v48  ;;  %v499_v55 = vld [vmem:[%s3325_s1 + $0xee0] sm:$0xff]  ;;  %790 = vmatpush2.msra.mxu0 %v375_v49  ;;  %v368_v56 = vld [vmem:[%s3325_s1 + $0xac8] sm:$0xff]  ;;  %v206_v38 = vld [vmem:[%s3325_s1 + $0x5b8] sm:$0xff] }
  0x74   :  { %861 = vmatpush2.msra.mxu1 %v503_v50  ;;  %v496_v57 = vld [vmem:[%s3325_s1 + $0xec8] sm:$0xff]  ;;  %791 = vmatprep.subr.mxu0 %v372_v51  ;;  %v367_v58 = vld [vmem:[%s3325_s1 + $0xac0] sm:$0xff]  ;;  %v77_v39 = vld [vmem:[%s3325_s1 + $0x1b0] sm:$0xff] }
  0x75   :  { %862 = vmatprep.subr.mxu1 %v500_v53  ;;  %v495_v59 = vld [vmem:[%s3325_s1 + $0xec0] sm:$0xff]  ;;  %792 = vmatpush2.msra.mxu0 %v371_v54  ;;  %v364_v60 = vld [vmem:[%s3325_s1 + $0xaa8] sm:$0xff]  ;;  %v205_v40 = vld [vmem:[%s3325_s1 + $0x5b0] sm:$0xff] }
  0x76   :  { %863 = vmatpush2.msra.mxu1 %v499_v55  ;;  %v492_v61 = vld [vmem:[%s3325_s1 + $0xea8] sm:$0xff]  ;;  %793 = vmatprep.subr.mxu0 %v368_v56  ;;  %v363_v63 = vld [vmem:[%s3325_s1 + $0xaa0] sm:$0xff]  ;;  %v74_v42 = vld [vmem:[%s3325_s1 + $0x198] sm:$0xff] }
  0x77   :  { %864 = vmatprep.subr.mxu1 %v496_v57  ;;  %v491_v0 = vld [vmem:[%s3325_s1 + $0xea0] sm:$0xff]  ;;  %v22_v1 = vld [vmem:[%s3324_s0 + $0x8] sm:$0xff]  ;;  %794 = vmatpush2.msra.mxu0 %v367_v58  ;;  %v202_v43 = vld [vmem:[%s3325_s1 + $0x598] sm:$0xff] }
  0x78   :  { %865 = vmatpush2.msra.mxu1 %v495_v59  ;;  %v360_v2 = vld [vmem:[%s3325_s1 + $0xa88] sm:$0xff]  ;;  %795 = vmatprep.subr.mxu0 %v364_v60  ;;  %v359_v5 = vld [vmem:[%s3325_s1 + $0xa80] sm:$0xff]  ;;  %v576_v10 = vcombine.high %v22_v1, %v22_v1  ;;  %v2296_v16 = vrot.slane %v22_v1, %v1864_v52  ;;  %v73_v44 = vld [vmem:[%s3325_s1 + $0x190] sm:$0xff] }
  0x79   :  { %v488_v4 = vld [vmem:[%s3325_s1 + $0xe88] sm:$0xff]  ;;  %866 = vmatprep.subr.mxu1 %v492_v61  ;;  %v487_v6 = vld [vmem:[%s3325_s1 + $0xe80] sm:$0xff]  ;;  %796 = vmatpush2.msra.mxu0 %v363_v63  ;;  %v201_v45 = vld [vmem:[%s3325_s1 + $0x590] sm:$0xff] }
  0x7a   :  { %867 = vmatpush2.msra.mxu1 %v491_v0  ;;  %v356_v7 = vld [vmem:[%s3325_s1 + $0xa68] sm:$0xff]  ;;  %797 = vmatprep.subr.mxu0 %v360_v2  ;;  %v355_v12 = vld [vmem:[%s3325_s1 + $0xa60] sm:$0xff]  ;;  %v2311_v21 = vrot.slane %v576_v10, %v1864_v52  ;;  %v2327_v25 = vcombine.high %v2296_v16, %v2296_v16  ;;  %v70_v46 = vld [vmem:[%s3325_s1 + $0x178] sm:$0xff] }
  0x7b   :  { %v484_v9 = vld [vmem:[%s3325_s1 + $0xe68] sm:$0xff]  ;;  %868 = vmatprep.subr.mxu1 %v488_v4  ;;  %v483_v13 = vld [vmem:[%s3325_s1 + $0xe60] sm:$0xff]  ;;  %798 = vmatpush2.msra.mxu0 %v359_v5  ;;  %v198_v47 = vld [vmem:[%s3325_s1 + $0x578] sm:$0xff] }
  0x7c   :  { %869 = vmatpush2.msra.mxu1 %v487_v6  ;;  %v352_v14 = vld [vmem:[%s3325_s1 + $0xa48] sm:$0xff]  ;;  %799 = vmatprep.subr.mxu0 %v356_v7  ;;  %v351_v17 = vld [vmem:[%s3325_s1 + $0xa40] sm:$0xff]  ;;  %v2337_v28 = vcombine.high %v2311_v21, %v2311_v21  ;;  %v69_v48 = vld [vmem:[%s3325_s1 + $0x170] sm:$0xff] }
  0x7d   :  { %v480_v15 = vld [vmem:[%s3325_s1 + $0xe48] sm:$0xff]  ;;  %870 = vmatprep.subr.mxu1 %v484_v9  ;;  %v479_v18 = vld [vmem:[%s3325_s1 + $0xe40] sm:$0xff]  ;;  %800 = vmatpush2.msra.mxu0 %v355_v12  ;;  %v197_v49 = vld [vmem:[%s3325_s1 + $0x570] sm:$0xff] }
  0x7e   :  { %871 = vmatpush2.msra.mxu1 %v483_v13  ;;  %v348_v19 = vld [vmem:[%s3325_s1 + $0xa28] sm:$0xff]  ;;  %801 = vmatprep.subr.mxu0 %v352_v14  ;;  %v347_v22 = vld [vmem:[%s3325_s1 + $0xa20] sm:$0xff]  ;;  %v66_v50 = vld [vmem:[%s3325_s1 + $0x158] sm:$0xff] }
  0x7f   :  { %v476_v20 = vld [vmem:[%s3325_s1 + $0xe28] sm:$0xff]  ;;  %872 = vmatprep.subr.mxu1 %v480_v15  ;;  %v475_v23 = vld [vmem:[%s3325_s1 + $0xe20] sm:$0xff]  ;;  %802 = vmatpush2.msra.mxu0 %v351_v17  ;;  %v194_v51 = vld [vmem:[%s3325_s1 + $0x558] sm:$0xff] }
  0x80   :  { %873 = vmatpush2.msra.mxu1 %v479_v18  ;;  %v344_v24 = vld [vmem:[%s3325_s1 + $0xa08] sm:$0xff]  ;;  %803 = vmatprep.subr.mxu0 %v348_v19  ;;  %v343_v26 = vld [vmem:[%s3325_s1 + $0xa00] sm:$0xff]  ;;  %v65_v53 = vld [vmem:[%s3325_s1 + $0x150] sm:$0xff] }
  0x81   :  { %v472_v52 = vld [vmem:[%s3325_s1 + $0xe08] sm:$0xff]  ;;  %874 = vmatprep.subr.mxu1 %v476_v20  ;;  %804 = vmatpush2.msra.mxu0 %v347_v22  ;;  %v471_v27 = vld [vmem:[%s3325_s1 + $0xe00] sm:$0xff]  ;;  %v193_v54 = vld [vmem:[%s3325_s1 + $0x550] sm:$0xff] }
  0x82   :  { %875 = vmatpush2.msra.mxu1 %v475_v23  ;;  %805 = vmatprep.subr.mxu0 %v344_v24  ;;  %v62_v55 = vld [vmem:[%s3325_s1 + $0x138] sm:$0xff]  ;;  %v61_v57 = vld [vmem:[%s3325_s1 + $0x130] sm:$0xff] }
  0x83   :  { %876 = vmatprep.subr.mxu1 %v472_v52  ;;  %806 = vmatpush2.msra.mxu0 %v343_v26  ;;  %v190_v56 = vld [vmem:[%s3325_s1 + $0x538] sm:$0xff]  ;;  %v189_v58 = vld [vmem:[%s3325_s1 + $0x530] sm:$0xff] }
  0x84   :  { %807 = vmatprep.mubr.f32.mxu0 %v2327_v25  ;;  %877 = vmatpush2.msra.mxu1 %v471_v27  ;;  %v58_v59 = vld [vmem:[%s3325_s1 + $0x118] sm:$0xff]  ;;  %v57_v61 = vld [vmem:[%s3325_s1 + $0x110] sm:$0xff] }
  0x85   :  { %808 = vmatmul.mubr.f32.vlgmr.msra.gmra.mxu0 %v2296_v16  ;;  %878 = vmatprep.mubr.f32.mxu1 %v2337_v28  ;;  %v186_v60 = vld [vmem:[%s3325_s1 + $0x518] sm:$0xff]  ;;  %v185_v63 = vld [vmem:[%s3325_s1 + $0x510] sm:$0xff] }
  0x86   :  { %885 = vmatprep.subr.mxu0 %v86_v29  ;;  %956 = vmatprep.subr.mxu1 %v214_v30  ;;  %v54_v0 = vld [vmem:[%s3325_s1 + $0xf8] sm:$0xff]  ;;  %v53_v2 = vld [vmem:[%s3325_s1 + $0xf0] sm:$0xff] }
  0x87   :  { %879 = vmatmul.mubr.f32.vlgmr.msra.gmra.mxu1 %v2311_v21  ;;  %886 = vmatpush1.msra.mxu0 %v85_v31  ;;  %v182_v1 = vld [vmem:[%s3325_s1 + $0x4f8] sm:$0xff]  ;;  %v181_v4 = vld [vmem:[%s3325_s1 + $0x4f0] sm:$0xff] }
  0x88   :  { %957 = vmatpush1.msra.mxu1 %v213_v32  ;;  %887 = vmatprep.subr.mxu0 %v82_v33  ;;  %v50_v5 = vld [vmem:[%s3325_s1 + $0xd8] sm:$0xff]  ;;  %v49_v7 = vld [vmem:[%s3325_s1 + $0xd0] sm:$0xff] }
  0x89   :  { %958 = vmatprep.subr.mxu1 %v210_v34  ;;  %888 = vmatpush1.msra.mxu0 %v81_v35  ;;  %v178_v6 = vld [vmem:[%s3325_s1 + $0x4d8] sm:$0xff]  ;;  %v177_v9 = vld [vmem:[%s3325_s1 + $0x4d0] sm:$0xff] }
  0x8a   :  { %959 = vmatpush1.msra.mxu1 %v209_v36  ;;  %889 = vmatprep.subr.mxu0 %v78_v37  ;;  %v46_v10 = vld [vmem:[%s3325_s1 + $0xb8] sm:$0xff]  ;;  %v45_v13 = vld [vmem:[%s3325_s1 + $0xb0] sm:$0xff] }
  0x8b   :  { %960 = vmatprep.subr.mxu1 %v206_v38  ;;  %890 = vmatpush1.msra.mxu0 %v77_v39  ;;  %v174_v12 = vld [vmem:[%s3325_s1 + $0x4b8] sm:$0xff]  ;;  %v173_v14 = vld [vmem:[%s3325_s1 + $0x4b0] sm:$0xff] }
  0x8c   :  { %961 = vmatpush1.msra.mxu1 %v205_v40  ;;  %891 = vmatprep.subr.mxu0 %v74_v42  ;;  %v42_v15 = vld [vmem:[%s3325_s1 + $0x98] sm:$0xff]  ;;  %v41_v18 = vld [vmem:[%s3325_s1 + $0x90] sm:$0xff] }
  0x8d   :  { %962 = vmatprep.subr.mxu1 %v202_v43  ;;  %892 = vmatpush1.msra.mxu0 %v73_v44  ;;  %v170_v17 = vld [vmem:[%s3325_s1 + $0x498] sm:$0xff]  ;;  %v169_v19 = vld [vmem:[%s3325_s1 + $0x490] sm:$0xff] }
  0x8e   :  { %963 = vmatpush1.msra.mxu1 %v201_v45  ;;  %893 = vmatprep.subr.mxu0 %v70_v46  ;;  %v38_v20 = vld [vmem:[%s3325_s1 + $0x78] sm:$0xff]  ;;  %v37_v23 = vld [vmem:[%s3325_s1 + $0x70] sm:$0xff] }
  0x8f   :  { %964 = vmatprep.subr.mxu1 %v198_v47  ;;  %894 = vmatpush1.msra.mxu0 %v69_v48  ;;  %v166_v22 = vld [vmem:[%s3325_s1 + $0x478] sm:$0xff]  ;;  %v165_v24 = vld [vmem:[%s3325_s1 + $0x470] sm:$0xff] }
  0x90   :  { %965 = vmatpush1.msra.mxu1 %v197_v49  ;;  %895 = vmatprep.subr.mxu0 %v66_v50  ;;  %v34_v52 = vld [vmem:[%s3325_s1 + $0x58] sm:$0xff]  ;;  %v33_v27 = vld [vmem:[%s3325_s1 + $0x50] sm:$0xff] }
  0x91   :  { %966 = vmatprep.subr.mxu1 %v194_v51  ;;  %896 = vmatpush1.msra.mxu0 %v65_v53  ;;  %v162_v26 = vld [vmem:[%s3325_s1 + $0x458] sm:$0xff]  ;;  %v161_v29 = vld [vmem:[%s3325_s1 + $0x450] sm:$0xff] }
  0x92   :  { %967 = vmatpush1.msra.mxu1 %v193_v54  ;;  %897 = vmatprep.subr.mxu0 %v62_v55  ;;  %v30_v30 = vld [vmem:[%s3325_s1 + $0x38] sm:$0xff]  ;;  %v29_v32 = vld [vmem:[%s3325_s1 + $0x30] sm:$0xff] }
  0x93   :  { %968 = vmatprep.subr.mxu1 %v190_v56  ;;  %898 = vmatpush1.msra.mxu0 %v61_v57  ;;  %v158_v31 = vld [vmem:[%s3325_s1 + $0x438] sm:$0xff]  ;;  %v157_v33 = vld [vmem:[%s3325_s1 + $0x430] sm:$0xff] }
  0x94   :  { %969 = vmatpush1.msra.mxu1 %v189_v58  ;;  %899 = vmatprep.subr.mxu0 %v58_v59  ;;  %v26_v34 = vld [vmem:[%s3325_s1 + $0x18] sm:$0xff]  ;;  %v25_v36 = vld [vmem:[%s3325_s1 + $0x10] sm:$0xff] }
  0x95   :  { %970 = vmatprep.subr.mxu1 %v186_v60  ;;  %900 = vmatpush1.msra.mxu0 %v57_v61  ;;  %v154_v35 = vld [vmem:[%s3325_s1 + $0x418] sm:$0xff]  ;;  %v153_v37 = vld [vmem:[%s3325_s1 + $0x410] sm:$0xff] }
  0x96   :  { %971 = vmatpush1.msra.mxu1 %v185_v63  ;;  %901 = vmatprep.subr.mxu0 %v54_v0  ;;  %v150_v38 = vld [vmem:[%s3325_s1 + $0x3f8] sm:$0xff]  ;;  %v149_v40 = vld [vmem:[%s3325_s1 + $0x3f0] sm:$0xff] }
  0x97   :  { %972 = vmatprep.subr.mxu1 %v182_v1  ;;  %902 = vmatpush1.msra.mxu0 %v53_v2  ;;  %v278_v39 = vld [vmem:[%s3325_s1 + $0x7f8] sm:$0xff]  ;;  %v277_v42 = vld [vmem:[%s3325_s1 + $0x7f0] sm:$0xff] }
  0x98   :  { %973 = vmatpush1.msra.mxu1 %v181_v4  ;;  %903 = vmatprep.subr.mxu0 %v50_v5  ;;  %v146_v43 = vld [vmem:[%s3325_s1 + $0x3d8] sm:$0xff]  ;;  %v145_v45 = vld [vmem:[%s3325_s1 + $0x3d0] sm:$0xff] }
  0x99   :  { %974 = vmatprep.subr.mxu1 %v178_v6  ;;  %904 = vmatpush1.msra.mxu0 %v49_v7  ;;  %v274_v44 = vld [vmem:[%s3325_s1 + $0x7d8] sm:$0xff]  ;;  %v273_v46 = vld [vmem:[%s3325_s1 + $0x7d0] sm:$0xff] }
  0x9a   :  { %975 = vmatpush1.msra.mxu1 %v177_v9  ;;  %905 = vmatprep.subr.mxu0 %v46_v10  ;;  %v142_v47 = vld [vmem:[%s3325_s1 + $0x3b8] sm:$0xff]  ;;  %v141_v49 = vld [vmem:[%s3325_s1 + $0x3b0] sm:$0xff] }
  0x9b   :  { %976 = vmatprep.subr.mxu1 %v174_v12  ;;  %906 = vmatpush1.msra.mxu0 %v45_v13  ;;  %v270_v48 = vld [vmem:[%s3325_s1 + $0x7b8] sm:$0xff]  ;;  %v269_v50 = vld [vmem:[%s3325_s1 + $0x7b0] sm:$0xff] }
  0x9c   :  { %977 = vmatpush1.msra.mxu1 %v173_v14  ;;  %907 = vmatprep.subr.mxu0 %v42_v15  ;;  %v138_v51 = vld [vmem:[%s3325_s1 + $0x398] sm:$0xff]  ;;  %v137_v54 = vld [vmem:[%s3325_s1 + $0x390] sm:$0xff] }
  0x9d   :  { %978 = vmatprep.subr.mxu1 %v170_v17  ;;  %908 = vmatpush1.msra.mxu0 %v41_v18  ;;  %v266_v53 = vld [vmem:[%s3325_s1 + $0x798] sm:$0xff]  ;;  %v265_v55 = vld [vmem:[%s3325_s1 + $0x790] sm:$0xff] }
  0x9e   :  { %979 = vmatpush1.msra.mxu1 %v169_v19  ;;  %909 = vmatprep.subr.mxu0 %v38_v20  ;;  %v134_v56 = vld [vmem:[%s3325_s1 + $0x378] sm:$0xff]  ;;  %v133_v58 = vld [vmem:[%s3325_s1 + $0x370] sm:$0xff] }
  0x9f   :  { %980 = vmatprep.subr.mxu1 %v166_v22  ;;  %910 = vmatpush1.msra.mxu0 %v37_v23  ;;  %v262_v57 = vld [vmem:[%s3325_s1 + $0x778] sm:$0xff]  ;;  %v261_v59 = vld [vmem:[%s3325_s1 + $0x770] sm:$0xff] }
  0xa0   :  { %981 = vmatpush1.msra.mxu1 %v165_v24  ;;  %911 = vmatprep.subr.mxu0 %v34_v52  ;;  %v130_v60 = vld [vmem:[%s3325_s1 + $0x358] sm:$0xff]  ;;  %v129_v63 = vld [vmem:[%s3325_s1 + $0x350] sm:$0xff] }
  0xa1   :  { %982 = vmatprep.subr.mxu1 %v162_v26  ;;  %912 = vmatpush1.msra.mxu0 %v33_v27  ;;  %v258_v61 = vld [vmem:[%s3325_s1 + $0x758] sm:$0xff]  ;;  %v257_v0 = vld [vmem:[%s3325_s1 + $0x750] sm:$0xff] }
  0xa2   :  { %983 = vmatpush1.msra.mxu1 %v161_v29  ;;  %913 = vmatprep.subr.mxu0 %v30_v30  ;;  %v126_v1 = vld [vmem:[%s3325_s1 + $0x338] sm:$0xff]  ;;  %v125_v4 = vld [vmem:[%s3325_s1 + $0x330] sm:$0xff] }
  0xa3   :  { %984 = vmatprep.subr.mxu1 %v158_v31  ;;  %914 = vmatpush1.msra.mxu0 %v29_v32  ;;  %v254_v2 = vld [vmem:[%s3325_s1 + $0x738] sm:$0xff]  ;;  %v253_v5 = vld [vmem:[%s3325_s1 + $0x730] sm:$0xff] }
  0xa4   :  { %985 = vmatpush1.msra.mxu1 %v157_v33  ;;  %915 = vmatprep.subr.mxu0 %v26_v34  ;;  %v122_v6 = vld [vmem:[%s3325_s1 + $0x318] sm:$0xff]  ;;  %v121_v9 = vld [vmem:[%s3325_s1 + $0x310] sm:$0xff] }
  0xa5   :  { %986 = vmatprep.subr.mxu1 %v154_v35  ;;  %916 = vmatpush1.msra.mxu0 %v25_v36  ;;  %v250_v7 = vld [vmem:[%s3325_s1 + $0x718] sm:$0xff]  ;;  %v249_v10 = vld [vmem:[%s3325_s1 + $0x710] sm:$0xff] }
  0xa6   :  { %987 = vmatpush1.msra.mxu1 %v153_v37  ;;  %917 = vmatprep.subr.mxu0 %v150_v38  ;;  %v118_v12 = vld [vmem:[%s3325_s1 + $0x2f8] sm:$0xff]  ;;  %v117_v14 = vld [vmem:[%s3325_s1 + $0x2f0] sm:$0xff] }
  0xa7   :  { %988 = vmatprep.subr.mxu1 %v278_v39  ;;  %918 = vmatpush2.msra.mxu0 %v149_v40  ;;  %v246_v13 = vld [vmem:[%s3325_s1 + $0x6f8] sm:$0xff]  ;;  %v245_v15 = vld [vmem:[%s3325_s1 + $0x6f0] sm:$0xff] }
  0xa8   :  { %989 = vmatpush2.msra.mxu1 %v277_v42  ;;  %919 = vmatprep.subr.mxu0 %v146_v43 }
  0xa9   :  { %990 = vmatprep.subr.mxu1 %v274_v44  ;;  %920 = vmatpush2.msra.mxu0 %v145_v45 }
  0xaa   :  { %991 = vmatpush2.msra.mxu1 %v273_v46  ;;  %921 = vmatprep.subr.mxu0 %v142_v47 }
  0xab   :  { %992 = vmatprep.subr.mxu1 %v270_v48  ;;  %922 = vmatpush2.msra.mxu0 %v141_v49 }
  0xac   :  { %993 = vmatpush2.msra.mxu1 %v269_v50  ;;  %923 = vmatprep.subr.mxu0 %v138_v51 }
  0xad   :  { %994 = vmatprep.subr.mxu1 %v266_v53  ;;  %924 = vmatpush2.msra.mxu0 %v137_v54 }
  0xae   :  { %995 = vmatpush2.msra.mxu1 %v265_v55  ;;  %925 = vmatprep.subr.mxu0 %v134_v56 }
  0xaf   :  { %996 = vmatprep.subr.mxu1 %v262_v57  ;;  %926 = vmatpush2.msra.mxu0 %v133_v58 }
  0xb0   :  { %997 = vmatpush2.msra.mxu1 %v261_v59  ;;  %927 = vmatprep.subr.mxu0 %v130_v60 }
  0xb1   :  { %998 = vmatprep.subr.mxu1 %v258_v61  ;;  %928 = vmatpush2.msra.mxu0 %v129_v63 }
  0xb2   :  { %999 = vmatpush2.msra.mxu1 %v257_v0  ;;  %929 = vmatprep.subr.mxu0 %v126_v1 }
  0xb3   :  { %1000 = vmatprep.subr.mxu1 %v254_v2  ;;  %930 = vmatpush2.msra.mxu0 %v125_v4 }
  0xb4   :  { %1001 = vmatpush2.msra.mxu1 %v253_v5  ;;  %931 = vmatprep.subr.mxu0 %v122_v6 }
  0xb5   :  { %1002 = vmatprep.subr.mxu1 %v250_v7 }
  0xb6   :  { %10 = vsyncpa [#allocation3], 0  ;;  %932 = vmatpush2.msra.mxu0 %v121_v9  ;;  %1003 = vmatpush2.msra.mxu1 %v249_v10  ;;  %v114_v17 = vld [vmem:[%s3325_s1 + $0x2d8] sm:$0xff]  ;;  %v113_v19 = vld [vmem:[%s3325_s1 + $0x2d0] sm:$0xff]  ;;  %s1497_s20 = smov [#allocation2]  }
  0xb7   :  { %v242_v18 = vld [vmem:[%s3325_s1 + $0x6d8] sm:$0xff]  ;;  %933 = vmatprep.subr.mxu0 %v118_v12  ;;  %1004 = vmatprep.subr.mxu1 %v246_v13  ;;  %v241_v20 = vld [vmem:[%s3325_s1 + $0x6d0] sm:$0xff]  ;;  %s1391_s21 = sshll.u32 %s1497_s20, 4  ;;  %s1392_s21 = int_to_ptr.vmem [resolvable:$true] %s1391_s21 }
  0xb8   :  { %934 = vmatpush2.msra.mxu0 %v117_v14  ;;  %1005 = vmatpush2.msra.mxu1 %v245_v15  ;;  %v110_v22 = vld [vmem:[%s3325_s1 + $0x2b8] sm:$0xff]  ;;  %v109_v24 = vld [vmem:[%s3325_s1 + $0x2b0] sm:$0xff]  ;;  %s1474_s22 = scalar_lea.vmem %s1392_s21, 32  ;;  %p1479_p1 = scmp.lt.s32.totalorder %s1392_s21, %s1392_s21 }
  0xb9   :  { %v238_v23 = vld [vmem:[%s3325_s1 + $0x6b8] sm:$0xff]  ;;  %935 = vmatprep.subr.mxu0 %v114_v17  ;;  %1006 = vmatprep.subr.mxu1 %v242_v18  ;;  %v237_v52 = vld [vmem:[%s3325_s1 + $0x6b0] sm:$0xff]  ;;  %p1475_p0 = scmp.ne.s32.totalorder %s1392_s21, %s1474_s22  ;;  %p1480_p2 = scmp.lt.s32.totalorder %s1474_s22, %s1474_s22 }
  0xba   :  { %936 = vmatpush2.msra.mxu0 %v113_v19  ;;  %1007 = vmatpush2.msra.mxu1 %v241_v20  ;;  %v106_v26 = vld [vmem:[%s3325_s1 + $0x298] sm:$0xff]  ;;  %v105_v29 = vld [vmem:[%s3325_s1 + $0x290] sm:$0xff] }
  0xbb   :  { %v234_v27 = vld [vmem:[%s3325_s1 + $0x698] sm:$0xff]  ;;  %937 = vmatprep.subr.mxu0 %v110_v22  ;;  %1008 = vmatprep.subr.mxu1 %v238_v23  ;;  %v233_v30 = vld [vmem:[%s3325_s1 + $0x690] sm:$0xff]  ;;  %p1481_p3 = por %p1480_p2, %p1479_p1 }
  0xbc   :  { %938 = vmatpush2.msra.mxu0 %v109_v24  ;;  %1009 = vmatpush2.msra.mxu1 %v237_v52  ;;  %v102_v31 = vld [vmem:[%s3325_s1 + $0x278] sm:$0xff]  ;;  %v101_v33 = vld [vmem:[%s3325_s1 + $0x270] sm:$0xff] }
  0xbd   :  { %v230_v32 = vld [vmem:[%s3325_s1 + $0x678] sm:$0xff]  ;;  %939 = vmatprep.subr.mxu0 %v106_v26  ;;  %1010 = vmatprep.subr.mxu1 %v234_v27  ;;  %v229_v34 = vld [vmem:[%s3325_s1 + $0x670] sm:$0xff]  ;;  %p1482_p4 = pnand %p1481_p3, %p1475_p0 }
  0xbe   :  { %940 = vmatpush2.msra.mxu0 %v105_v29  ;;  %1011 = vmatpush2.msra.mxu1 %v233_v30  ;;  %v98_v35 = vld [vmem:[%s3325_s1 + $0x258] sm:$0xff]  ;;  %v97_v37 = vld [vmem:[%s3325_s1 + $0x250] sm:$0xff] }
  0xbf   :  { %v226_v36 = vld [vmem:[%s3325_s1 + $0x658] sm:$0xff]  ;;  %941 = vmatprep.subr.mxu0 %v102_v31  ;;  %1012 = vmatprep.subr.mxu1 %v230_v32  ;;  %v225_v38 = vld [vmem:[%s3325_s1 + $0x650] sm:$0xff] }
  0xc0   :  { %942 = vmatpush2.msra.mxu0 %v101_v33  ;;  %1013 = vmatpush2.msra.mxu1 %v229_v34  ;;  %v94_v39 = vld [vmem:[%s3325_s1 + $0x238] sm:$0xff]  ;;  %v93_v42 = vld [vmem:[%s3325_s1 + $0x230] sm:$0xff] }
  0xc1   :  { %v222_v40 = vld [vmem:[%s3325_s1 + $0x638] sm:$0xff]  ;;  %943 = vmatprep.subr.mxu0 %v98_v35  ;;  %1014 = vmatprep.subr.mxu1 %v226_v36  ;;  %v221_v43 = vld [vmem:[%s3325_s1 + $0x630] sm:$0xff] }
  0xc2   :  { %944 = vmatpush2.msra.mxu0 %v97_v37  ;;  %1015 = vmatpush2.msra.mxu1 %v225_v38  ;;  %v90_v44 = vld [vmem:[%s3325_s1 + $0x218] sm:$0xff]  ;;  %v89_v46 = vld [vmem:[%s3325_s1 + $0x210] sm:$0xff] }
  0xc3   :  { %v218_v45 = vld [vmem:[%s3325_s1 + $0x618] sm:$0xff]  ;;  %945 = vmatprep.subr.mxu0 %v94_v39  ;;  %1016 = vmatprep.subr.mxu1 %v222_v40  ;;  %v217_v47 = vld [vmem:[%s3325_s1 + $0x610] sm:$0xff] }
  0xc4   :  { %946 = vmatpush2.msra.mxu0 %v93_v42  ;;  %1017 = vmatpush2.msra.mxu1 %v221_v43  ;;  %v342_v48 = vld [vmem:[%s3325_s1 + $0x9f8] sm:$0xff]  ;;  %v341_v50 = vld [vmem:[%s3325_s1 + $0x9f0] sm:$0xff] }
  0xc5   :  { %947 = vmatprep.subr.mxu0 %v90_v44  ;;  %1018 = vmatprep.subr.mxu1 %v218_v45  ;;  %v470_v49 = vld [vmem:[%s3325_s1 + $0xdf8] sm:$0xff]  ;;  %v469_v51 = vld [vmem:[%s3325_s1 + $0xdf0] sm:$0xff] }
  0xc6   :  { %948 = vmatpush2.msra.mxu0 %v89_v46  ;;  %949 = vmatprep.mubr.f32.mxu0 %v1922_v8  ;;  %v338_v8 = vld [vmem:[%s3325_s1 + $0x9d8] sm:$0xff]  ;;  %v461_v56 = vld [vmem:[%s3325_s1 + $0xdb0] sm:$0xff] }
  0xc7   :  { %1019 = vmatpush2.msra.mxu1 %v217_v47  ;;  %950 = vmatmul.mubr.f32.vlgmr.msra.gmra.mxu0 %v1891_v62  ;;  %v466_v53 = vld [vmem:[%s3325_s1 + $0xdd8] sm:$0xff]  ;;  %v337_v62 = vld [vmem:[%s3325_s1 + $0x9d0] sm:$0xff] }
  0xc8   :  { %1020 = vmatprep.mubr.f32.mxu1 %v1932_v11  ;;  %1027 = vmatprep.subr.mxu0 %v342_v48  ;;  %v465_v11 = vld [vmem:[%s3325_s1 + $0xdd0] sm:$0xff]  ;;  %v334_v54 = vld [vmem:[%s3325_s1 + $0x9b8] sm:$0xff] }
  0xc9   :  { %1098 = vmatprep.subr.mxu1 %v470_v49  ;;  %1021 = vmatmul.mubr.f32.vlgmr.msra.gmra.mxu1 %v1906_v3  ;;  %v462_v55 = vld [vmem:[%s3325_s1 + $0xdb8] sm:$0xff]  ;;  %v333_v3 = vld [vmem:[%s3325_s1 + $0x9b0] sm:$0xff] }
  0xca   :  { %1028 = vmatpush1.msra.mxu0 %v341_v50  ;;  %1099 = vmatpush1.msra.mxu1 %v469_v51  ;;  %v330_v57 = vld [vmem:[%s3325_s1 + $0x998] sm:$0xff]  ;;  %v329_v59 = vld [vmem:[%s3325_s1 + $0x990] sm:$0xff] }
  0xcb   :  { %1029 = vmatprep.subr.mxu0 %v338_v8  ;;  %1100 = vmatprep.subr.mxu1 %v466_v53  ;;  %v458_v58 = vld [vmem:[%s3325_s1 + $0xd98] sm:$0xff]  ;;  %v457_v60 = vld [vmem:[%s3325_s1 + $0xd90] sm:$0xff] }
  0xcc   :  { %1030 = vmatpush1.msra.mxu0 %v337_v62  ;;  %1101 = vmatpush1.msra.mxu1 %v465_v11  ;;  %v326_v61 = vld [vmem:[%s3325_s1 + $0x978] sm:$0xff]  ;;  %v325_v0 = vld [vmem:[%s3325_s1 + $0x970] sm:$0xff] }
  0xcd   :  { %1031 = vmatprep.subr.mxu0 %v334_v54  ;;  %1102 = vmatprep.subr.mxu1 %v462_v55  ;;  %v454_v63 = vld [vmem:[%s3325_s1 + $0xd78] sm:$0xff]  ;;  %v453_v1 = vld [vmem:[%s3325_s1 + $0xd70] sm:$0xff] }
  0xce   :  { %1032 = vmatpush1.msra.mxu0 %v333_v3  ;;  %1103 = vmatpush1.msra.mxu1 %v461_v56  ;;  %v322_v2 = vld [vmem:[%s3325_s1 + $0x958] sm:$0xff]  ;;  %v321_v5 = vld [vmem:[%s3325_s1 + $0x950] sm:$0xff] }
  0xcf   :  { %1033 = vmatprep.subr.mxu0 %v330_v57  ;;  %1104 = vmatprep.subr.mxu1 %v458_v58  ;;  %v450_v4 = vld [vmem:[%s3325_s1 + $0xd58] sm:$0xff]  ;;  %v449_v6 = vld [vmem:[%s3325_s1 + $0xd50] sm:$0xff] }
  0xd0   :  { %1034 = vmatpush1.msra.mxu0 %v329_v59  ;;  %1105 = vmatpush1.msra.mxu1 %v457_v60  ;;  %v318_v7 = vld [vmem:[%s3325_s1 + $0x938] sm:$0xff]  ;;  %v317_v10 = vld [vmem:[%s3325_s1 + $0x930] sm:$0xff] }
  0xd1   :  { %1035 = vmatprep.subr.mxu0 %v326_v61  ;;  %1106 = vmatprep.subr.mxu1 %v454_v63  ;;  %v446_v9 = vld [vmem:[%s3325_s1 + $0xd38] sm:$0xff]  ;;  %v445_v12 = vld [vmem:[%s3325_s1 + $0xd30] sm:$0xff] }
  0xd2   :  { %1036 = vmatpush1.msra.mxu0 %v325_v0  ;;  %1107 = vmatpush1.msra.mxu1 %v453_v1  ;;  %v314_v13 = vld [vmem:[%s3325_s1 + $0x918] sm:$0xff]  ;;  %v313_v15 = vld [vmem:[%s3325_s1 + $0x910] sm:$0xff] }
  0xd3   :  { %1037 = vmatprep.subr.mxu0 %v322_v2  ;;  %1108 = vmatprep.subr.mxu1 %v450_v4  ;;  %v442_v14 = vld [vmem:[%s3325_s1 + $0xd18] sm:$0xff]  ;;  %v441_v17 = vld [vmem:[%s3325_s1 + $0xd10] sm:$0xff] }
  0xd4   :  { %1038 = vmatpush1.msra.mxu0 %v321_v5  ;;  %1109 = vmatpush1.msra.mxu1 %v449_v6  ;;  %v310_v18 = vld [vmem:[%s3325_s1 + $0x8f8] sm:$0xff]  ;;  %v309_v20 = vld [vmem:[%s3325_s1 + $0x8f0] sm:$0xff] }
  0xd5   :  { %1039 = vmatprep.subr.mxu0 %v318_v7  ;;  %1110 = vmatprep.subr.mxu1 %v446_v9  ;;  %v438_v19 = vld [vmem:[%s3325_s1 + $0xcf8] sm:$0xff]  ;;  %v437_v22 = vld [vmem:[%s3325_s1 + $0xcf0] sm:$0xff] }
  0xd6   :  { %1040 = vmatpush1.msra.mxu0 %v317_v10  ;;  %1111 = vmatpush1.msra.mxu1 %v445_v12  ;;  %v306_v23 = vld [vmem:[%s3325_s1 + $0x8d8] sm:$0xff]  ;;  %v305_v52 = vld [vmem:[%s3325_s1 + $0x8d0] sm:$0xff] }
  0xd7   :  { %1041 = vmatprep.subr.mxu0 %v314_v13  ;;  %1112 = vmatprep.subr.mxu1 %v442_v14  ;;  %v434_v24 = vld [vmem:[%s3325_s1 + $0xcd8] sm:$0xff]  ;;  %v433_v26 = vld [vmem:[%s3325_s1 + $0xcd0] sm:$0xff] }
  0xd8   :  { %1042 = vmatpush1.msra.mxu0 %v313_v15  ;;  %1113 = vmatpush1.msra.mxu1 %v441_v17  ;;  %v302_v27 = vld [vmem:[%s3325_s1 + $0x8b8] sm:$0xff]  ;;  %v301_v30 = vld [vmem:[%s3325_s1 + $0x8b0] sm:$0xff] }
  0xd9   :  { %1043 = vmatprep.subr.mxu0 %v310_v18  ;;  %1114 = vmatprep.subr.mxu1 %v438_v19  ;;  %v430_v29 = vld [vmem:[%s3325_s1 + $0xcb8] sm:$0xff]  ;;  %v429_v31 = vld [vmem:[%s3325_s1 + $0xcb0] sm:$0xff] }
  0xda   :  { %1044 = vmatpush1.msra.mxu0 %v309_v20  ;;  %1115 = vmatpush1.msra.mxu1 %v437_v22  ;;  %v298_v32 = vld [vmem:[%s3325_s1 + $0x898] sm:$0xff]  ;;  %v297_v34 = vld [vmem:[%s3325_s1 + $0x890] sm:$0xff] }
  0xdb   :  { %1045 = vmatprep.subr.mxu0 %v306_v23  ;;  %1116 = vmatprep.subr.mxu1 %v434_v24  ;;  %v426_v33 = vld [vmem:[%s3325_s1 + $0xc98] sm:$0xff]  ;;  %v425_v35 = vld [vmem:[%s3325_s1 + $0xc90] sm:$0xff] }
  0xdc   :  { %1046 = vmatpush1.msra.mxu0 %v305_v52  ;;  %1117 = vmatpush1.msra.mxu1 %v433_v26  ;;  %v294_v36 = vld [vmem:[%s3325_s1 + $0x878] sm:$0xff]  ;;  %v293_v38 = vld [vmem:[%s3325_s1 + $0x870] sm:$0xff] }
  0xdd   :  { %1047 = vmatprep.subr.mxu0 %v302_v27  ;;  %1118 = vmatprep.subr.mxu1 %v430_v29  ;;  %v422_v37 = vld [vmem:[%s3325_s1 + $0xc78] sm:$0xff]  ;;  %v421_v39 = vld [vmem:[%s3325_s1 + $0xc70] sm:$0xff] }
  0xde   :  { %1048 = vmatpush1.msra.mxu0 %v301_v30  ;;  %1119 = vmatpush1.msra.mxu1 %v429_v31  ;;  %v290_v40 = vld [vmem:[%s3325_s1 + $0x858] sm:$0xff]  ;;  %v289_v43 = vld [vmem:[%s3325_s1 + $0x850] sm:$0xff] }
  0xdf   :  { %1049 = vmatprep.subr.mxu0 %v298_v32  ;;  %1120 = vmatprep.subr.mxu1 %v426_v33  ;;  %v418_v42 = vld [vmem:[%s3325_s1 + $0xc58] sm:$0xff]  ;;  %v417_v44 = vld [vmem:[%s3325_s1 + $0xc50] sm:$0xff] }
  0xe0   :  { %1050 = vmatpush1.msra.mxu0 %v297_v34  ;;  %1121 = vmatpush1.msra.mxu1 %v425_v35  ;;  %v286_v45 = vld [vmem:[%s3325_s1 + $0x838] sm:$0xff]  ;;  %v285_v47 = vld [vmem:[%s3325_s1 + $0x830] sm:$0xff] }
  0xe1   :  { %1051 = vmatprep.subr.mxu0 %v294_v36  ;;  %1122 = vmatprep.subr.mxu1 %v422_v37  ;;  %v414_v46 = vld [vmem:[%s3325_s1 + $0xc38] sm:$0xff]  ;;  %v413_v48 = vld [vmem:[%s3325_s1 + $0xc30] sm:$0xff] }
  0xe2   :  { %1052 = vmatpush1.msra.mxu0 %v293_v38  ;;  %1123 = vmatpush1.msra.mxu1 %v421_v39  ;;  %v282_v49 = vld [vmem:[%s3325_s1 + $0x818] sm:$0xff]  ;;  %v281_v51 = vld [vmem:[%s3325_s1 + $0x810] sm:$0xff] }
  0xe3   :  { %1053 = vmatprep.subr.mxu0 %v290_v40  ;;  %1124 = vmatprep.subr.mxu1 %v418_v42  ;;  %v410_v50 = vld [vmem:[%s3325_s1 + $0xc18] sm:$0xff]  ;;  %v409_v8 = vld [vmem:[%s3325_s1 + $0xc10] sm:$0xff] }
  0xe4   :  { %1054 = vmatpush1.msra.mxu0 %v289_v43  ;;  %1125 = vmatpush1.msra.mxu1 %v417_v44  ;;  %v406_v53 = vld [vmem:[%s3325_s1 + $0xbf8] sm:$0xff]  ;;  %v405_v11 = vld [vmem:[%s3325_s1 + $0xbf0] sm:$0xff] }
  0xe5   :  { %1055 = vmatprep.subr.mxu0 %v286_v45  ;;  %1126 = vmatprep.subr.mxu1 %v414_v46  ;;  %v534_v62 = vld [vmem:[%s3325_s1 + $0xff8] sm:$0xff]  ;;  %v533_v54 = vld [vmem:[%s3325_s1 + $0xff0] sm:$0xff] }
  0xe6   :  { %1056 = vmatpush1.msra.mxu0 %v285_v47  ;;  %1127 = vmatpush1.msra.mxu1 %v413_v48  ;;  %v402_v55 = vld [vmem:[%s3325_s1 + $0xbd8] sm:$0xff]  ;;  %v401_v56 = vld [vmem:[%s3325_s1 + $0xbd0] sm:$0xff] }
  0xe7   :  { %1057 = vmatprep.subr.mxu0 %v282_v49  ;;  %1128 = vmatprep.subr.mxu1 %v410_v50  ;;  %v530_v3 = vld [vmem:[%s3325_s1 + $0xfd8] sm:$0xff]  ;;  %v529_v57 = vld [vmem:[%s3325_s1 + $0xfd0] sm:$0xff] }
  0xe8   :  { %1058 = vmatpush1.msra.mxu0 %v281_v51  ;;  %1129 = vmatpush1.msra.mxu1 %v409_v8  ;;  %v398_v58 = vld [vmem:[%s3325_s1 + $0xbb8] sm:$0xff]  ;;  %v397_v60 = vld [vmem:[%s3325_s1 + $0xbb0] sm:$0xff] }
  0xe9   :  { %1059 = vmatprep.subr.mxu0 %v406_v53  ;;  %1130 = vmatprep.subr.mxu1 %v534_v62  ;;  %v526_v59 = vld [vmem:[%s3325_s1 + $0xfb8] sm:$0xff]  ;;  %v525_v61 = vld [vmem:[%s3325_s1 + $0xfb0] sm:$0xff] }
  0xea   :  { %1060 = vmatpush2.msra.mxu0 %v405_v11  ;;  %1131 = vmatpush2.msra.mxu1 %v533_v54  ;;  %v394_v63 = vld [vmem:[%s3325_s1 + $0xb98] sm:$0xff]  ;;  %v393_v1 = vld [vmem:[%s3325_s1 + $0xb90] sm:$0xff] }
  0xeb   :  { %1061 = vmatprep.subr.mxu0 %v402_v55  ;;  %1132 = vmatprep.subr.mxu1 %v530_v3  ;;  %v522_v0 = vld [vmem:[%s3325_s1 + $0xf98] sm:$0xff]  ;;  %v521_v2 = vld [vmem:[%s3325_s1 + $0xf90] sm:$0xff] }
  0xec   :  { %1062 = vmatpush2.msra.mxu0 %v401_v56  ;;  %1133 = vmatpush2.msra.mxu1 %v529_v57  ;;  %v390_v4 = vld [vmem:[%s3325_s1 + $0xb78] sm:$0xff]  ;;  %v389_v6 = vld [vmem:[%s3325_s1 + $0xb70] sm:$0xff] }
  0xed   :  { %1063 = vmatprep.subr.mxu0 %v398_v58  ;;  %1134 = vmatprep.subr.mxu1 %v526_v59  ;;  %v518_v5 = vld [vmem:[%s3325_s1 + $0xf78] sm:$0xff]  ;;  %v517_v7 = vld [vmem:[%s3325_s1 + $0xf70] sm:$0xff]  ;;  %v1186_v59 = vld [vmem:[%s3327_s3 + $0x68] sm:$0xff] }
  0xee   :  { %1064 = vmatpush2.msra.mxu0 %v397_v60  ;;  %1135 = vmatpush2.msra.mxu1 %v525_v61  ;;  %v386_v9 = vld [vmem:[%s3325_s1 + $0xb58] sm:$0xff]  ;;  %v385_v12 = vld [vmem:[%s3325_s1 + $0xb50] sm:$0xff]  ;;  %v1201_v61 = vld [vmem:[%s3327_s3 + $0xe0] sm:$0xff] }
  0xef   :  { %1065 = vmatprep.subr.mxu0 %v394_v63  ;;  %1136 = vmatprep.subr.mxu1 %v522_v0  ;;  %v514_v10 = vld [vmem:[%s3325_s1 + $0xf58] sm:$0xff]  ;;  %v513_v13 = vld [vmem:[%s3325_s1 + $0xf50] sm:$0xff]  ;;  %v1234_v63 = vld [vmem:[%s3327_s3 + $0x1e8] sm:$0xff] }
  0xf0   :  { %1066 = vmatpush2.msra.mxu0 %v393_v1  ;;  %1137 = vmatpush2.msra.mxu1 %v521_v2  ;;  %v382_v14 = vld [vmem:[%s3325_s1 + $0xb38] sm:$0xff]  ;;  %v381_v17 = vld [vmem:[%s3325_s1 + $0xb30] sm:$0xff]  ;;  %v1185_v0 = vld [vmem:[%s3327_s3 + $0x60] sm:$0xff] }
  0xf1   :  { %1067 = vmatprep.subr.mxu0 %v390_v4  ;;  %1138 = vmatprep.subr.mxu1 %v518_v5  ;;  %v510_v15 = vld [vmem:[%s3325_s1 + $0xf38] sm:$0xff]  ;;  %v509_v18 = vld [vmem:[%s3325_s1 + $0xf30] sm:$0xff]  ;;  %v1218_v1 = vld [vmem:[%s3327_s3 + $0x168] sm:$0xff] }
  0xf2   :  { %1068 = vmatpush2.msra.mxu0 %v389_v6  ;;  %1139 = vmatpush2.msra.mxu1 %v517_v7  ;;  %v378_v19 = vld [vmem:[%s3325_s1 + $0xb18] sm:$0xff]  ;;  %v377_v22 = vld [vmem:[%s3325_s1 + $0xb10] sm:$0xff]  ;;  %v1233_v4 = vld [vmem:[%s3327_s3 + $0x1e0] sm:$0xff] }
  0xf3   :  { %1069 = vmatprep.subr.mxu0 %v386_v9  ;;  %1140 = vmatprep.subr.mxu1 %v514_v10  ;;  %v506_v20 = vld [vmem:[%s3325_s1 + $0xf18] sm:$0xff]  ;;  %v505_v23 = vld [vmem:[%s3325_s1 + $0xf10] sm:$0xff]  ;;  %v1217_v6 = vld [vmem:[%s3327_s3 + $0x160] sm:$0xff] }
  0xf4   :  { %1070 = vmatpush2.msra.mxu0 %v385_v12  ;;  %1141 = vmatpush2.msra.mxu1 %v513_v13  ;;  %v374_v24 = vld [vmem:[%s3325_s1 + $0xaf8] sm:$0xff]  ;;  %v373_v26 = vld [vmem:[%s3325_s1 + $0xaf0] sm:$0xff]  ;;  %v1198_v13 = vld [vmem:[%s3327_s3 + $0xc8] sm:$0xff] }
  0xf5   :  { %1071 = vmatprep.subr.mxu0 %v382_v14  ;;  %1142 = vmatprep.subr.mxu1 %v510_v15  ;;  %v502_v52 = vld [vmem:[%s3325_s1 + $0xef8] sm:$0xff]  ;;  %v501_v27 = vld [vmem:[%s3325_s1 + $0xef0] sm:$0xff]  ;;  %v1182_v15 = vld [vmem:[%s3327_s3 + $0x48] sm:$0xff] }
  0xf6   :  { %1072 = vmatpush2.msra.mxu0 %v381_v17  ;;  %1143 = vmatpush2.msra.mxu1 %v509_v18  ;;  %v370_v29 = vld [vmem:[%s3325_s1 + $0xad8] sm:$0xff]  ;;  %v369_v31 = vld [vmem:[%s3325_s1 + $0xad0] sm:$0xff]  ;;  %v1197_v18 = vld [vmem:[%s3327_s3 + $0xc0] sm:$0xff] }
  0xf7   :  { %1073 = vmatprep.subr.mxu0 %v378_v19  ;;  %1144 = vmatprep.subr.mxu1 %v506_v20  ;;  %v498_v30 = vld [vmem:[%s3325_s1 + $0xed8] sm:$0xff]  ;;  %v497_v32 = vld [vmem:[%s3325_s1 + $0xed0] sm:$0xff]  ;;  %v1230_v19 = vld [vmem:[%s3327_s3 + $0x1c8] sm:$0xff] }
  0xf8   :  { %1074 = vmatpush2.msra.mxu0 %v377_v22  ;;  %1145 = vmatpush2.msra.mxu1 %v505_v23  ;;  %v366_v33 = vld [vmem:[%s3325_s1 + $0xab8] sm:$0xff]  ;;  %v365_v35 = vld [vmem:[%s3325_s1 + $0xab0] sm:$0xff]  ;;  %v1181_v20 = vld [vmem:[%s3327_s3 + $0x40] sm:$0xff] }
  0xf9   :  { %1075 = vmatprep.subr.mxu0 %v374_v24  ;;  %1146 = vmatprep.subr.mxu1 %v502_v52  ;;  %v494_v34 = vld [vmem:[%s3325_s1 + $0xeb8] sm:$0xff]  ;;  %v493_v36 = vld [vmem:[%s3325_s1 + $0xeb0] sm:$0xff]  ;;  %v1214_v22 = vld [vmem:[%s3327_s3 + $0x148] sm:$0xff] }
  0xfa   :  { %1076 = vmatpush2.msra.mxu0 %v373_v26  ;;  %1147 = vmatpush2.msra.mxu1 %v501_v27  ;;  %v362_v37 = vld [vmem:[%s3325_s1 + $0xa98] sm:$0xff]  ;;  %v361_v39 = vld [vmem:[%s3325_s1 + $0xa90] sm:$0xff]  ;;  %v1229_v24 = vld [vmem:[%s3327_s3 + $0x1c0] sm:$0xff] }
  0xfb   :  { %1077 = vmatprep.subr.mxu0 %v370_v29  ;;  %1148 = vmatprep.subr.mxu1 %v498_v30  ;;  %v490_v38 = vld [vmem:[%s3325_s1 + $0xe98] sm:$0xff]  ;;  %v489_v40 = vld [vmem:[%s3325_s1 + $0xe90] sm:$0xff]  ;;  %v1213_v26 = vld [vmem:[%s3327_s3 + $0x140] sm:$0xff] }
  0xfc   :  { %1078 = vmatpush2.msra.mxu0 %v369_v31  ;;  %1149 = vmatpush2.msra.mxu1 %v497_v32  ;;  %v358_v42 = vld [vmem:[%s3325_s1 + $0xa78] sm:$0xff]  ;;  %v357_v44 = vld [vmem:[%s3325_s1 + $0xa70] sm:$0xff]  ;;  %v1194_v32 = vld [vmem:[%s3327_s3 + $0xa8] sm:$0xff] }
  0xfd   :  { %1079 = vmatprep.subr.mxu0 %v366_v33  ;;  %1150 = vmatprep.subr.mxu1 %v494_v34  ;;  %v486_v43 = vld [vmem:[%s3325_s1 + $0xe78] sm:$0xff]  ;;  %v485_v45 = vld [vmem:[%s3325_s1 + $0xe70] sm:$0xff]  ;;  %v1178_v34 = vld [vmem:[%s3327_s3 + $0x28] sm:$0xff] }
  0xfe   :  { %1080 = vmatpush2.msra.mxu0 %v365_v35  ;;  %1151 = vmatpush2.msra.mxu1 %v493_v36  ;;  %v354_v46 = vld [vmem:[%s3325_s1 + $0xa58] sm:$0xff]  ;;  %v353_v48 = vld [vmem:[%s3325_s1 + $0xa50] sm:$0xff]  ;;  %v1193_v36 = vld [vmem:[%s3327_s3 + $0xa0] sm:$0xff] }
  0xff   :  { %1081 = vmatprep.subr.mxu0 %v362_v37  ;;  %1152 = vmatprep.subr.mxu1 %v490_v38  ;;  %v482_v47 = vld [vmem:[%s3325_s1 + $0xe58] sm:$0xff]  ;;  %v481_v49 = vld [vmem:[%s3325_s1 + $0xe50] sm:$0xff]  ;;  %v1226_v37 = vld [vmem:[%s3327_s3 + $0x1a8] sm:$0xff] }
 0x100   :  { %1082 = vmatpush2.msra.mxu0 %v361_v39  ;;  %1153 = vmatpush2.msra.mxu1 %v489_v40  ;;  %v350_v50 = vld [vmem:[%s3325_s1 + $0xa38] sm:$0xff]  ;;  %v349_v8 = vld [vmem:[%s3325_s1 + $0xa30] sm:$0xff]  ;;  %v1177_v38 = vld [vmem:[%s3327_s3 + $0x20] sm:$0xff] }
 0x101   :  { %1083 = vmatprep.subr.mxu0 %v358_v42  ;;  %1154 = vmatprep.subr.mxu1 %v486_v43  ;;  %v478_v51 = vld [vmem:[%s3325_s1 + $0xe38] sm:$0xff]  ;;  %v477_v53 = vld [vmem:[%s3325_s1 + $0xe30] sm:$0xff]  ;;  %v1210_v39 = vld [vmem:[%s3327_s3 + $0x128] sm:$0xff] }
 0x102   :  { %1084 = vmatpush2.msra.mxu0 %v357_v44  ;;  %1155 = vmatpush2.msra.mxu1 %v485_v45  ;;  %v346_v62 = vld [vmem:[%s3325_s1 + $0xa18] sm:$0xff]  ;;  %v345_v54 = vld [vmem:[%s3325_s1 + $0xa10] sm:$0xff]  ;;  %v1190_v45 = vld [vmem:[%s3327_s3 + $0x88] sm:$0xff] }
 0x103   :  { %1085 = vmatprep.subr.mxu0 %v354_v46  ;;  %1156 = vmatprep.subr.mxu1 %v482_v47  ;;  %v474_v11 = vld [vmem:[%s3325_s1 + $0xe18] sm:$0xff]  ;;  %v473_v55 = vld [vmem:[%s3325_s1 + $0xe10] sm:$0xff]  ;;  %v1174_v46 = vld [vmem:[%s3327_s3 + $0x8] sm:$0xff] }
 0x104   :  { %1086 = vmatpush2.msra.mxu0 %v353_v48  ;;  %1157 = vmatpush2.msra.mxu1 %v481_v49  ;;  %v1204_v3 = vld [vmem:[%s3327_s3 + $0xf8] sm:$0xff]  ;;  %v1203_v57 = vld [vmem:[%s3327_s3 + $0xf0] sm:$0xff]  ;;  %v1189_v47 = vld [vmem:[%s3327_s3 + $0x80] sm:$0xff]  ;;  %v539_v49 = vsub.s32 0, %v1834_v41 }
 0x105   :  { %1087 = vmatprep.subr.mxu0 %v350_v50  ;;  %1158 = vmatprep.subr.mxu1 %v478_v51  ;;  %v1188_v56 = vld [vmem:[%s3327_s3 + $0x78] sm:$0xff]  ;;  %v1235_v58 = vld [vmem:[%s3327_s3 + $0x1f0] sm:$0xff]  ;;  %v1173_v48 = vld [vmem:[%s3327_s3] sm:$0xff]  ;;  %v543_v51 = vsub.s32 1, %v1834_v41 }
 0x106   :  { %1088 = vmatpush2.msra.mxu0 %v349_v8  ;;  %1159 = vmatpush2.msra.mxu1 %v477_v53  ;;  %v1219_v60 = vld [vmem:[%s3327_s3 + $0x170] sm:$0xff]  ;;  %v1200_v2 = vld [vmem:[%s3327_s3 + $0xd8] sm:$0xff]  ;;  %v535_v50 = vld [vmem:[%s3326_s2] sm:$0xf]  ;;  %v667_v8 = vpop.f32.mrf.mxu0 }
 0x107   :  { %1089 = vmatprep.subr.mxu0 %v346_v62  ;;  %1160 = vmatprep.subr.mxu1 %v474_v11  ;;  %v1184_v5 = vld [vmem:[%s3327_s3 + $0x58] sm:$0xff]  ;;  %v1199_v7 = vld [vmem:[%s3327_s3 + $0xd0] sm:$0xff]  ;;  %v540_v53 = vrot.slane %v535_v50, %v539_v49  ;;  %v544_v62 = vrot.slane %v535_v50, %v543_v51  ;;  %v738_v11 = vpop.f32.mrf.mxu1 }
 0x108   :  { %1090 = vmatpush2.msra.mxu0 %v345_v54  ;;  %1091 = vmatprep.mubr.f32.mxu0 %v2327_v25  ;;  %v1187_v25 = vld [vmem:[%s3327_s3 + $0x70] sm:$0xff]  ;;  %v1232_v9 = vld [vmem:[%s3327_s3 + $0x1d8] sm:$0xff]  ;;  %v669_v54 = vpop.f32.mrf.mxu0 }
 0x109   :  { %1161 = vmatpush2.msra.mxu1 %v473_v55  ;;  %1162 = vmatprep.mubr.f32.mxu1 %v2337_v28  ;;  %v1202_v28 = vld [vmem:[%s3327_s3 + $0xe8] sm:$0xff]  ;;  %v1183_v10 = vld [vmem:[%s3327_s3 + $0x50] sm:$0xff]  ;;  %v1216_v12 = vld [vmem:[%s3327_s3 + $0x158] sm:$0xff]  ;;  %v668_v55 = vadd.f32 %v667_v8, %v540_v53 }
 0x10a   :  { %1092 = vmatmul.mubr.f32.vlgmr.msra.gmra.mxu0 %v2296_v16  ;;  %1163 = vmatmul.mubr.f32.vlgmr.msra.gmra.mxu1 %v2311_v21  ;;  %v1236_v16 = vld [vmem:[%s3327_s3 + $0x1f8] sm:$0xff]  ;;  %v1231_v14 = vld [vmem:[%s3327_s3 + $0x1d0] sm:$0xff] }
 0x10b   :  { %1400 = vmatprep.subr.mxu0 %v1204_v3  ;;  %v1220_v21 = vld [vmem:[%s3327_s3 + $0x178] sm:$0xff]  ;;  %1435 = vmatprep.subr.mxu1 %v1236_v16  ;;  %v1215_v17 = vld [vmem:[%s3327_s3 + $0x150] sm:$0xff]  ;;  %v670_v3 = vadd.f32 %v669_v54, %v544_v62 }
 0x10c   :  { %1401 = vmatpush3.msra.mxu0 %v1188_v56  ;;  %1436 = vmatpush3.msra.mxu1 %v1220_v21  ;;  %v1196_v23 = vld [vmem:[%s3327_s3 + $0xb8] sm:$0xff]  ;;  %v1195_v27 = vld [vmem:[%s3327_s3 + $0xb0] sm:$0xff]  ;;  %v740_v56 = vpop.f32.mrf.mxu1 }
 0x10d   :  { %1402 = vmatprep.subr.mxu0 %v1203_v57  ;;  %1437 = vmatprep.subr.mxu1 %v1235_v58  ;;  %v1180_v52 = vld [vmem:[%s3327_s3 + $0x38] sm:$0xff]  ;;  %v1179_v30 = vld [vmem:[%s3327_s3 + $0x30] sm:$0xff]  ;;  %v739_v57 = vadd.f32 %v738_v11, %v668_v55 }
 0x10e   :  { %1403 = vmatpush3.msra.mxu0 %v1187_v25  ;;  %1438 = vmatpush3.msra.mxu1 %v1219_v60  ;;  %v1228_v29 = vld [vmem:[%s3327_s3 + $0x1b8] sm:$0xff]  ;;  %v1227_v33 = vld [vmem:[%s3327_s3 + $0x1b0] sm:$0xff] }
 0x10f   :  { %1404 = vmatprep.subr.mxu0 %v1202_v28  ;;  %1439 = vmatprep.subr.mxu1 %v1234_v63  ;;  %v1212_v31 = vld [vmem:[%s3327_s3 + $0x138] sm:$0xff]  ;;  %v1211_v35 = vld [vmem:[%s3327_s3 + $0x130] sm:$0xff]  ;;  %v741_v28 = vadd.f32 %v740_v56, %v670_v3  ;;  %v1225_v63 = vld [vmem:[%s3327_s3 + $0x1a0] sm:$0xff] }
 0x110   :  { %1405 = vmatpush3.msra.mxu0 %v1186_v59  ;;  %1440 = vmatpush3.msra.mxu1 %v1218_v1  ;;  %v1192_v40 = vld [vmem:[%s3327_s3 + $0x98] sm:$0xff]  ;;  %v1191_v43 = vld [vmem:[%s3327_s3 + $0x90] sm:$0xff]  ;;  %v1209_v1 = vld [vmem:[%s3327_s3 + $0x120] sm:$0xff] }
 0x111   :  { %1406 = vmatprep.subr.mxu0 %v1201_v61  ;;  %1441 = vmatprep.subr.mxu1 %v1233_v4  ;;  %v1176_v42 = vld [vmem:[%s3327_s3 + $0x18] sm:$0xff]  ;;  %v1175_v44 = vld [vmem:[%s3327_s3 + $0x10] sm:$0xff] }
 0x112   :  { %1407 = vmatpush3.msra.mxu0 %v1185_v0  ;;  %1442 = vmatpush3.msra.mxu1 %v1217_v6 }
 0x113   :  { %1408 = vmatprep.subr.mxu0 %v1200_v2  ;;  %1443 = vmatprep.subr.mxu1 %v1232_v9  ;;  %v1224_v2 = vld [vmem:[%s3327_s3 + $0x198] sm:$0xff]  ;;  %v1207_v9 = vld [vmem:[%s3327_s3 + $0x110] sm:$0xff] }
 0x114   :  { %1409 = vmatpush3.msra.mxu0 %v1184_v5  ;;  %1444 = vmatpush3.msra.mxu1 %v1216_v12  ;;  %v1208_v5 = vld [vmem:[%s3327_s3 + $0x118] sm:$0xff]  ;;  %v1206_v12 = vld [vmem:[%s3327_s3 + $0x108] sm:$0xff] }
 0x115   :  { %1410 = vmatprep.subr.mxu0 %v1199_v7  ;;  %1445 = vmatprep.subr.mxu1 %v1231_v14  ;;  %v1223_v7 = vld [vmem:[%s3327_s3 + $0x190] sm:$0xff]  ;;  %v1205_v14 = vld [vmem:[%s3327_s3 + $0x100] sm:$0xff] }
 0x116   :  { %1411 = vmatpush3.msra.mxu0 %v1183_v10  ;;  %1446 = vmatpush3.msra.mxu1 %v1215_v17  ;;  %v1222_v10 = vld [vmem:[%s3327_s3 + $0x188] sm:$0xff]  ;;  %v551_v17 = vsub.s32 3, %v1834_v41 }
 0x117   :  { %1412 = vmatprep.subr.mxu0 %v1198_v13  ;;  %1447 = vmatprep.subr.mxu1 %v1230_v19  ;;  %v1221_v13 = vld [vmem:[%s3327_s3 + $0x180] sm:$0xff] }
 0x118   :  { %1413 = vmatpush3.msra.mxu0 %v1182_v15  ;;  %1448 = vmatpush3.msra.mxu1 %v1214_v22  ;;  %v547_v15 = vsub.s32 2, %v1834_v41 }
 0x119   :  { %1414 = vmatprep.subr.mxu0 %v1197_v18  ;;  %1449 = vmatprep.subr.mxu1 %v1229_v24 }
 0x11a   :  { %1415 = vmatpush3.msra.mxu0 %v1181_v20  ;;  %1450 = vmatpush3.msra.mxu1 %v1213_v26  ;;  %v548_v19 = vrot.slane %v535_v50, %v547_v15  ;;  %v552_v20 = vrot.slane %v535_v50, %v551_v17 }
 0x11b   :  { %1416 = vmatprep.subr.mxu0 %v1196_v23  ;;  %1451 = vmatprep.subr.mxu1 %v1228_v29 }
 0x11c   :  { %1417 = vmatpush3.msra.mxu0 %v1180_v52  ;;  %1452 = vmatpush3.msra.mxu1 %v1212_v31 }
 0x11d   :  { %1418 = vmatprep.subr.mxu0 %v1195_v27  ;;  %1453 = vmatprep.subr.mxu1 %v1227_v33 }
 0x11e   :  { %1419 = vmatpush3.msra.mxu0 %v1179_v30  ;;  %1454 = vmatpush3.msra.mxu1 %v1211_v35 }
 0x11f   :  { %1420 = vmatprep.subr.mxu0 %v1194_v32  ;;  %1455 = vmatprep.subr.mxu1 %v1226_v37 }
 0x120   :  { %1421 = vmatpush3.msra.mxu0 %v1178_v34  ;;  %1456 = vmatpush3.msra.mxu1 %v1210_v39 }
 0x121   :  { %1422 = vmatprep.subr.mxu0 %v1193_v36  ;;  %1457 = vmatprep.subr.mxu1 %v1225_v63 }
 0x122   :  { %1423 = vmatpush3.msra.mxu0 %v1177_v38  ;;  %1458 = vmatpush3.msra.mxu1 %v1209_v1 }
 0x123   :  { %1424 = vmatprep.subr.mxu0 %v1192_v40  ;;  %1459 = vmatprep.subr.mxu1 %v1224_v2 }
 0x124   :  { %1425 = vmatpush3.msra.mxu0 %v1176_v42  ;;  %1460 = vmatpush3.msra.mxu1 %v1208_v5 }
 0x125   :  { %1426 = vmatprep.subr.mxu0 %v1191_v43  ;;  %1461 = vmatprep.subr.mxu1 %v1223_v7  ;;  %v1399_v43 = vld [vmem:[%s3328_s4] ss:$0 sm:$0xff] }
 0x126   :  { %1427 = vmatpush3.msra.mxu0 %v1175_v44  ;;  %1462 = vmatpush3.msra.mxu1 %v1207_v9 }
 0x127   :  { %1428 = vmatprep.subr.mxu0 %v1190_v45  ;;  %1463 = vmatprep.subr.mxu1 %v1222_v10 }
 0x128   :  { %1429 = vmatpush3.msra.mxu0 %v1174_v46  ;;  %1464 = vmatpush3.msra.mxu1 %v1206_v12 }
 0x129   :  { %1430 = vmatprep.subr.mxu0 %v1189_v47  ;;  %1465 = vmatprep.subr.mxu1 %v1221_v13 }
 0x12a   :  { %1431 = vmatpush3.msra.mxu0 %v1173_v48  ;;  %1466 = vmatpush3.msra.mxu1 %v1205_v14 }
 0x145   :  { %v809_v25 = vpop.f32.mrf.mxu0 }
 0x146   :  { %v810_v16 = vadd.f32 %v809_v25, %v739_v57 }
 0x147   :  { %v880_v21 = vpop.f32.mrf.mxu1  ;;  %v811_v58 = vpop.f32.mrf.mxu0 }
 0x148   :  { %v812_v59 = vadd.f32 %v811_v58, %v741_v28  ;;  %v881_v60 = vadd.f32 %v880_v21, %v810_v16 }
 0x149   :  { %v882_v61 = vpop.f32.mrf.mxu1 }
 0x14a   :  { %v883_v0 = vadd.f32 %v882_v61, %v812_v59  ;;  %v1169_v6 = vmax.f32 %v881_v60, 0.0 }
 0x14c   :  { %v1170_v4 = vmax.f32 %v883_v0, 0.0 }
 0x14e   :  { %1308 = vmatprep.mubr.f32.mxu0 %v1170_v4 }
 0x14f   :  { %1309 = vmatmul.mubr.f32.vlgmr.msra.gmra.mxu0 %v1169_v6 }
 0x187   :  { %v951_v18 = vpop.f32.mrf.mxu0 }
 0x188   :  { %v952_v24 = vadd.f32 %v951_v18, %v548_v19 }
 0x189   :  { %v1022_v22 = vpop.f32.mrf.mxu1  ;;  %v953_v23 = vpop.f32.mrf.mxu0 }
 0x18a   :  { %v954_v52 = vadd.f32 %v953_v23, %v552_v20  ;;  %v1023_v27 = vadd.f32 %v1022_v22, %v952_v24 }
 0x18b   :  { %v1024_v26 = vpop.f32.mrf.mxu1 }
 0x18c   :  { %v1025_v31 = vadd.f32 %v1024_v26, %v954_v52 }
 0x1ca   :  { %v1093_v29 = vpop.f32.mrf.mxu0  ;;  %v1164_v30 = vpop.f32.mrf.mxu1 }
 0x1cb   :  { %v1094_v32 = vadd.f32 %v1093_v29, %v1023_v27 }
 0x1cc   :  { %v1095_v33 = vpop.f32.mrf.mxu0  ;;  %v1166_v36 = vpop.f32.mrf.mxu1 }
 0x1cd   :  { %v1096_v34 = vadd.f32 %v1095_v33, %v1025_v31  ;;  %v1165_v35 = vadd.f32 %v1164_v30, %v1094_v32 }
 0x1cf   :  { %v1167_v37 = vadd.f32 %v1166_v36, %v1096_v34  ;;  %v1171_v41 = vmax.f32 %v1165_v35, 0.0 }
 0x1d1   :  { %v1172_v38 = vmax.f32 %v1167_v37, 0.0 }
 0x1d3   :  { %1378 = vmatprep.mubr.f32.mxu1 %v1172_v38 }
 0x1d4   :  { %1379 = vmatmul.mubr.f32.vlgmr.msra.gmra.mxu1 %v1171_v41 }
 0x20f   :  { %v1432_v39 = vpop.f32.mrf.mxu0 }
 0x211   :  { %v1433_v40 = vpop.f32.mrf.mxu0 }
 0x212   :  { %v1434_v42 = vadd.f32 %v1433_v40, %v1432_v39 }
 0x214   :  { %v1311_v46 = vadd.f32 %v1434_v42, %v1399_v43 }
 0x294   :  { %v1467_v44 = vpop.f32.mrf.mxu1 }
 0x296   :  { %v1468_v45 = vpop.f32.mrf.mxu1 }
 0x297   :  { %v1469_v47 = vadd.f32 %v1468_v45, %v1467_v44 }
 0x299   :  { %v1381_v48 = vadd.f32 %v1469_v47, %v1311_v46 }
 0x29b   :  { %1384 = vst [vmem:[#allocation2] sm:$0x3] %v1381_v48 }
 0x29c   :  { %1485 = shalt.err (!%p1482_p4)
}
 0x29d   :  { %1394 = dma.vmem_to_hbm [thread:$0]  %s1392_s21, 32, %s3329_s5, [#allocation3]  }
 0x29e   :  { %1494 = dma.done.wait [#allocation3], 32  }
 0x29f   :  { %1495 = vsyncadd [#allocation3], 4294967264 }
 0x2a0   :  { %1398 = vsyncpa [#allocation3], 1 }

</bundles_post_ra>
